<compile_context>
chip_gen: v7x
topology: tpu7x:2x2x1
jax: 0.10.0
libtpu: 0.0.40
codegen_flags: <defaults>
</compile_context>

<pallas_src>
import jax
import jax.numpy as jnp
from jax.experimental import pallas as pl
from jax.experimental.pallas import tpu as pltpu

# ----------------------------- configuration -------------------------------
N_HEAD = 8
EMBED = 32           # d_model == d_k == d_v == d_out (MHAP default: d_out=embed_dim)
D_K = EMBED
D_V = EMBED
D_OUT = EMBED
HE = N_HEAD * EMBED  # lanes of the folded "effective key" / context vectors
TEMPERATURE = float(D_K) ** 0.5
LN_EPS = 1e-5
PACK = 128           # lane-dense packed output slab: [ out | attn | zero pad ]


# ------------------------------ Pallas kernel ------------------------------
def mhap_kernel(x_ref, wqk_ref, bqk_ref, wvo_ref, bvo_ref, gamma_ref, beta_ref,
                out_ref, m3_ref, ctx2_ref):
    x = x_ref[...]                                           # (TB, S, E)
    tb, s_len, _ = x.shape

    # Query pooling (also the residual input).
    qi = jnp.mean(x, axis=1)                                 # (TB, E)

    # Per-head effective key vectors; 1/temp, bq, and Wq^T Wk folded on host.
    m = jnp.dot(qi, wqk_ref[...],
                preferred_element_type=jnp.float32) + bqk_ref[...]   # (TB, H*E)

    # (TB, H*E) -> (TB, H, E) relayout via scratch (8 tiny static copies).
    for h in range(N_HEAD):
        m3_ref[:, h, :] = m[:, h * EMBED:(h + 1) * EMBED]
    m3 = m3_ref[...]                                         # (TB, H, E)

    # Scores on the MXU: scores[b,h,t] = m3[b,h,:] . x[b,t,:]
    scores = jnp.einsum('bhe,bte->bht', m3, x,
                        preferred_element_type=jnp.float32)  # (TB, H, S)

    # Softmax over keys (last axis).  Exact normalisation so rows sum to 1
    # (required by the bv fold below; also exact attn-weight parity).
    smax = jnp.max(scores, axis=-1, keepdims=True)
    p = jnp.exp(scores - smax)
    p = p / jnp.sum(p, axis=-1, keepdims=True)               # (TB, H, S)

    # average_attn_weights=True -> mean over heads.
    attn = jnp.mean(p, axis=1)                               # (TB, S)

    # Per-head context on the MXU: ctx[b,h,:] = sum_t p[b,h,t] x[b,t,:]
    ctx = jnp.einsum('bht,bte->bhe', p, x,
                     preferred_element_type=jnp.float32)     # (TB, H, E)

    # (TB, H, E) -> (TB, H*E) relayout via scratch, then fused (Wv ; fc) matmul.
    m3_ref[...] = ctx
    for h in range(N_HEAD):
        ctx2_ref[:, h * EMBED:(h + 1) * EMBED] = m3_ref[:, h, :]
    o = jnp.dot(ctx2_ref[...], wvo_ref[...],
                preferred_element_type=jnp.float32) + bvo_ref[...]   # (TB, D_OUT)

    # Residual + LayerNorm.
    y = o + qi
    mu = jnp.mean(y, axis=-1, keepdims=True)
    var = jnp.mean((y - mu) ** 2, axis=-1, keepdims=True)
    yn = (y - mu) * jax.lax.rsqrt(var + LN_EPS)
    y = yn * gamma_ref[...] + beta_ref[...]                  # (TB, D_OUT)

    # Lane-dense packed writeback: one (TB, 128) slab per tile.
    out_ref[:, :D_OUT] = y
    out_ref[:, D_OUT:D_OUT + s_len] = attn
    if D_OUT + s_len < PACK:
        out_ref[:, D_OUT + s_len:] = jnp.zeros(
            (tb, PACK - D_OUT - s_len), jnp.float32)


# ------------------------------ host wrapper -------------------------------
def _pick_batch_tile(b):
    """Batch tile: <= 128 rows (review: 64-128 sweet spot), sublane-aligned,
    and when B permits small enough that there are >= 4 grid steps -- i.e.
    >= 2 per TensorCore once the 'parallel' batch axis is sharded across v7x's
    two cores, so the x-tile DMA actually pipelines on each core."""
    if b <= 8:
        return b
    tb = min(128, (b // 8) * 8)
    while tb > 8 and pl.cdiv(b, tb) < 4:
        tb //= 2
    return max(8, (tb // 8) * 8)


@jax.jit
def mhap_forward(x, wq, bq, wk, bk, wv, bv, wfc, bfc, gamma, beta):
    B, S, E = x.shape
    assert D_OUT + S <= PACK, "packed output slab too small for this config"
    tb = _pick_batch_tile(B)
    grid = (pl.cdiv(B, tb),)

    # ---- host-side weight folding (once per call, under jit) ----
    wq3 = wq.reshape(N_HEAD, D_K, E)
    wk3 = wk.reshape(N_HEAD, D_K, E)
    wv3 = wv.reshape(N_HEAD, D_V, E)
    # m_{b,h} = Wk_h^T (Wq_h Qi_b + bq_h) / temp   (bk shifts cancel in softmax)
    wqk = (jnp.einsum('hde,hdf->ehf', wq3, wk3) / TEMPERATURE).reshape(E, HE)
    bqk = (jnp.einsum('hd,hdf->hf', bq.reshape(N_HEAD, D_K), wk3)
           / TEMPERATURE).reshape(1, HE)
    # out = ctx_flat @ (blockdiag(Wv_h^T) @ Wfc^T) + (bv @ Wfc^T + bfc)
    wfc_t3 = wfc.T.reshape(N_HEAD, D_V, D_OUT)
    wvo = jnp.einsum('hve,hvo->heo', wv3, wfc_t3).reshape(HE, D_OUT)
    bvo = bv @ wfc.T + bfc                                   # (1, D_OUT)

    def rep(shape):
        zeros = (0,) * len(shape)
        return pl.BlockSpec(shape, lambda i: zeros)

    packed = pl.pallas_call(
        mhap_kernel,
        out_shape=jax.ShapeDtypeStruct((B, PACK), jnp.float32),
        grid_spec=pltpu.PrefetchScalarGridSpec(
            num_scalar_prefetch=0,
            grid=grid,
            in_specs=[
                pl.BlockSpec((tb, S, E), lambda i: (i, 0, 0)),  # embeddings tile
                rep((E, HE)),                                   # folded Wq^T Wk / temp
                rep((1, HE)),                                   # folded bq Wk / temp
                rep((HE, D_OUT)),                               # folded blkdiag(Wv^T) Wfc^T
                rep((1, D_OUT)),                                # folded bv Wfc^T + bfc
                rep((1, D_OUT)),                                # layer_norm.weight
                rep((1, D_OUT)),                                # layer_norm.bias
            ],
            out_specs=pl.BlockSpec((tb, PACK), lambda i: (i, 0)),
            scratch_shapes=[
                pltpu.VMEM((tb, N_HEAD, EMBED), jnp.float32),   # (TB,H,E) relayout buf
                pltpu.VMEM((tb, HE), jnp.float32),              # (TB,H*E) relayout buf
            ],
        ),
        compiler_params=pltpu.CompilerParams(
            dimension_semantics=("parallel",)),
    )(x, wqk, bqk, wvo, bvo, gamma, beta)

    # Module API: attn_output (B, D_OUT); attn weights (B, 1, S).
    out = packed[:, :D_OUT]
    attn = packed[:, D_OUT:D_OUT + S].reshape(B, 1, S)
    return out, attn


# ------------------------- pure-JAX reference (check) -----------------------
def mhap_reference(x, wq, bq, wk, bk, wv, bv, wfc, bfc, gamma, beta):
    B, S, E = x.shape
    qi = jnp.mean(x, axis=1, keepdims=True)                       # (B, 1, E)
    q = qi @ wq.T + bq                                            # (B, 1, H*DK)
    k = x @ wk.T + bk                                             # (B, S, H*DK)
    v = x @ wv.T + bv                                             # (B, S, H*DV)
    qh = q.reshape(B, 1, N_HEAD, D_K).transpose(2, 0, 1, 3)       # (H, B, 1, DK)
    kh = k.reshape(B, S, N_HEAD, D_K).transpose(2, 0, 1, 3)       # (H, B, S, DK)
    vh = v.reshape(B, S, N_HEAD, D_V).transpose(2, 0, 1, 3)       # (H, B, S, DV)
    scores = jnp.einsum('hbqd,hbkd->hbqk', qh, kh) / TEMPERATURE  # (H, B, 1, S)
    p = jax.nn.softmax(scores, axis=-1)
    o = jnp.einsum('hbqk,hbkd->hbqd', p, vh)                      # (H, B, 1, DV)
    attn = p.mean(axis=0)                                         # (B, 1, S)
    o = o.transpose(1, 2, 0, 3).reshape(B, 1, N_HEAD * D_V)
    o = o @ wfc.T + bfc
    y = o + qi
    mu = y.mean(-1, keepdims=True)
    var = ((y - mu) ** 2).mean(-1, keepdims=True)
    yn = (y - mu) / jnp.sqrt(var + LN_EPS)
    out = yn * gamma + beta
    return out[:, 0, :], attn


# ----------------------------------- main -----------------------------------
if __name__ == "__main__":
    key = jax.random.PRNGKey(0)
    B, S = 64, 16            # B=64 -> four grid steps of TB=16 batch rows
    ks = jax.random.split(key, 9)

    x = jax.random.normal(ks[0], (B, S, EMBED), dtype=jnp.float32)

    # Deterministic parameter init (mirrors shapes of the torch module)
    HDK, HDV = N_HEAD * D_K, N_HEAD * D_V
    std_qk = (2.0 / (EMBED + D_K)) ** 0.5
    std_v = (2.0 / (EMBED + D_V)) ** 0.5
    wq = std_qk * jax.random.normal(ks[1], (HDK, EMBED), dtype=jnp.float32)
    wk = std_qk * jax.random.normal(ks[2], (HDK, EMBED), dtype=jnp.float32)
    wv = std_v * jax.random.normal(ks[3], (HDV, EMBED), dtype=jnp.float32)
    bq = 0.01 * jax.random.normal(ks[4], (1, HDK), dtype=jnp.float32)
    bk = 0.01 * jax.random.normal(ks[5], (1, HDK), dtype=jnp.float32)
    bv = 0.01 * jax.random.normal(ks[6], (1, HDV), dtype=jnp.float32)
    std_fc = (2.0 / (HDV + D_OUT)) ** 0.5                         # xavier_normal
    wfc = std_fc * jax.random.normal(ks[7], (D_OUT, HDV), dtype=jnp.float32)
    bfc = 0.01 * jax.random.normal(ks[8], (1, D_OUT), dtype=jnp.float32)
    gamma = jnp.ones((1, D_OUT), dtype=jnp.float32)               # LayerNorm weight
    beta = jnp.zeros((1, D_OUT), dtype=jnp.float32)               # LayerNorm bias

    args = (x, wq, bq, wk, bk, wv, bv, wfc, bfc, gamma, beta)

    out, attn = mhap_forward(*args)
    out = jax.block_until_ready(out)
    attn = jax.block_until_ready(attn)

    ref_out, ref_attn = mhap_reference(*args)
    assert out.shape == (B, D_OUT), out.shape
    assert attn.shape == (B, 1, S), attn.shape
    # Tolerances absorb host-side weight folding / different matmul pass
    # structure vs the XLA reference (softmax is exactly normalised now).
    assert jnp.allclose(out, ref_out, atol=5e-3, rtol=5e-3), \
        float(jnp.max(jnp.abs(out - ref_out)))
    assert jnp.allclose(attn, ref_attn, atol=2e-3, rtol=2e-3), \
        float(jnp.max(jnp.abs(attn - ref_attn)))

    print("KERNEL_OK")
</pallas_src>

<mosaic_0001>
module attributes {stable_mosaic.version = 11 : i64} {
  func.func @mhap_kernel(%arg0: i32, %arg1: memref<16x16x32xf32, #tpu.memory_space<vmem>>, %arg2: memref<32x256xf32, #tpu.memory_space<vmem>>, %arg3: memref<1x256xf32, #tpu.memory_space<vmem>>, %arg4: memref<256x32xf32, #tpu.memory_space<vmem>>, %arg5: memref<1x32xf32, #tpu.memory_space<vmem>>, %arg6: memref<1x32xf32, #tpu.memory_space<vmem>>, %arg7: memref<1x32xf32, #tpu.memory_space<vmem>>, %arg8: memref<16x128xf32, #tpu.memory_space<vmem>>, %arg9: memref<16x8x32xf32, #tpu.memory_space<vmem>>, %arg10: memref<16x256xf32, #tpu.memory_space<vmem>>) attributes {dimension_semantics = [#tpu.dimension_semantics<parallel>], iteration_bounds = array<i64: 4>, scalar_prefetch = 0 : i64, scratch_operands = 2 : i64, tpu.core_type = #tpu.core_type<tc>, window_params = [{transform_indices = @transform_0, window_bounds = array<i64: 16, 16, 32>}, {pipeline_mode = #tpu.pipeline_mode<synchronous>, transform_indices = @transform_1, window_bounds = array<i64: 32, 256>}, {pipeline_mode = #tpu.pipeline_mode<synchronous>, transform_indices = @transform_2, window_bounds = array<i64: 1, 256>}, {pipeline_mode = #tpu.pipeline_mode<synchronous>, transform_indices = @transform_3, window_bounds = array<i64: 256, 32>}, {pipeline_mode = #tpu.pipeline_mode<synchronous>, transform_indices = @transform_4, window_bounds = array<i64: 1, 32>}, {pipeline_mode = #tpu.pipeline_mode<synchronous>, transform_indices = @transform_5, window_bounds = array<i64: 1, 32>}, {pipeline_mode = #tpu.pipeline_mode<synchronous>, transform_indices = @transform_6, window_bounds = array<i64: 1, 32>}, {transform_indices = @transform_7, window_bounds = array<i64: 16, 128>}]} {
    %c0 = arith.constant 0 : index
    %c0_0 = arith.constant 0 : index
    %c0_1 = arith.constant 0 : index
    %0 = vector.load %arg1[%c0, %c0_0, %c0_1] : memref<16x16x32xf32, #tpu.memory_space<vmem>>, vector<16x16x32xf32>
    %cst = arith.constant dense<0.000000e+00> : vector<16x32xf32>
    %1 = vector.multi_reduction <add>, %0, %cst [1] : vector<16x16x32xf32> to vector<16x32xf32>
    %cst_2 = arith.constant 1.600000e+01 : f32
    %2 = vector.broadcast %cst_2 : f32 to vector<16x32xf32>
    %3 = arith.divf %1, %2 : vector<16x32xf32>
    %c0_3 = arith.constant 0 : index
    %c0_4 = arith.constant 0 : index
    %4 = vector.load %arg2[%c0_3, %c0_4] : memref<32x256xf32, #tpu.memory_space<vmem>>, vector<32x256xf32>
    %cst_5 = arith.constant dense<0.000000e+00> : vector<16x256xf32>
    %5 = tpu.matmul %3, %4, %cst_5 {dimension_numbers = #tpu.dot_dimension_numbers<[1], [0], [0], [1], [0, 0, 1, 1], [], []>} : vector<16x32xf32>, vector<32x256xf32>, vector<16x256xf32> -> vector<16x256xf32>
    %c0_6 = arith.constant 0 : index
    %c0_7 = arith.constant 0 : index
    %6 = vector.load %arg3[%c0_6, %c0_7] : memref<1x256xf32, #tpu.memory_space<vmem>>, vector<1x256xf32>
    %7 = vector.broadcast %6 : vector<1x256xf32> to vector<16x256xf32>
    %8 = arith.addf %5, %7 : vector<16x256xf32>
    %9 = vector.extract_strided_slice %8 {offsets = [0, 0], sizes = [16, 32], strides = [1, 1]} : vector<16x256xf32> to vector<16x32xf32>
    %c0_8 = arith.constant 0 : index
    %c0_9 = arith.constant 0 : index
    %c0_10 = arith.constant 0 : index
    %10 = vector.load %arg9[%c0_8, %c0_9, %c0_10] : memref<16x8x32xf32, #tpu.memory_space<vmem>>, vector<16x1x32xf32>
    %11 = vector.shape_cast %10 : vector<16x1x32xf32> to vector<16x32xf32>
    %12 = vector.shape_cast %9 : vector<16x32xf32> to vector<16x1x32xf32>
    tpu.vector_store %arg9[%c0_8, %c0_9, %c0_10], %12 {strides = array<i32>} : memref<16x8x32xf32, #tpu.memory_space<vmem>>, vector<16x1x32xf32>,
    %13 = vector.extract_strided_slice %8 {offsets = [0, 32], sizes = [16, 32], strides = [1, 1]} : vector<16x256xf32> to vector<16x32xf32>
    %c0_11 = arith.constant 0 : index
    %c1 = arith.constant 1 : index
    %c0_12 = arith.constant 0 : index
    %14 = vector.load %arg9[%c0_11, %c1, %c0_12] : memref<16x8x32xf32, #tpu.memory_space<vmem>>, vector<16x1x32xf32>
    %15 = vector.shape_cast %14 : vector<16x1x32xf32> to vector<16x32xf32>
    %16 = vector.shape_cast %13 : vector<16x32xf32> to vector<16x1x32xf32>
    tpu.vector_store %arg9[%c0_11, %c1, %c0_12], %16 {strides = array<i32>} : memref<16x8x32xf32, #tpu.memory_space<vmem>>, vector<16x1x32xf32>,
    %17 = vector.extract_strided_slice %8 {offsets = [0, 64], sizes = [16, 32], strides = [1, 1]} : vector<16x256xf32> to vector<16x32xf32>
    %c0_13 = arith.constant 0 : index
    %c2 = arith.constant 2 : index
    %c0_14 = arith.constant 0 : index
    %18 = vector.load %arg9[%c0_13, %c2, %c0_14] : memref<16x8x32xf32, #tpu.memory_space<vmem>>, vector<16x1x32xf32>
    %19 = vector.shape_cast %18 : vector<16x1x32xf32> to vector<16x32xf32>
    %20 = vector.shape_cast %17 : vector<16x32xf32> to vector<16x1x32xf32>
    tpu.vector_store %arg9[%c0_13, %c2, %c0_14], %20 {strides = array<i32>} : memref<16x8x32xf32, #tpu.memory_space<vmem>>, vector<16x1x32xf32>,
    %21 = vector.extract_strided_slice %8 {offsets = [0, 96], sizes = [16, 32], strides = [1, 1]} : vector<16x256xf32> to vector<16x32xf32>
    %c0_15 = arith.constant 0 : index
    %c3 = arith.constant 3 : index
    %c0_16 = arith.constant 0 : index
    %22 = vector.load %arg9[%c0_15, %c3, %c0_16] : memref<16x8x32xf32, #tpu.memory_space<vmem>>, vector<16x1x32xf32>
    %23 = vector.shape_cast %22 : vector<16x1x32xf32> to vector<16x32xf32>
    %24 = vector.shape_cast %21 : vector<16x32xf32> to vector<16x1x32xf32>
    tpu.vector_store %arg9[%c0_15, %c3, %c0_16], %24 {strides = array<i32>} : memref<16x8x32xf32, #tpu.memory_space<vmem>>, vector<16x1x32xf32>,
    %25 = vector.extract_strided_slice %8 {offsets = [0, 128], sizes = [16, 32], strides = [1, 1]} : vector<16x256xf32> to vector<16x32xf32>
    %c0_17 = arith.constant 0 : index
    %c4 = arith.constant 4 : index
    %c0_18 = arith.constant 0 : index
    %26 = vector.load %arg9[%c0_17, %c4, %c0_18] : memref<16x8x32xf32, #tpu.memory_space<vmem>>, vector<16x1x32xf32>
    %27 = vector.shape_cast %26 : vector<16x1x32xf32> to vector<16x32xf32>
    %28 = vector.shape_cast %25 : vector<16x32xf32> to vector<16x1x32xf32>
    tpu.vector_store %arg9[%c0_17, %c4, %c0_18], %28 {strides = array<i32>} : memref<16x8x32xf32, #tpu.memory_space<vmem>>, vector<16x1x32xf32>,
    %29 = vector.extract_strided_slice %8 {offsets = [0, 160], sizes = [16, 32], strides = [1, 1]} : vector<16x256xf32> to vector<16x32xf32>
    %c0_19 = arith.constant 0 : index
    %c5 = arith.constant 5 : index
    %c0_20 = arith.constant 0 : index
    %30 = vector.load %arg9[%c0_19, %c5, %c0_20] : memref<16x8x32xf32, #tpu.memory_space<vmem>>, vector<16x1x32xf32>
    %31 = vector.shape_cast %30 : vector<16x1x32xf32> to vector<16x32xf32>
    %32 = vector.shape_cast %29 : vector<16x32xf32> to vector<16x1x32xf32>
    tpu.vector_store %arg9[%c0_19, %c5, %c0_20], %32 {strides = array<i32>} : memref<16x8x32xf32, #tpu.memory_space<vmem>>, vector<16x1x32xf32>,
    %33 = vector.extract_strided_slice %8 {offsets = [0, 192], sizes = [16, 32], strides = [1, 1]} : vector<16x256xf32> to vector<16x32xf32>
    %c0_21 = arith.constant 0 : index
    %c6 = arith.constant 6 : index
    %c0_22 = arith.constant 0 : index
    %34 = vector.load %arg9[%c0_21, %c6, %c0_22] : memref<16x8x32xf32, #tpu.memory_space<vmem>>, vector<16x1x32xf32>
    %35 = vector.shape_cast %34 : vector<16x1x32xf32> to vector<16x32xf32>
    %36 = vector.shape_cast %33 : vector<16x32xf32> to vector<16x1x32xf32>
    tpu.vector_store %arg9[%c0_21, %c6, %c0_22], %36 {strides = array<i32>} : memref<16x8x32xf32, #tpu.memory_space<vmem>>, vector<16x1x32xf32>,
    %37 = vector.extract_strided_slice %8 {offsets = [0, 224], sizes = [16, 32], strides = [1, 1]} : vector<16x256xf32> to vector<16x32xf32>
    %c0_23 = arith.constant 0 : index
    %c7 = arith.constant 7 : index
    %c0_24 = arith.constant 0 : index
    %38 = vector.load %arg9[%c0_23, %c7, %c0_24] : memref<16x8x32xf32, #tpu.memory_space<vmem>>, vector<16x1x32xf32>
    %39 = vector.shape_cast %38 : vector<16x1x32xf32> to vector<16x32xf32>
    %40 = vector.shape_cast %37 : vector<16x32xf32> to vector<16x1x32xf32>
    tpu.vector_store %arg9[%c0_23, %c7, %c0_24], %40 {strides = array<i32>} : memref<16x8x32xf32, #tpu.memory_space<vmem>>, vector<16x1x32xf32>,
    %c0_25 = arith.constant 0 : index
    %c0_26 = arith.constant 0 : index
    %c0_27 = arith.constant 0 : index
    %41 = vector.load %arg9[%c0_25, %c0_26, %c0_27] : memref<16x8x32xf32, #tpu.memory_space<vmem>>, vector<16x8x32xf32>
    "tpu.trace_start"() <{level = 10 : i32, message = "bhe,bte->bht"}> : () -> ()
    %cst_28 = arith.constant dense<0.000000e+00> : vector<16x8x16xf32>
    %42 = tpu.matmul %41, %0, %cst_28 {dimension_numbers = #tpu.dot_dimension_numbers<[2], [2], [1], [1], [0, 0, 0, 1, 1, 1], [0], [0]>} : vector<16x8x32xf32>, vector<16x16x32xf32>, vector<16x8x16xf32> -> vector<16x8x16xf32>
    "tpu.trace_stop"() : () -> ()
    %cst_29 = arith.constant dense<0xFF800000> : vector<16x8xf32>
    %43 = vector.multi_reduction <maximumf>, %42, %cst_29 [2] : vector<16x8x16xf32> to vector<16x8xf32>
    %44 = vector.shape_cast %43 : vector<16x8xf32> to vector<16x8x1xf32>
    %45 = vector.broadcast %44 : vector<16x8x1xf32> to vector<16x8x16xf32>
    %46 = arith.subf %42, %45 : vector<16x8x16xf32>
    %47 = math.exp %46 : vector<16x8x16xf32>
    %cst_30 = arith.constant dense<0.000000e+00> : vector<16x8xf32>
    %48 = vector.multi_reduction <add>, %47, %cst_30 [2] : vector<16x8x16xf32> to vector<16x8xf32>
    %49 = vector.shape_cast %48 : vector<16x8xf32> to vector<16x8x1xf32>
    %50 = vector.broadcast %49 : vector<16x8x1xf32> to vector<16x8x16xf32>
    %51 = arith.divf %47, %50 : vector<16x8x16xf32>
    %cst_31 = arith.constant dense<0.000000e+00> : vector<16x16xf32>
    %52 = vector.multi_reduction <add>, %51, %cst_31 [1] : vector<16x8x16xf32> to vector<16x16xf32>
    %cst_32 = arith.constant 8.000000e+00 : f32
    %53 = vector.broadcast %cst_32 : f32 to vector<16x16xf32>
    %54 = arith.divf %52, %53 : vector<16x16xf32>
    "tpu.trace_start"() <{level = 10 : i32, message = "bht,bte->bhe"}> : () -> ()
    %cst_33 = arith.constant dense<0.000000e+00> : vector<16x8x32xf32>
    %55 = tpu.matmul %51, %0, %cst_33 {dimension_numbers = #tpu.dot_dimension_numbers<[2], [1], [1], [2], [0, 0, 0, 1, 1, 2], [0], [0]>} : vector<16x8x16xf32>, vector<16x16x32xf32>, vector<16x8x32xf32> -> vector<16x8x32xf32>
    "tpu.trace_stop"() : () -> ()
    %c0_34 = arith.constant 0 : index
    %c0_35 = arith.constant 0 : index
    %c0_36 = arith.constant 0 : index
    %56 = vector.load %arg9[%c0_34, %c0_35, %c0_36] : memref<16x8x32xf32, #tpu.memory_space<vmem>>, vector<16x8x32xf32>
    tpu.vector_store %arg9[%c0_34, %c0_35, %c0_36], %55 {strides = array<i32>} : memref<16x8x32xf32, #tpu.memory_space<vmem>>, vector<16x8x32xf32>,
    %c0_37 = arith.constant 0 : index
    %c0_38 = arith.constant 0 : index
    %c0_39 = arith.constant 0 : index
    %57 = vector.load %arg9[%c0_37, %c0_38, %c0_39] : memref<16x8x32xf32, #tpu.memory_space<vmem>>, vector<16x1x32xf32>
    %58 = vector.shape_cast %57 : vector<16x1x32xf32> to vector<16x32xf32>
    %c0_40 = arith.constant 0 : index
    %c0_41 = arith.constant 0 : index
    %59 = vector.load %arg10[%c0_40, %c0_41] : memref<16x256xf32, #tpu.memory_space<vmem>>, vector<16x32xf32>
    tpu.vector_store %arg10[%c0_40, %c0_41], %58 {strides = array<i32>} : memref<16x256xf32, #tpu.memory_space<vmem>>, vector<16x32xf32>,
    %c0_42 = arith.constant 0 : index
    %c1_43 = arith.constant 1 : index
    %c0_44 = arith.constant 0 : index
    %60 = vector.load %arg9[%c0_42, %c1_43, %c0_44] : memref<16x8x32xf32, #tpu.memory_space<vmem>>, vector<16x1x32xf32>
    %61 = vector.shape_cast %60 : vector<16x1x32xf32> to vector<16x32xf32>
    %c0_45 = arith.constant 0 : index
    %c32 = arith.constant 32 : index
    %62 = vector.load %arg10[%c0_45, %c32] : memref<16x256xf32, #tpu.memory_space<vmem>>, vector<16x32xf32>
    tpu.vector_store %arg10[%c0_45, %c32], %61 {strides = array<i32>} : memref<16x256xf32, #tpu.memory_space<vmem>>, vector<16x32xf32>,
    %c0_46 = arith.constant 0 : index
    %c2_47 = arith.constant 2 : index
    %c0_48 = arith.constant 0 : index
    %63 = vector.load %arg9[%c0_46, %c2_47, %c0_48] : memref<16x8x32xf32, #tpu.memory_space<vmem>>, vector<16x1x32xf32>
    %64 = vector.shape_cast %63 : vector<16x1x32xf32> to vector<16x32xf32>
    %c0_49 = arith.constant 0 : index
    %c64 = arith.constant 64 : index
    %65 = vector.load %arg10[%c0_49, %c64] : memref<16x256xf32, #tpu.memory_space<vmem>>, vector<16x32xf32>
    tpu.vector_store %arg10[%c0_49, %c64], %64 {strides = array<i32>} : memref<16x256xf32, #tpu.memory_space<vmem>>, vector<16x32xf32>,
    %c0_50 = arith.constant 0 : index
    %c3_51 = arith.constant 3 : index
    %c0_52 = arith.constant 0 : index
    %66 = vector.load %arg9[%c0_50, %c3_51, %c0_52] : memref<16x8x32xf32, #tpu.memory_space<vmem>>, vector<16x1x32xf32>
    %67 = vector.shape_cast %66 : vector<16x1x32xf32> to vector<16x32xf32>
    %c0_53 = arith.constant 0 : index
    %c96 = arith.constant 96 : index
    %68 = vector.load %arg10[%c0_53, %c96] : memref<16x256xf32, #tpu.memory_space<vmem>>, vector<16x32xf32>
    tpu.vector_store %arg10[%c0_53, %c96], %67 {strides = array<i32>} : memref<16x256xf32, #tpu.memory_space<vmem>>, vector<16x32xf32>,
    %c0_54 = arith.constant 0 : index
    %c4_55 = arith.constant 4 : index
    %c0_56 = arith.constant 0 : index
    %69 = vector.load %arg9[%c0_54, %c4_55, %c0_56] : memref<16x8x32xf32, #tpu.memory_space<vmem>>, vector<16x1x32xf32>
    %70 = vector.shape_cast %69 : vector<16x1x32xf32> to vector<16x32xf32>
    %c0_57 = arith.constant 0 : index
    %c128 = arith.constant 128 : index
    %71 = vector.load %arg10[%c0_57, %c128] : memref<16x256xf32, #tpu.memory_space<vmem>>, vector<16x32xf32>
    tpu.vector_store %arg10[%c0_57, %c128], %70 {strides = array<i32>} : memref<16x256xf32, #tpu.memory_space<vmem>>, vector<16x32xf32>,
    %c0_58 = arith.constant 0 : index
    %c5_59 = arith.constant 5 : index
    %c0_60 = arith.constant 0 : index
    %72 = vector.load %arg9[%c0_58, %c5_59, %c0_60] : memref<16x8x32xf32, #tpu.memory_space<vmem>>, vector<16x1x32xf32>
    %73 = vector.shape_cast %72 : vector<16x1x32xf32> to vector<16x32xf32>
    %c0_61 = arith.constant 0 : index
    %c160 = arith.constant 160 : index
    %74 = vector.load %arg10[%c0_61, %c160] : memref<16x256xf32, #tpu.memory_space<vmem>>, vector<16x32xf32>
    tpu.vector_store %arg10[%c0_61, %c160], %73 {strides = array<i32>} : memref<16x256xf32, #tpu.memory_space<vmem>>, vector<16x32xf32>,
    %c0_62 = arith.constant 0 : index
    %c6_63 = arith.constant 6 : index
    %c0_64 = arith.constant 0 : index
    %75 = vector.load %arg9[%c0_62, %c6_63, %c0_64] : memref<16x8x32xf32, #tpu.memory_space<vmem>>, vector<16x1x32xf32>
    %76 = vector.shape_cast %75 : vector<16x1x32xf32> to vector<16x32xf32>
    %c0_65 = arith.constant 0 : index
    %c192 = arith.constant 192 : index
    %77 = vector.load %arg10[%c0_65, %c192] : memref<16x256xf32, #tpu.memory_space<vmem>>, vector<16x32xf32>
    tpu.vector_store %arg10[%c0_65, %c192], %76 {strides = array<i32>} : memref<16x256xf32, #tpu.memory_space<vmem>>, vector<16x32xf32>,
    %c0_66 = arith.constant 0 : index
    %c7_67 = arith.constant 7 : index
    %c0_68 = arith.constant 0 : index
    %78 = vector.load %arg9[%c0_66, %c7_67, %c0_68] : memref<16x8x32xf32, #tpu.memory_space<vmem>>, vector<16x1x32xf32>
    %79 = vector.shape_cast %78 : vector<16x1x32xf32> to vector<16x32xf32>
    %c0_69 = arith.constant 0 : index
    %c224 = arith.constant 224 : index
    %80 = vector.load %arg10[%c0_69, %c224] : memref<16x256xf32, #tpu.memory_space<vmem>>, vector<16x32xf32>
    tpu.vector_store %arg10[%c0_69, %c224], %79 {strides = array<i32>} : memref<16x256xf32, #tpu.memory_space<vmem>>, vector<16x32xf32>,
    %c0_70 = arith.constant 0 : index
    %c0_71 = arith.constant 0 : index
    %81 = vector.load %arg10[%c0_70, %c0_71] : memref<16x256xf32, #tpu.memory_space<vmem>>, vector<16x256xf32>
    %c0_72 = arith.constant 0 : index
    %c0_73 = arith.constant 0 : index
    %82 = vector.load %arg4[%c0_72, %c0_73] : memref<256x32xf32, #tpu.memory_space<vmem>>, vector<256x32xf32>
    %cst_74 = arith.constant dense<0.000000e+00> : vector<16x32xf32>
    %83 = tpu.matmul %81, %82, %cst_74 {dimension_numbers = #tpu.dot_dimension_numbers<[1], [0], [0], [1], [0, 0, 1, 1], [], []>} : vector<16x256xf32>, vector<256x32xf32>, vector<16x32xf32> -> vector<16x32xf32>
    %c0_75 = arith.constant 0 : index
    %c0_76 = arith.constant 0 : index
    %84 = vector.load %arg5[%c0_75, %c0_76] : memref<1x32xf32, #tpu.memory_space<vmem>>, vector<1x32xf32>
    %85 = vector.broadcast %84 : vector<1x32xf32> to vector<16x32xf32>
    %86 = arith.addf %83, %85 : vector<16x32xf32>
    %87 = arith.addf %86, %3 : vector<16x32xf32>
    %cst_77 = arith.constant dense<0.000000e+00> : vector<16xf32>
    %88 = vector.multi_reduction <add>, %87, %cst_77 [1] : vector<16x32xf32> to vector<16xf32>
    %89 = vector.shape_cast %88 : vector<16xf32> to vector<16x1xf32>
    %cst_78 = arith.constant 3.200000e+01 : f32
    %90 = vector.broadcast %cst_78 : f32 to vector<16x1xf32>
    %91 = arith.divf %89, %90 : vector<16x1xf32>
    %92 = vector.broadcast %91 : vector<16x1xf32> to vector<16x32xf32>
    %93 = arith.subf %87, %92 : vector<16x32xf32>
    %94 = arith.mulf %93, %93 : vector<16x32xf32>
    %cst_79 = arith.constant dense<0.000000e+00> : vector<16xf32>
    %95 = vector.multi_reduction <add>, %94, %cst_79 [1] : vector<16x32xf32> to vector<16xf32>
    %96 = vector.shape_cast %95 : vector<16xf32> to vector<16x1xf32>
    %cst_80 = arith.constant 3.200000e+01 : f32
    %97 = vector.broadcast %cst_80 : f32 to vector<16x1xf32>
    %98 = arith.divf %96, %97 : vector<16x1xf32>
    %99 = vector.broadcast %91 : vector<16x1xf32> to vector<16x32xf32>
    %100 = arith.subf %87, %99 : vector<16x32xf32>
    %cst_81 = arith.constant 9.99999974E-6 : f32
    %101 = vector.broadcast %cst_81 : f32 to vector<16x1xf32>
    %102 = arith.addf %98, %101 : vector<16x1xf32>
    %103 = math.rsqrt %102 : vector<16x1xf32>
    %104 = vector.broadcast %103 : vector<16x1xf32> to vector<16x32xf32>
    %105 = arith.mulf %100, %104 : vector<16x32xf32>
    %c0_82 = arith.constant 0 : index
    %c0_83 = arith.constant 0 : index
    %106 = vector.load %arg6[%c0_82, %c0_83] : memref<1x32xf32, #tpu.memory_space<vmem>>, vector<1x32xf32>
    %107 = vector.broadcast %106 : vector<1x32xf32> to vector<16x32xf32>
    %108 = arith.mulf %105, %107 : vector<16x32xf32>
    %c0_84 = arith.constant 0 : index
    %c0_85 = arith.constant 0 : index
    %109 = vector.load %arg7[%c0_84, %c0_85] : memref<1x32xf32, #tpu.memory_space<vmem>>, vector<1x32xf32>
    %110 = vector.broadcast %109 : vector<1x32xf32> to vector<16x32xf32>
    %111 = arith.addf %108, %110 : vector<16x32xf32>
    %c0_86 = arith.constant 0 : index
    %c0_87 = arith.constant 0 : index
    %112 = vector.load %arg8[%c0_86, %c0_87] : memref<16x128xf32, #tpu.memory_space<vmem>>, vector<16x32xf32>
    tpu.vector_store %arg8[%c0_86, %c0_87], %111 {strides = array<i32>} : memref<16x128xf32, #tpu.memory_space<vmem>>, vector<16x32xf32>,
    %c0_88 = arith.constant 0 : index
    %c32_89 = arith.constant 32 : index
    %113 = vector.load %arg8[%c0_88, %c32_89] : memref<16x128xf32, #tpu.memory_space<vmem>>, vector<16x16xf32>
    tpu.vector_store %arg8[%c0_88, %c32_89], %54 {strides = array<i32>} : memref<16x128xf32, #tpu.memory_space<vmem>>, vector<16x16xf32>,
    %cst_90 = arith.constant 0.000000e+00 : f32
    %114 = vector.broadcast %cst_90 : f32 to vector<16x80xf32>
    %c0_91 = arith.constant 0 : index
    %c48 = arith.constant 48 : index
    %115 = vector.load %arg8[%c0_91, %c48] : memref<16x128xf32, #tpu.memory_space<vmem>>, vector<16x80xf32>
    tpu.vector_store %arg8[%c0_91, %c48], %114 {strides = array<i32>} : memref<16x128xf32, #tpu.memory_space<vmem>>, vector<16x80xf32>,
    return
  }
  func.func @transform_0(%arg0: i32) -> (i32, i32, i32) {
    %c0_i32 = arith.constant 0 : i32
    %c0_i32_0 = arith.constant 0 : i32
    %c0_i32_1 = arith.constant 0 : i32
    return %arg0, %c0_i32, %c0_i32_0 : i32, i32, i32
  }
  func.func @transform_1(%arg0: i32) -> (i32, i32) {
    %c0_i32 = arith.constant 0 : i32
    %c0_i32_0 = arith.constant 0 : i32
    %c0_i32_1 = arith.constant 0 : i32
    return %c0_i32, %c0_i32_0 : i32, i32
  }
  func.func @transform_2(%arg0: i32) -> (i32, i32) {
    %c0_i32 = arith.constant 0 : i32
    %c0_i32_0 = arith.constant 0 : i32
    %c0_i32_1 = arith.constant 0 : i32
    return %c0_i32, %c0_i32_0 : i32, i32
  }
  func.func @transform_3(%arg0: i32) -> (i32, i32) {
    %c0_i32 = arith.constant 0 : i32
    %c0_i32_0 = arith.constant 0 : i32
    %c0_i32_1 = arith.constant 0 : i32
    return %c0_i32, %c0_i32_0 : i32, i32
  }
  func.func @transform_4(%arg0: i32) -> (i32, i32) {
    %c0_i32 = arith.constant 0 : i32
    %c0_i32_0 = arith.constant 0 : i32
    %c0_i32_1 = arith.constant 0 : i32
    return %c0_i32, %c0_i32_0 : i32, i32
  }
  func.func @transform_5(%arg0: i32) -> (i32, i32) {
    %c0_i32 = arith.constant 0 : i32
    %c0_i32_0 = arith.constant 0 : i32
    %c0_i32_1 = arith.constant 0 : i32
    return %c0_i32, %c0_i32_0 : i32, i32
  }
  func.func @transform_6(%arg0: i32) -> (i32, i32) {
    %c0_i32 = arith.constant 0 : i32
    %c0_i32_0 = arith.constant 0 : i32
    %c0_i32_1 = arith.constant 0 : i32
    return %c0_i32, %c0_i32_0 : i32, i32
  }
  func.func @transform_7(%arg0: i32) -> (i32, i32) {
    %c0_i32 = arith.constant 0 : i32
    %c0_i32_0 = arith.constant 0 : i32
    return %arg0, %c0_i32 : i32, i32
  }
}

</mosaic_0001>

<bundles_post_ra>
// kernel: mhap_forward.1
= control target key start
LH: loop header
LB: loop body
LE: loop exit
PB: predicated region body
PF: predicated region fallthrough
CT: control target
= control target key end

     0   :  { %s5716_s24 = smov 0   ;;  %s7157_s0 = inlined_call_operand.vmem [shape: f32[64,16,32], index: 0, kind: input, shape index: {}]   ;;  %s7158_s1 = inlined_call_operand.vmem [shape: f32[32,256], index: 1, kind: input, shape index: {}]   ;;  %s7159_s2 = inlined_call_operand.vmem [shape: f32[1,256], index: 2, kind: input, shape index: {}]   ;;  %s7160_s3 = inlined_call_operand.vmem [shape: f32[256,32], index: 3, kind: input, shape index: {}]   ;;  %s7161_s4 = inlined_call_operand.vmem [shape: f32[1,32], index: 4, kind: input, shape index: {}]   ;;  %s7162_s5 = inlined_call_operand.vmem [shape: f32[1,32], index: 5, kind: input, shape index: {}]   ;;  %s7163_s6 = inlined_call_operand.vmem [shape: f32[1,32], index: 6, kind: input, shape index: {}]   ;;  %s7164_s7 = inlined_call_operand.vmem [shape: f32[64,128], index: 7, kind: output, shape index: {}]  }
   0x1 LB: > { %s4970_s25 = sadd.s32 4294967295, %s5667_s24   ;;  %p4974_p0 = scmp.ge.s32.totalorder %s5667_s24, 1  ;;  %s5667_s24 = sphi %s5716_s24, %s17_s24  }
   0x2   : > { %p239_p1 = scmp.lt.s32.totalorder %s5667_s24, 5 }
   0x4   : > { %p240_p2 = pnand %p4974_p0, %p239_p1 }
   0x5   : > { %v480_v0 = vld [vmem:[%s7158_s1 + $0x8] sm:$0xff] (!%p240_p2)  ;;  %v482_v1 = vld [vmem:[%s7158_s1 + $0x18] sm:$0xff] (!%p240_p2)  ;;  %v479_v2 = vld [vmem:[%s7158_s1] sm:$0xff] (!%p240_p2)  ;;  %s4975_s9 = sshll.u32 (!%p240_p2), %s4970_s25, 4  ;;  %v5669_v7 = vmov (!%p240_p2), 0.0   ;;  %vm317_vm0 = vcmask (!%p240_p2), 261120  }
   0x6   : > { %243 = sbr.rel (%p240_p2) target bundleno = 1993 (0x7c9), region = 48  ;;  %v5410_v3 = vpack.c.bf16 (!%p240_p2), %v482_v1, %v480_v0  ;;  %v481_v4 = vld [vmem:[%s7158_s1 + $0x10] sm:$0xff] (!%p240_p2)  ;;  %v484_v5 = vld [vmem:[%s7158_s1 + $0x28] sm:$0xff] (!%p240_p2)  ;;  %v486_v6 = vld [vmem:[%s7158_s1 + $0x38] sm:$0xff] (!%p240_p2)  ;;  %604 = vmatprep.mubr.f32.mxu1 (!%p240_p2), %v5669_v7  ;;  %p273_p3 = scmp.lt.s32.totalorder (!%p240_p2), %s4975_s9, 63  ;;  %vm515_vm1 = vcmask (!%p240_p2), 1041409  }
   0x7   : > { %v5412_v8 = vpack.c.bf16 (!%p240_p2), %v481_v4, %v479_v2  ;;  %v5414_v9 = vpack.c.bf16 (!%p240_p2), %v486_v6, %v484_v5  ;;  %v483_v10 = vld [vmem:[%s7158_s1 + $0x20] sm:$0xff] (!%p240_p2)  ;;  %v485_v11 = vld [vmem:[%s7158_s1 + $0x30] sm:$0xff] (!%p240_p2)  ;;  %vm517_vm2 = vcmask (!%p240_p2), 1042434   ;;  %vm519_vm3 = vcmask (!%p240_p2), 1043459   ;;  %vm5913_vm9 = vmpackc.low (!%p240_p2), %vm317_vm0, %vm317_vm0  ;;  %s5672_s28 = smov (!%p240_p2), 32   ;;  %s5673_s29 = smov (!%p240_p2), 96  }
   0x8   : > { %5411 = vmatprep.subr.bf16.mxu1 (!%p240_p2), %v5410_v3  ;;  %v5416_v12 = vpack.c.bf16 (!%p240_p2), %v485_v11, %v483_v10  ;;  %vm521_vm4 = vcmask (!%p240_p2), 1044484   ;;  %vm523_vm5 = vcmask (!%p240_p2), 1045509   ;;  %vm525_vm6 = vcmask (!%p240_p2), 1046534   ;;  %s5675_s30 = smov (!%p240_p2), 64   ;;  %s4978_s18 = sshll.u32 (!%p240_p2), %s4970_s25, 1 }
   0x9   : > { %5413 = vmatpush1.bf16.msra.mxu1 (!%p240_p2), %v5412_v8  ;;  %vm527_vm7 = vcmask (!%p240_p2), 1047559   ;;  %vm733_vm8 = vcmask (!%p240_p2), 253952   ;;  %vm5674_vm10 = vmmov (!%p240_p2), 0   ;;  %vm2674_vm11 = vcmask (!%p240_p2), 130048   ;;  %p280_p4 = scmp.lt.s32.totalorder (!%p240_p2), %s4978_s18, 7 }
   0xa   : > { %5415 = vmatprep.subr.bf16.mxu1 (!%p240_p2), %v5414_v9  ;;  %5211 = vmatprep.mubr.msk.f32.mxu0 (!%p240_p2), %vm5674_vm10, %v5669_v7  ;;  %vm4294_vm12 = vcmask (!%p240_p2), 523520   ;;  %vm4363_vm13 = vcmask (!%p240_p2), 785920   ;;  %vm4432_vm14 = vcmask (!%p240_p2), 1048320   ;;  %vm4908_vm15 = vcmask (!%p240_p2), 392448  }
   0xd   : > { %s7168_s9 = smov (!%p273_p3, %s4975_s9), 63  ;;  %5417 = vmatpush1.bf16.msra.mxu1 %v5416_v12  ;;  %s7170_s18 = smov (!%p280_p4, %s4978_s18), 7 }
   0xe   : > { %s5051_s20 = sshll.u32 %s7168_s9, 4  ;;  %s4979_s21 = sshll.u32 %s7170_s18, 3 }
   0xf   : > { %s5754_s23 = scalar_lea.vmem %s7157_s0, %s5051_s20  ;;  %s283_s27 = scalar_lea.vmem %s7164_s7, %s4979_s21 }
  0x10   : > { %v5757_v13 = vld [vmem:[%s5754_s23] sm:$0xff]  ;;  %v5760_v14 = vld [vmem:[%s5754_s23 + $0x8] sm:$0xff]  ;;  %v5763_v15 = vld [vmem:[%s5754_s23 + $0x10] sm:$0xff] }
  0x11   : > { %v5766_v16 = vld [vmem:[%s5754_s23 + $0x18] sm:$0xff]  ;;  %v5769_v17 = vld [vmem:[%s5754_s23 + $0x20] sm:$0xff]  ;;  %v5772_v18 = vld [vmem:[%s5754_s23 + $0x28] sm:$0xff]  ;;  %v318_v19 = vsel %vm317_vm0, %v5757_v13, 0.0  ;;  %v319_v20 = vsel %vm317_vm0, %v5760_v14, 0.0  ;;  %v327_v21 = vsel %vm317_vm0, %v5763_v15, 0.0 }
  0x12   : > { %v5781_v22 = vld [vmem:[%s5754_s23 + $0x30] sm:$0xff]  ;;  %v5784_v23 = vld [vmem:[%s5754_s23 + $0x38] sm:$0xff]  ;;  %v5787_v24 = vld [vmem:[%s5754_s23 + $0x40] sm:$0xff]  ;;  %v320_v25 = vadd.f32 %v319_v20, %v318_v19  ;;  %v328_v26 = vsel %vm317_vm0, %v5766_v16, 0.0  ;;  %v336_v27 = vsel %vm317_vm0, %v5769_v17, 0.0  ;;  %v337_v28 = vsel %vm317_vm0, %v5772_v18, 0.0 }
  0x13   : > { %v5796_v29 = vld [vmem:[%s5754_s23 + $0x48] sm:$0xff]  ;;  %v295_v30 = vld [vmem:[%s5754_s23 + $0x50] sm:$0xff]  ;;  %v296_v31 = vld [vmem:[%s5754_s23 + $0x58] sm:$0xff]  ;;  %v329_v32 = vadd.f32 %v328_v26, %v327_v21  ;;  %v338_v33 = vadd.f32 %v337_v28, %v336_v27  ;;  %v345_v34 = vsel %vm317_vm0, %v5781_v22, 0.0  ;;  %v346_v35 = vsel %vm317_vm0, %v5784_v23, 0.0 }
  0x14   : > { %v5805_v36 = vld [vmem:[%s5754_s23 + $0x60] sm:$0xff]  ;;  %v321_v37 = vrot.slane %v320_v25, 4  ;;  %v347_v38 = vadd.f32 %v346_v35, %v345_v34  ;;  %v354_v39 = vsel %vm317_vm0, %v5787_v24, 0.0  ;;  %v355_v40 = vsel %vm317_vm0, %v5796_v29, 0.0  ;;  %v5812_v41 = vld [vmem:[%s5754_s23 + $0x68] sm:$0xff]  ;;  %v299_v42 = vld [vmem:[%s5754_s23 + $0x70] sm:$0xff] }
  0x15   : > { %v330_v43 = vrot.slane %v329_v32, 4  ;;  %v339_v44 = vrot.slane %v338_v33, 4  ;;  %v356_v45 = vadd.f32 %v355_v40, %v354_v39  ;;  %v363_v46 = vsel %vm317_vm0, %v295_v30, 0.0  ;;  %v300_v51 = vld [vmem:[%s5754_s23 + $0x78] sm:$0xff]  ;;  %v5825_v35 = vld [vmem:[%s5754_s23 + $0x80] sm:$0xff] }
  0x16   : > { %v322_v47 = vadd.f32 %v321_v37, %v320_v25  ;;  %v348_v48 = vrot.slane %v347_v38, 4  ;;  %v364_v49 = vsel %vm317_vm0, %v296_v31, 0.0  ;;  %v372_v50 = vsel %vm317_vm0, %v5805_v36, 0.0 }
  0x17   : > { %v331_v52 = vadd.f32 %v330_v43, %v329_v32  ;;  %v340_v53 = vadd.f32 %v339_v44, %v338_v33  ;;  %v357_v54 = vrot.slane %v356_v45, 4  ;;  %v365_v55 = vadd.f32 %v364_v49, %v363_v46 }
  0x18   : > { %v323_v56 = vrot.slane %v322_v47, 2  ;;  %v349_v57 = vadd.f32 %v348_v48, %v347_v38  ;;  %v373_v58 = vsel %vm317_vm0, %v5812_v41, 0.0  ;;  %v381_v59 = vsel %vm317_vm0, %v299_v42, 0.0  ;;  %v5828_v42 = vld [vmem:[%s5754_s23 + $0x88] sm:$0xff] }
  0x19   : > { %v332_v60 = vrot.slane %v331_v52, 2  ;;  %v341_v61 = vrot.slane %v340_v53, 2  ;;  %v358_v62 = vadd.f32 %v357_v54, %v356_v45  ;;  %v366_v63 = vrot.slane %v365_v55, 4 }
  0x1a   : > { %v324_v0 = vadd.f32 %v323_v56, %v322_v47  ;;  %v350_v1 = vrot.slane %v349_v57, 2  ;;  %v374_v2 = vadd.f32 %v373_v58, %v372_v50  ;;  %v382_v3 = vsel %vm317_vm0, %v300_v51, 0.0  ;;  %v303_v50 = vld [vmem:[%s5754_s23 + $0x90] sm:$0xff]  ;;  %v304_v51 = vld [vmem:[%s5754_s23 + $0x98] sm:$0xff] }
  0x1b   : > { %v333_v4 = vadd.f32 %v332_v60, %v331_v52  ;;  %v342_v5 = vadd.f32 %v341_v61, %v340_v53  ;;  %v359_v6 = vrot.slane %v358_v62, 2  ;;  %v367_v8 = vadd.f32 %v366_v63, %v365_v55  ;;  %v5839_v60 = vld [vmem:[%s5754_s23 + $0xa0] sm:$0xff]  ;;  %v5842_v61 = vld [vmem:[%s5754_s23 + $0xa8] sm:$0xff] }
  0x1c   : > { %v325_v9 = vrot.slane %v324_v0, 1  ;;  %v351_v10 = vadd.f32 %v350_v1, %v349_v57  ;;  %v375_v11 = vrot.slane %v374_v2, 4  ;;  %v383_v12 = vadd.f32 %v382_v3, %v381_v59 }
  0x1d   : > { %v334_v19 = vrot.slane %v333_v4, 1  ;;  %v343_v20 = vrot.slane %v342_v5, 1  ;;  %v360_v21 = vadd.f32 %v359_v6, %v358_v62  ;;  %v368_v25 = vrot.slane %v367_v8, 2  ;;  %v307_v6 = vld [vmem:[%s5754_s23 + $0xb0] sm:$0xff] }
  0x1e   : > { %v326_v26 = vadd.f32 %v325_v9, %v324_v0  ;;  %v352_v27 = vrot.slane %v351_v10, 1  ;;  %v376_v28 = vadd.f32 %v375_v11, %v374_v2  ;;  %v384_v30 = vrot.slane %v383_v12, 4  ;;  %v309_v9 = vld [vmem:[%s5754_s23 + $0xc0] sm:$0xff] }
  0x1f   : > { %v335_v31 = vadd.f32 %v334_v19, %v333_v4  ;;  %v344_v32 = vadd.f32 %v343_v20, %v342_v5  ;;  %v361_v33 = vrot.slane %v360_v21, 1  ;;  %v369_v34 = vadd.f32 %v368_v25, %v367_v8  ;;  %v308_v8 = vld [vmem:[%s5754_s23 + $0xb8] sm:$0xff] }
  0x20   : > { %v353_v37 = vadd.f32 %v352_v27, %v351_v10  ;;  %v377_v38 = vrot.slane %v376_v28, 2  ;;  %v385_v39 = vadd.f32 %v384_v30, %v383_v12  ;;  %v463_v40 = vmul.f32 0.0625, %v326_v26  ;;  %v310_v26 = vld [vmem:[%s5754_s23 + $0xc8] sm:$0xff]  ;;  %v311_v27 = vld [vmem:[%s5754_s23 + $0xd0] sm:$0xff] }
  0x21   : > { %v362_v43 = vadd.f32 %v361_v33, %v360_v21  ;;  %v370_v44 = vrot.slane %v369_v34, 1  ;;  %v464_v45 = vmul.f32 0.0625, %v335_v31  ;;  %v465_v46 = vmul.f32 0.0625, %v344_v32 }
  0x22   : > { %v378_v47 = vadd.f32 %v377_v38, %v376_v28  ;;  %v386_v48 = vrot.slane %v385_v39, 2  ;;  %v466_v49 = vmul.f32 0.0625, %v353_v37  ;;  %v390_v52 = vsel %vm317_vm0, %v5825_v35, 0.0 }
  0x23   : > { %v371_v53 = vadd.f32 %v370_v44, %v369_v34  ;;  %v467_v54 = vmul.f32 0.0625, %v362_v43  ;;  %v516_v55 = vsel %vm515_vm1, %v464_v45, %v463_v40  ;;  %v391_v56 = vsel %vm317_vm0, %v5828_v42, 0.0  ;;  %v313_v40 = vld [vmem:[%s5754_s23 + $0xe0] sm:$0xff] }
  0x24   : > { %v379_v57 = vrot.slane %v378_v47, 1  ;;  %v387_v58 = vadd.f32 %v386_v48, %v385_v39  ;;  %v518_v59 = vsel %vm517_vm2, %v465_v46, %v516_v55  ;;  %v392_v62 = vadd.f32 %v391_v56, %v390_v52  ;;  %v312_v39 = vld [vmem:[%s5754_s23 + $0xd8] sm:$0xff] }
  0x25   : > { %v468_v63 = vmul.f32 0.0625, %v371_v53  ;;  %v520_v0 = vsel %vm519_vm3, %v466_v49, %v518_v59  ;;  %v399_v1 = vsel %vm317_vm0, %v303_v50, 0.0  ;;  %v400_v2 = vsel %vm317_vm0, %v304_v51, 0.0  ;;  %v314_v50 = vld [vmem:[%s5754_s23 + $0xe8] sm:$0xff]  ;;  %v315_v51 = vld [vmem:[%s5754_s23 + $0xf0] sm:$0xff]  ;;  %v316_v59 = vld [vmem:[%s5754_s23 + $0xf8] sm:$0xff] }
  0x26   : > { %v380_v3 = vadd.f32 %v379_v57, %v378_v47  ;;  %v388_v4 = vrot.slane %v387_v58, 1  ;;  %v522_v5 = vsel %vm521_vm4, %v467_v54, %v520_v0  ;;  %v393_v10 = vrot.slane %v392_v62, 4 }
  0x27   : > { %v524_v11 = vsel %vm523_vm5, %v468_v63, %v522_v5  ;;  %v401_v12 = vadd.f32 %v400_v2, %v399_v1  ;;  %v408_v19 = vsel %vm317_vm0, %v5839_v60, 0.0  ;;  %v409_v20 = vsel %vm317_vm0, %v5842_v61, 0.0 }
  0x28   : > { %v389_v21 = vadd.f32 %v388_v4, %v387_v58  ;;  %v469_v25 = vmul.f32 0.0625, %v380_v3  ;;  %v394_v28 = vadd.f32 %v393_v10, %v392_v62  ;;  %v410_v30 = vadd.f32 %v409_v20, %v408_v19 }
  0x29   : > { %v402_v31 = vrot.slane %v401_v12, 4  ;;  %v417_v32 = vsel %vm317_vm0, %v307_v6, 0.0  ;;  %v418_v33 = vsel %vm317_vm0, %v308_v8, 0.0  ;;  %v426_v34 = vsel %vm317_vm0, %v309_v9, 0.0 }
  0x2a   : > { %v470_v37 = vmul.f32 0.0625, %v389_v21  ;;  %v526_v38 = vsel %vm525_vm6, %v469_v25, %v524_v11  ;;  %v395_v43 = vrot.slane %v394_v28, 2  ;;  %v411_v44 = vrot.slane %v410_v30, 4 }
  0x2b   : > { %v403_v45 = vadd.f32 %v402_v31, %v401_v12  ;;  %v419_v46 = vadd.f32 %v418_v33, %v417_v32  ;;  %v427_v47 = vsel %vm317_vm0, %v310_v26, 0.0  ;;  %v435_v48 = vsel %vm317_vm0, %v311_v27, 0.0 }
  0x2c   : > { %v5867_v49 = vsel %vm527_vm7, %v470_v37, %v526_v38  ;;  %v396_v52 = vadd.f32 %v395_v43, %v394_v28  ;;  %v412_v53 = vadd.f32 %v411_v44, %v410_v30  ;;  %v428_v54 = vadd.f32 %v427_v47, %v426_v34 }
  0x2d   : > { %4980 = vmatmul.mubr.msk.f32.vlgmr.msra.gmra.mrb[0].mxu1 %vm317_vm0, %v5867_v49  ;;  %v404_v55 = vrot.slane %v403_v45, 2  ;;  %v420_v56 = vrot.slane %v419_v46, 4  ;;  %v436_v57 = vsel %vm317_vm0, %v312_v39, 0.0  ;;  %v444_v58 = vsel %vm317_vm0, %v313_v40, 0.0 }
  0x2e   : > { %610 = vmatprep.mubr.f32.mxu1 %v5669_v7  ;;  %v397_v62 = vrot.slane %v396_v52, 1  ;;  %v413_v63 = vrot.slane %v412_v53, 2  ;;  %v429_v0 = vrot.slane %v428_v54, 4  ;;  %v437_v1 = vadd.f32 %v436_v57, %v435_v48 }
  0x2f   : > { %v405_v2 = vadd.f32 %v404_v55, %v403_v45  ;;  %v421_v3 = vadd.f32 %v420_v56, %v419_v46  ;;  %v445_v4 = vsel %vm317_vm0, %v314_v50, 0.0  ;;  %v453_v5 = vsel %vm317_vm0, %v315_v51, 0.0 }
  0x30   : > { %v398_v6 = vadd.f32 %v397_v62, %v396_v52  ;;  %v414_v8 = vadd.f32 %v413_v63, %v412_v53  ;;  %v430_v9 = vadd.f32 %v429_v0, %v428_v54  ;;  %v438_v10 = vrot.slane %v437_v1, 4 }
  0x31   : > { %v406_v11 = vrot.slane %v405_v2, 1  ;;  %v422_v12 = vrot.slane %v421_v3, 2  ;;  %v446_v19 = vadd.f32 %v445_v4, %v444_v58  ;;  %v454_v20 = vsel %vm317_vm0, %v316_v59, 0.0 }
  0x32   : > { %v415_v21 = vrot.slane %v414_v8, 1  ;;  %v431_v25 = vrot.slane %v430_v9, 2  ;;  %v439_v26 = vadd.f32 %v438_v10, %v437_v1  ;;  %v455_v27 = vadd.f32 %v454_v20, %v453_v5 }
  0x33   : > { %v407_v28 = vadd.f32 %v406_v11, %v405_v2  ;;  %v423_v30 = vadd.f32 %v422_v12, %v421_v3  ;;  %v447_v31 = vrot.slane %v446_v19, 4  ;;  %v471_v32 = vmul.f32 0.0625, %v398_v6 }
  0x34   : > { %v416_v33 = vadd.f32 %v415_v21, %v414_v8  ;;  %v432_v34 = vadd.f32 %v431_v25, %v430_v9  ;;  %v440_v37 = vrot.slane %v439_v26, 2  ;;  %v456_v38 = vrot.slane %v455_v27, 4 }
  0x35   : > { %v424_v39 = vrot.slane %v423_v30, 1  ;;  %v448_v40 = vadd.f32 %v447_v31, %v446_v19  ;;  %v472_v43 = vmul.f32 0.0625, %v407_v28  ;;  %v489_v12 = vlaneseq }
  0x36   : > { %v433_v44 = vrot.slane %v432_v34, 1  ;;  %v441_v45 = vadd.f32 %v440_v37, %v439_v26  ;;  %v457_v46 = vadd.f32 %v456_v38, %v455_v27  ;;  %v473_v47 = vmul.f32 0.0625, %v416_v33  ;;  %v487_v26 = vld [vmem:[%s7159_s2] sm:$0x3] }
  0x37   : > { %v425_v48 = vadd.f32 %v424_v39, %v423_v30  ;;  %v449_v50 = vrot.slane %v448_v40, 2  ;;  %v529_v51 = vsel %vm515_vm1, %v472_v43, %v471_v32  ;;  %v490_v19 = vshrl.u32 %v489_v12, 7 }
  0x38   : > { %v434_v52 = vadd.f32 %v433_v44, %v432_v34  ;;  %v442_v53 = vrot.slane %v441_v45, 1  ;;  %v458_v54 = vrot.slane %v457_v46, 2  ;;  %v530_v55 = vsel %vm517_vm2, %v473_v47, %v529_v51 }
  0x39   : > { %v450_v56 = vadd.f32 %v449_v50, %v448_v40  ;;  %v474_v57 = vmul.f32 0.0625, %v425_v48  ;;  %v5670_v20 = vmov 1966171168   ;;  %v5891_v25 = vsub.s32 0, %v490_v19 }
  0x3a   : > { %v443_v58 = vadd.f32 %v442_v53, %v441_v45  ;;  %v459_v59 = vadd.f32 %v458_v54, %v457_v46  ;;  %v475_v62 = vmul.f32 0.0625, %v434_v52  ;;  %v621_v21 = vunpack.c.l.s4 %v5670_v20 }
  0x3b   : > { %v451_v63 = vrot.slane %v450_v56, 1  ;;  %v531_v0 = vsel %vm519_vm3, %v474_v57, %v530_v55  ;;  %v495_v27 = vsub.s32 1, %v490_v19  ;;  %v5897_v30 = vrot.slane %v487_v26, %v5891_v25 }
  0x3c   : > { %v460_v1 = vrot.slane %v459_v59, 1  ;;  %v476_v2 = vmul.f32 0.0625, %v443_v58  ;;  %v532_v3 = vsel %vm521_vm4, %v475_v62, %v531_v0  ;;  %v622_v28 = vunpack.c.0.s8 %v621_v21 }
  0x3d   : > { %v452_v4 = vadd.f32 %v451_v63, %v450_v56  ;;  %v5899_v31 = vrot.slane %v487_v26, %v495_v27  ;;  %v5909_v45 = vpack.c.bf16 %v5760_v14, %v5757_v13  ;;  %v5671_v51 = vmov 0.0|0.0  }
  0x3e   : > { %v461_v5 = vadd.f32 %v460_v1, %v459_v59  ;;  %v533_v6 = vsel %vm523_vm5, %v476_v2, %v532_v3  ;;  %v5901_v32 = vsub.s32 %v622_v28, %v490_v19  ;;  %5418 = vmatprep.subr.bf16.mxu1 %v5671_v51  ;;  %5430 = vmatprep.subr.bf16.mxu0 %v5671_v51 }
  0x3f   : > { %v477_v8 = vmul.f32 0.0625, %v452_v4  ;;  %5421 = vmatpush3.bf16.xpose.msk.msra.mxu1 %vm5913_vm9, %v5909_v45 }
  0x40   : > { %v478_v9 = vmul.f32 0.0625, %v461_v5  ;;  %5422 = vmatprep.subr.bf16.mxu1 %v5671_v51 }
  0x41   : > { %v534_v10 = vsel %vm525_vm6, %v477_v8, %v533_v6 }
  0x42   : > { %v5887_v11 = vsel %vm527_vm7, %v478_v9, %v534_v10 }
  0x43   : > { %4981 = vmatmul.mubr.msk.f32.gmra.mrb[2].mxu1 %vm317_vm0, %v5887_v11 }
  0x44   : > { %5190 = vmatprep.mubr.msk.f32.mxu1 %vm5674_vm10, %v5669_v7 }
 0x100   : > { %v606_v33 = vpop.f32.mrb[0].mxu1 }
 0x101   : > { %v607_v34 = vadd.f32 %v606_v33, %v5897_v30  ;;  %v608_v37 = vpop.f32.mrb[1].mxu1 }
 0x102   : > { %v609_v38 = vadd.f32 %v608_v37, %v5899_v31 }
 0x103   : > { %v619_v39 = vcombine.high %v607_v34, %v607_v34  ;;  %v626_v40 = vrot.slane %v607_v34, %v5901_v32 }
 0x104   : > { %v1008_v43 = vcombine.high %v609_v38, %v609_v38  ;;  %v1015_v44 = vrot.slane %v609_v38, %v5901_v32 }
 0x105   : > { %v633_v47 = vrot.slane %v619_v39, %v5901_v32  ;;  %v634_v48 = vcombine.high %v626_v40, %v626_v40  ;;  %v642_v50 = vrot.slane %v626_v40, %v5901_v32 }
 0x106   : > { %v1022_v52 = vrot.slane %v1008_v43, %v5901_v32  ;;  %v1023_v13 = vcombine.high %v1015_v44, %v1015_v44  ;;  %v1031_v14 = vrot.slane %v1015_v44, %v5901_v32 }
 0x107   : > { %v635_v53 = vcombine.high %v633_v47, %v633_v47  ;;  %v649_v54 = vrot.slane %v633_v47, %v5901_v32  ;;  %v656_v55 = vrot.slane %v634_v48, %v5901_v32  ;;  %734 = vst.msk [vmem:[#allocation2] sm:$0x1] %vm733_vm8, %v642_v50  ;;  %v753_v56 = vrot.slane %v642_v50, %v5891_v25 }
 0x108   : > { %v1024_v57 = vcombine.high %v1022_v52, %v1022_v52  ;;  %v5932_v58 = vrot.slane %v1022_v52, %v5901_v32  ;;  %v5935_v59 = vrot.slane %v1023_v13, %v5901_v32  ;;  %1122 = vst.msk [vmem:[#allocation2 + $0x4] sm:$0x1] %vm733_vm8, %v1031_v14  ;;  %v664_v62 = vcombine.high %v642_v50, %v642_v50 }
 0x109   : > { %735 = vst.msk [vmem:[#allocation2 + $0x8] sm:$0x1] %vm733_vm8, %v656_v55  ;;  %738 = vst.msk [vmem:[#allocation2 + $0x20] sm:$0x1] %vm733_vm8, %v649_v54  ;;  %942 = vrot.lane.b32.xlu1 %v753_v56, %s5672_s28  ;;  %814 = vrot.lane.b32.xlu0 %v753_v56, %s5673_s29  ;;  %v5946_v63 = vcombine.high %v1031_v14, %v1031_v14  ;;  %v5948_v0 = vcombine.high %v656_v55, %v656_v55 }
 0x10a   : > { %1123 = vst.msk [vmem:[#allocation2 + $0xc] sm:$0x1] %vm733_vm8, %v5935_v59  ;;  %1126 = vst.msk [vmem:[#allocation2 + $0x24] sm:$0x1] %vm733_vm8, %v5932_v58  ;;  %v1141_v1 = vrot.slane %v1031_v14, %v5891_v25  ;;  %v5955_v2 = vrot.slane %v635_v53, %v5901_v32  ;;  %v5957_v3 = vcombine.high %v649_v54, %v649_v54 }
 0x10b   : > { %736 = vst.msk [vmem:[#allocation2 + $0x10] sm:$0x1] %vm733_vm8, %v664_v62  ;;  %v5961_v4 = vcombine.high %v5935_v59, %v5935_v59  ;;  %1124 = vst.msk [vmem:[#allocation2 + $0x14] sm:$0x1] %vm733_vm8, %v5946_v63  ;;  %v5970_v5 = vrot.slane %v1024_v57, %v5901_v32  ;;  %v5974_v6 = vcombine.high %v5932_v58, %v5932_v58 }
 0x10c   : > { %737 = vst.msk [vmem:[#allocation2 + $0x18] sm:$0x1] %vm733_vm8, %v5948_v0  ;;  %739 = vst.msk [vmem:[#allocation2 + $0x28] sm:$0x1] %vm733_vm8, %v5955_v2  ;;  %v5990_v8 = vcombine.high %v5955_v2, %v5955_v2  ;;  %v757_v10 = vrot.slane %v656_v55, %v5891_v25  ;;  %v761_v19 = vrot.slane %v664_v62, %v5891_v25 }
 0x10d   : > { %1202 = vrot.lane.b32.xlu1 %v1141_v1, %s5673_s29  ;;  %878 = vrot.lane.b32.xlu0 %v753_v56, %s5675_s30  ;;  %740 = vst.msk [vmem:[#allocation2 + $0x30] sm:$0x1] %vm733_vm8, %v5957_v3  ;;  %1125 = vst.msk [vmem:[#allocation2 + $0x1c] sm:$0x1] %vm733_vm8, %v5961_v4  ;;  %v5994_v9 = vcombine.high %v5970_v5, %v5970_v5  ;;  %v769_v37 = vrot.slane %v649_v54, %v5891_v25 }
 0x10e   : > { %1127 = vst.msk [vmem:[#allocation2 + $0x2c] sm:$0x1] %vm733_vm8, %v5970_v5  ;;  %1128 = vst.msk [vmem:[#allocation2 + $0x34] sm:$0x1] %vm733_vm8, %v5974_v6  ;;  %v1145_v13 = vrot.slane %v5935_v59, %v5891_v25 }
 0x10f   : > { %741 = vst.msk [vmem:[#allocation2 + $0x38] sm:$0x1] %vm733_vm8, %v5990_v8  ;;  %1129 = vst.msk [vmem:[#allocation2 + $0x3c] sm:$0x1] %vm733_vm8, %v5994_v9 }
 0x111   : > { %1330 = vrot.lane.b32.xlu1 %v1141_v1, %s5672_s28  ;;  %1266 = vrot.lane.b32.xlu0 %v1141_v1, %s5675_s30 }
 0x115   : > { %880 = vrot.lane.b32.xlu1 %v757_v10, %s5675_s30  ;;  %816 = vrot.lane.b32.xlu0 %v757_v10, %s5673_s29 }
 0x116   : > { %v612_v12 = vpop.f32.mrb[2].mxu1 }
 0x117   : > { %v613_v20 = vadd.f32 %v612_v12, %v5897_v30  ;;  %v614_v21 = vpop.f32.mrb[3].mxu1  ;;  %v1149_v12 = vrot.slane %v5946_v63, %v5891_v25  ;;  %v765_v63 = vrot.slane %v5948_v0, %v5891_v25 }
 0x118   : > { %v615_v26 = vadd.f32 %v614_v21, %v5899_v31  ;;  %v1161_v21 = vrot.slane %v5970_v5, %v5891_v25 }
 0x119   : > { %882 = vrot.lane.b32.xlu1 %v761_v19, %s5675_s30  ;;  %944 = vrot.lane.b32.xlu0 %v757_v10, %s5672_s28  ;;  %v668_v27 = vcombine.high %v613_v20, %v613_v20  ;;  %v675_v28 = vrot.slane %v613_v20, %v5901_v32  ;;  %v773_v20 = vrot.slane %v5955_v2, %v5891_v25 }
 0x11a   : > { %v1057_v33 = vcombine.high %v615_v26, %v615_v26  ;;  %v1064_v34 = vrot.slane %v615_v26, %v5901_v32  ;;  %v1153_v2 = vrot.slane %v5961_v4, %v5891_v25  ;;  %v781_v4 = vrot.slane %v5990_v8, %v5891_v25 }
 0x11b   : > { %v682_v38 = vrot.slane %v668_v27, %v5901_v32  ;;  %v683_v39 = vcombine.high %v675_v28, %v675_v28  ;;  %v691_v30 = vrot.slane %v675_v28, %v5901_v32  ;;  %v1169_v26 = vrot.slane %v5994_v9, %v5891_v25 }
 0x11c   : > { %v1071_v40 = vrot.slane %v1057_v33, %v5901_v32  ;;  %v1072_v31 = vcombine.high %v1064_v34, %v1064_v34  ;;  %v6017_v43 = vrot.slane %v1064_v34, %v5901_v32 }
 0x11d   : > { %818 = vrot.lane.b32.xlu0 %v761_v19, %s5673_s29  ;;  %886 = vrot.lane.b32.xlu1 %v769_v37, %s5675_s30  ;;  %v684_v44 = vcombine.high %v682_v38, %v682_v38  ;;  %v6022_v47 = vrot.slane %v682_v38, %v5901_v32  ;;  %v6025_v48 = vrot.slane %v683_v39, %v5901_v32 }
 0x11e   : > { %742 = vst.msk [vmem:[#allocation2 + $0x40] sm:$0x1] %vm733_vm8, %v691_v30  ;;  %v6029_v50 = vrot.slane %v1071_v40, %v5901_v32  ;;  %v6032_v52 = vrot.slane %v1072_v31, %v5901_v32  ;;  %1130 = vst.msk [vmem:[#allocation2 + $0x44] sm:$0x1] %vm733_vm8, %v6017_v43  ;;  %v1073_v14 = vcombine.high %v1071_v40, %v1071_v40 }
 0x11f   : > { %743 = vst.msk [vmem:[#allocation2 + $0x48] sm:$0x1] %vm733_vm8, %v6025_v48  ;;  %746 = vst.msk [vmem:[#allocation2 + $0x60] sm:$0x1] %vm733_vm8, %v6022_v47  ;;  %v6042_v53 = vcombine.high %v691_v30, %v691_v30  ;;  %v6050_v54 = vcombine.high %v6017_v43, %v6017_v43  ;;  %v6054_v55 = vcombine.high %v6025_v48, %v6025_v48 }
 0x120   : > { %1131 = vst.msk [vmem:[#allocation2 + $0x4c] sm:$0x1] %vm733_vm8, %v6032_v52  ;;  %1134 = vst.msk [vmem:[#allocation2 + $0x64] sm:$0x1] %vm733_vm8, %v6029_v50  ;;  %v6061_v56 = vrot.slane %v684_v44, %v5901_v32  ;;  %v6069_v57 = vcombine.high %v6022_v47, %v6022_v47  ;;  %v6073_v59 = vcombine.high %v6032_v52, %v6032_v52 }
 0x121   : > { %946 = vrot.lane.b32.xlu0 %v761_v19, %s5672_s28  ;;  %1204 = vrot.lane.b32.xlu1 %v1145_v13, %s5673_s29  ;;  %744 = vst.msk [vmem:[#allocation2 + $0x50] sm:$0x1] %vm733_vm8, %v6042_v53  ;;  %1132 = vst.msk [vmem:[#allocation2 + $0x54] sm:$0x1] %vm733_vm8, %v6050_v54  ;;  %v6078_v62 = vrot.slane %v1073_v14, %v5901_v32  ;;  %v6082_v1 = vcombine.high %v6029_v50, %v6029_v50 }
 0x122   : > { %745 = vst.msk [vmem:[#allocation2 + $0x58] sm:$0x1] %vm733_vm8, %v6054_v55  ;;  %747 = vst.msk [vmem:[#allocation2 + $0x68] sm:$0x1] %vm733_vm8, %v6061_v56  ;;  %v6086_v10 = vcombine.high %v6061_v56, %v6061_v56  ;;  %v1157_v19 = vrot.slane %v5932_v58, %v5891_v25  ;;  %v777_v58 = vrot.slane %v5957_v3, %v5891_v25 }
 0x123   : > { %748 = vst.msk [vmem:[#allocation2 + $0x70] sm:$0x1] %vm733_vm8, %v6069_v57  ;;  %1133 = vst.msk [vmem:[#allocation2 + $0x5c] sm:$0x1] %vm733_vm8, %v6073_v59  ;;  %v6102_v32 = vcombine.high %v6078_v62, %v6078_v62  ;;  %v785_v0 = vrot.slane %v691_v30, %v5891_v25  ;;  %v6139_v3 = vpack.c.bf16 %v5784_v23, %v5781_v22 }
 0x124   : > { %1135 = vst.msk [vmem:[#allocation2 + $0x6c] sm:$0x1] %vm733_vm8, %v6078_v62  ;;  %1136 = vst.msk [vmem:[#allocation2 + $0x74] sm:$0x1] %vm733_vm8, %v6082_v1  ;;  %v1165_v22 = vrot.slane %v5974_v6, %v5891_v25  ;;  %v1173_v23 = vrot.slane %v6017_v43, %v5891_v25  ;;  %v789_v5 = vrot.slane %v6025_v48, %v5891_v25 }
 0x125   : > { %1332 = vrot.lane.b32.xlu1 %v1145_v13, %s5672_s28  ;;  %822 = vrot.lane.b32.xlu0 %v769_v37, %s5673_s29  ;;  %749 = vst.msk [vmem:[#allocation2 + $0x78] sm:$0x1] %vm733_vm8, %v6086_v10  ;;  %1137 = vst.msk [vmem:[#allocation2 + $0x7c] sm:$0x1] %vm733_vm8, %v6102_v32  ;;  %v793_v6 = vrot.slane %v6042_v53, %v5891_v25  ;;  %v801_v8 = vrot.slane %v6022_v47, %v5891_v25 }
 0x126   : > { %5433 = vmatpush3.bf16.xpose.msk.msra.mxu0 %vm5913_vm9, %v6139_v3  ;;  %v1181_v40 = vrot.slane %v6050_v54, %v5891_v25  ;;  %v6207_v31 = vpack.c.bf16 %v5766_v16, %v5763_v15  ;;  %v1189_v48 = vrot.slane %v6029_v50, %v5891_v25  ;;  %v797_v53 = vrot.slane %v6054_v55, %v5891_v25 }
 0x127   : > { %5438 = vmatprep.subr.bf16.mxu0 %v5671_v51 }
 0x129   : > { %1206 = vrot.lane.b32.xlu1 %v1149_v12, %s5673_s29  ;;  %950 = vrot.lane.b32.xlu0 %v769_v37, %s5672_s28  ;;  %v1177_v37 = vrot.slane %v6032_v52, %v5891_v25 }
 0x12d   : > { %1334 = vrot.lane.b32.xlu1 %v1149_v12, %s5672_s28  ;;  %1268 = vrot.lane.b32.xlu0 %v1145_v13, %s5675_s30 }
 0x131   : > { %1210 = vrot.lane.b32.xlu1 %v1157_v19, %s5673_s29  ;;  %1270 = vrot.lane.b32.xlu0 %v1149_v12, %s5675_s30 }
 0x135   : > { %1338 = vrot.lane.b32.xlu1 %v1157_v19, %s5672_s28  ;;  %1274 = vrot.lane.b32.xlu0 %v1157_v19, %s5675_s30  ;;  %v805_v19 = vrot.slane %v6061_v56, %v5891_v25 }
 0x139   : > { %884 = vrot.lane.b32.xlu1 %v765_v63, %s5675_s30  ;;  %820 = vrot.lane.b32.xlu0 %v765_v63, %s5673_s29 }
 0x13d   : > { %948 = vrot.lane.b32.xlu0 %v765_v63, %s5672_s28  ;;  %888 = vrot.lane.b32.xlu1 %v773_v20, %s5675_s30 }
 0x141   : > { %890 = vrot.lane.b32.xlu1 %v777_v58, %s5675_s30  ;;  %824 = vrot.lane.b32.xlu0 %v773_v20, %s5673_s29 }
 0x145   : > { %894 = vrot.lane.b32.xlu1 %v785_v0, %s5675_s30  ;;  %952 = vrot.lane.b32.xlu0 %v773_v20, %s5672_s28  ;;  %v809_v20 = vrot.slane %v6069_v57, %v5891_v25  ;;  %v6256_v57 = vpack.c.bf16 %v5772_v18, %v5769_v17 }
 0x149   : > { %1208 = vrot.lane.b32.xlu1 %v1153_v2, %s5673_s29  ;;  %826 = vrot.lane.b32.xlu0 %v777_v58, %s5673_s29 }
 0x14d   : > { %1336 = vrot.lane.b32.xlu1 %v1153_v2, %s5672_s28  ;;  %954 = vrot.lane.b32.xlu0 %v777_v58, %s5672_s28 }
 0x151   : > { %1212 = vrot.lane.b32.xlu1 %v1161_v21, %s5673_s29  ;;  %830 = vrot.lane.b32.xlu0 %v785_v0, %s5673_s29 }
 0x155   : > { %1340 = vrot.lane.b32.xlu1 %v1161_v21, %s5672_s28  ;;  %958 = vrot.lane.b32.xlu0 %v785_v0, %s5672_s28  ;;  %v1185_v0 = vrot.slane %v6073_v59, %v5891_v25  ;;  %v1193_v59 = vrot.slane %v6078_v62, %v5891_v25  ;;  %v1197_v62 = vrot.slane %v6082_v1, %v5891_v25 }
 0x156   : > { %v813_v1 = vrot.slane %v6086_v10, %v5891_v25 }
 0x159   : > { %1214 = vrot.lane.b32.xlu1 %v1165_v22, %s5673_s29  ;;  %1272 = vrot.lane.b32.xlu0 %v1153_v2, %s5675_s30 }
 0x15d   : > { %1342 = vrot.lane.b32.xlu1 %v1165_v22, %s5672_s28  ;;  %1276 = vrot.lane.b32.xlu0 %v1161_v21, %s5675_s30 }
 0x161   : > { %1218 = vrot.lane.b32.xlu1 %v1173_v23, %s5673_s29  ;;  %1278 = vrot.lane.b32.xlu0 %v1165_v22, %s5675_s30 }
 0x165   : > { %1346 = vrot.lane.b32.xlu1 %v1173_v23, %s5672_s28  ;;  %1282 = vrot.lane.b32.xlu0 %v1173_v23, %s5675_s30  ;;  %v6276_v23 = vpack.c.bf16 %v5796_v29, %v5787_v24 }
 0x169   : > { %892 = vrot.lane.b32.xlu1 %v781_v4, %s5675_s30  ;;  %828 = vrot.lane.b32.xlu0 %v781_v4, %s5673_s29 }
 0x16d   : > { %896 = vrot.lane.b32.xlu1 %v789_v5, %s5675_s30  ;;  %956 = vrot.lane.b32.xlu0 %v781_v4, %s5672_s28 }
 0x171   : > { %898 = vrot.lane.b32.xlu1 %v793_v6, %s5675_s30  ;;  %832 = vrot.lane.b32.xlu0 %v789_v5, %s5673_s29 }
 0x175   : > { %902 = vrot.lane.b32.xlu1 %v801_v8, %s5675_s30  ;;  %960 = vrot.lane.b32.xlu0 %v789_v5, %s5672_s28 }
 0x179   : > { %1216 = vrot.lane.b32.xlu1 %v1169_v26, %s5673_s29  ;;  %834 = vrot.lane.b32.xlu0 %v793_v6, %s5673_s29 }
 0x17b   : > { %v943_v27 = vpop.permute.xlu1 %942  ;;  %v815_v28 = vpop.permute.xlu0 %814 }
 0x17c   : > { %990 = vst.msk [vmem:[#allocation2 + $0x3] sm:$0x1] %vm733_vm8, %v943_v27  ;;  %862 = vst.msk [vmem:[#allocation2 + $0x1] sm:$0x1] %vm733_vm8, %v815_v28 }
 0x17d   : > { %1344 = vrot.lane.b32.xlu1 %v1169_v26, %s5672_s28  ;;  %962 = vrot.lane.b32.xlu0 %v793_v6, %s5672_s28 }
 0x17f   : > { %v1203_v33 = vpop.permute.xlu1 %1202  ;;  %v879_v34 = vpop.permute.xlu0 %878 }
 0x180   : > { %1250 = vst.msk [vmem:[#allocation2 + $0x5] sm:$0x1] %vm733_vm8, %v1203_v33  ;;  %926 = vst.msk [vmem:[#allocation2 + $0x2] sm:$0x1] %vm733_vm8, %v879_v34 }
 0x181   : > { %1220 = vrot.lane.b32.xlu1 %v1177_v37, %s5673_s29  ;;  %838 = vrot.lane.b32.xlu0 %v801_v8, %s5673_s29 }
 0x183   : > { %v1331_v9 = vpop.permute.xlu1 %1330  ;;  %v1267_v38 = vpop.permute.xlu0 %1266 }
 0x184   : > { %1378 = vst.msk [vmem:[#allocation2 + $0x7] sm:$0x1] %vm733_vm8, %v1331_v9  ;;  %1314 = vst.msk [vmem:[#allocation2 + $0x6] sm:$0x1] %vm733_vm8, %v1267_v38 }
 0x185   : > { %1348 = vrot.lane.b32.xlu1 %v1177_v37, %s5672_s28  ;;  %966 = vrot.lane.b32.xlu0 %v801_v8, %s5672_s28  ;;  %v6297_v8 = vpack.c.bf16 %v5812_v41, %v5805_v36 }
 0x187   : > { %v881_v39 = vpop.permute.xlu1 %880  ;;  %v817_v30 = vpop.permute.xlu0 %816 }
 0x188   : > { %927 = vst.msk [vmem:[#allocation2 + $0xa] sm:$0x1] %vm733_vm8, %v881_v39  ;;  %863 = vst.msk [vmem:[#allocation2 + $0x9] sm:$0x1] %vm733_vm8, %v817_v30 }
 0x189   : > { %1222 = vrot.lane.b32.xlu1 %v1181_v40, %s5673_s29  ;;  %1280 = vrot.lane.b32.xlu0 %v1169_v26, %s5675_s30 }
 0x18b   : > { %v883_v43 = vpop.permute.xlu1 %882  ;;  %v945_v44 = vpop.permute.xlu0 %944  ;;  %v1394_v47 = vld [vmem:[#allocation2] sm:$0xff] }
 0x18c   : > { %928 = vst.msk [vmem:[#allocation2 + $0x12] sm:$0x1] %vm733_vm8, %v883_v43  ;;  %991 = vst.msk [vmem:[#allocation2 + $0xb] sm:$0x1] %vm733_vm8, %v945_v44  ;;  %5191 = vmatmul.mubr.msk.f32.vlgmr.msra.gmra.mrb[4].mxu1 %vm317_vm0, %v1394_v47  ;;  %v5645_v43 = vld [vmem:[%s5754_s23 + $0x50] sm:$0xff]  ;;  %v5646_v44 = vld [vmem:[%s5754_s23 + $0x58] sm:$0xff] }
 0x18d   : > { %1350 = vrot.lane.b32.xlu1 %v1181_v40, %s5672_s28  ;;  %1284 = vrot.lane.b32.xlu0 %v1177_v37, %s5675_s30  ;;  %v1201_v37 = vrot.slane %v6102_v32, %v5891_v25  ;;  %v6335_v47 = vpack.c.bf16 %v5646_v44, %v5645_v43 }
 0x18e   : > { %5425 = vmatpush3.bf16.xpose.msk.msra.mxu1 %vm5913_vm9, %v6207_v31  ;;  %5197 = vmatprep.mubr.msk.f32.mxu1 %vm5674_vm10, %v5669_v7 }
 0x18f   : > { %v819_v15 = vpop.permute.xlu0 %818  ;;  %v887_v16 = vpop.permute.xlu1 %886  ;;  %5426 = vmatprep.subr.bf16.mxu1 %v5671_v51 }
 0x190   : > { %864 = vst.msk [vmem:[#allocation2 + $0x11] sm:$0x1] %vm733_vm8, %v819_v15  ;;  %930 = vst.msk [vmem:[#allocation2 + $0x22] sm:$0x1] %vm733_vm8, %v887_v16 }
 0x191   : > { %1226 = vrot.lane.b32.xlu1 %v1189_v48, %s5673_s29  ;;  %1286 = vrot.lane.b32.xlu0 %v1181_v40, %s5675_s30 }
 0x193   : > { %v947_v52 = vpop.permute.xlu0 %946  ;;  %v1205_v13 = vpop.permute.xlu1 %1204 }
 0x194   : > { %992 = vst.msk [vmem:[#allocation2 + $0x13] sm:$0x1] %vm733_vm8, %v947_v52  ;;  %1251 = vst.msk [vmem:[#allocation2 + $0xd] sm:$0x1] %vm733_vm8, %v1205_v13 }
 0x195   : > { %1354 = vrot.lane.b32.xlu1 %v1189_v48, %s5672_s28  ;;  %1290 = vrot.lane.b32.xlu0 %v1189_v48, %s5675_s30 }
 0x197   : > { %v1333_v50 = vpop.permute.xlu1 %1332  ;;  %v823_v14 = vpop.permute.xlu0 %822 }
 0x198   : > { %1379 = vst.msk [vmem:[#allocation2 + $0xf] sm:$0x1] %vm733_vm8, %v1333_v50  ;;  %866 = vst.msk [vmem:[#allocation2 + $0x21] sm:$0x1] %vm733_vm8, %v823_v14  ;;  %v6350_v50 = vpack.c.bf16 %v5828_v42, %v5825_v35  ;;  %v5647_v14 = vld [vmem:[%s5754_s23 + $0x70] sm:$0xff] }
 0x199   : > { %900 = vrot.lane.b32.xlu1 %v797_v53, %s5675_s30  ;;  %836 = vrot.lane.b32.xlu0 %v797_v53, %s5673_s29 }
 0x19b   : > { %v1207_v54 = vpop.permute.xlu1 %1206  ;;  %v951_v12 = vpop.permute.xlu0 %950 }
 0x19c   : > { %1252 = vst.msk [vmem:[#allocation2 + $0x15] sm:$0x1] %vm733_vm8, %v1207_v54  ;;  %994 = vst.msk [vmem:[#allocation2 + $0x23] sm:$0x1] %vm733_vm8, %v951_v12 }
 0x19d   : > { %904 = vrot.lane.b32.xlu1 %v805_v19, %s5675_s30  ;;  %964 = vrot.lane.b32.xlu0 %v797_v53, %s5672_s28  ;;  %v5648_v53 = vld [vmem:[%s5754_s23 + $0x78] sm:$0xff] }
 0x19e   : > { %v6354_v54 = vpack.c.bf16 %v5648_v53, %v5647_v14 }
 0x19f   : > { %v1335_v55 = vpop.permute.xlu1 %1334  ;;  %v1269_v63 = vpop.permute.xlu0 %1268 }
 0x1a0   : > { %1380 = vst.msk [vmem:[#allocation2 + $0x17] sm:$0x1] %vm733_vm8, %v1335_v55  ;;  %1315 = vst.msk [vmem:[#allocation2 + $0xe] sm:$0x1] %vm733_vm8, %v1269_v63 }
 0x1a1   : > { %906 = vrot.lane.b32.xlu1 %v809_v20, %s5675_s30  ;;  %840 = vrot.lane.b32.xlu0 %v805_v19, %s5673_s29 }
 0x1a3   : > { %v1211_v56 = vpop.permute.xlu1 %1210  ;;  %v1271_v58 = vpop.permute.xlu0 %1270 }
 0x1a4   : > { %1254 = vst.msk [vmem:[#allocation2 + $0x25] sm:$0x1] %vm733_vm8, %v1211_v56  ;;  %1316 = vst.msk [vmem:[#allocation2 + $0x16] sm:$0x1] %vm733_vm8, %v1271_v58 }
 0x1a5   : > { %1224 = vrot.lane.b32.xlu1 %v1185_v0, %s5673_s29  ;;  %968 = vrot.lane.b32.xlu0 %v805_v19, %s5672_s28 }
 0x1a7   : > { %v1339_v2 = vpop.permute.xlu1 %1338  ;;  %v1275_v21 = vpop.permute.xlu0 %1274  ;;  %v1395_v22 = vld [vmem:[#allocation2 + $0x8] sm:$0xff] }
 0x1a8   : > { %1382 = vst.msk [vmem:[#allocation2 + $0x27] sm:$0x1] %vm733_vm8, %v1339_v2  ;;  %1318 = vst.msk [vmem:[#allocation2 + $0x26] sm:$0x1] %vm733_vm8, %v1275_v21  ;;  %5198 = vmatmul.mubr.msk.f32.vlgmr.msra.gmra.mrb[6].mxu1 %vm317_vm0, %v1395_v22 }
 0x1a9   : > { %5429 = vmatpush3.bf16.xpose.msk.msra.mxu1 %vm5913_vm9, %v6256_v57  ;;  %1352 = vrot.lane.b32.xlu1 %v1185_v0, %s5672_s28 }
 0x1aa   : > { %842 = vrot.lane.b32.xlu0 %v809_v20, %s5673_s29  ;;  %5204 = vmatprep.mubr.msk.f32.mxu1 %vm5674_vm10, %v5669_v7 }
 0x1ab   : > { %v885_v17 = vpop.permute.xlu1 %884  ;;  %v821_v18 = vpop.permute.xlu0 %820  ;;  %5434 = vmatprep.subr.bf16.mxu1 %v5671_v51  ;;  %v1396_v4 = vld [vmem:[#allocation2 + $0x10] sm:$0xff] }
 0x1ac   : > { %929 = vst.msk [vmem:[#allocation2 + $0x1a] sm:$0x1] %vm733_vm8, %v885_v17  ;;  %865 = vst.msk [vmem:[#allocation2 + $0x19] sm:$0x1] %vm733_vm8, %v821_v18 }
 0x1ad   : > { %1228 = vrot.lane.b32.xlu1 %v1193_v59, %s5673_s29 }
 0x1ae   : > { %970 = vrot.lane.b32.xlu0 %v809_v20, %s5672_s28  ;;  %v6376_v20 = vpack.c.bf16 %v5842_v61, %v5839_v60 }
 0x1af   : > { %v949_v5 = vpop.permute.xlu0 %948  ;;  %v889_v6 = vpop.permute.xlu1 %888  ;;  %v1398_v26 = vld [vmem:[#allocation2 + $0x20] sm:$0xff] }
 0x1b0   : > { %5205 = vmatmul.mubr.msk.f32.vlgmr.msra.gmra.mrb[8].mxu1 %vm317_vm0, %v1396_v4  ;;  %993 = vst.msk [vmem:[#allocation2 + $0x1b] sm:$0x1] %vm733_vm8, %v949_v5  ;;  %931 = vst.msk [vmem:[#allocation2 + $0x2a] sm:$0x1] %vm733_vm8, %v889_v6 }
 0x1b1   : > { %5437 = vmatpush3.bf16.xpose.msk.msra.mxu1 %vm5913_vm9, %v6276_v23  ;;  %1356 = vrot.lane.b32.xlu1 %v1193_v59, %s5672_s28 }
 0x1b2   : > { %1288 = vrot.lane.b32.xlu0 %v1185_v0, %s5675_s30  ;;  %5218 = vmatprep.mubr.msk.f32.mxu1 %vm5674_vm10, %v5669_v7 }
 0x1b3   : > { %v891_v24 = vpop.permute.xlu1 %890  ;;  %v825_v29 = vpop.permute.xlu0 %824  ;;  %5442 = vmatprep.subr.bf16.mxu1 %v5671_v51 }
 0x1b4   : > { %932 = vst.msk [vmem:[#allocation2 + $0x32] sm:$0x1] %vm733_vm8, %v891_v24  ;;  %867 = vst.msk [vmem:[#allocation2 + $0x29] sm:$0x1] %vm733_vm8, %v825_v29 }
 0x1b5   : > { %1230 = vrot.lane.b32.xlu1 %v1197_v62, %s5673_s29 }
 0x1b6   : > { %1292 = vrot.lane.b32.xlu0 %v1193_v59, %s5675_s30 }
 0x1b7   : > { %v895_v27 = vpop.permute.xlu1 %894  ;;  %v953_v28 = vpop.permute.xlu0 %952 }
 0x1b8   : > { %5219 = vmatmul.mubr.msk.f32.vlgmr.msra.gmra.mrb[10].mxu1 %vm317_vm0, %v1398_v26  ;;  %934 = vst.msk [vmem:[#allocation2 + $0x42] sm:$0x1] %vm733_vm8, %v895_v27  ;;  %995 = vst.msk [vmem:[#allocation2 + $0x2b] sm:$0x1] %vm733_vm8, %v953_v28  ;;  %v5649_v26 = vld [vmem:[%s5754_s23 + $0x90] sm:$0xff]  ;;  %v5650_v27 = vld [vmem:[%s5754_s23 + $0x98] sm:$0xff] }
 0x1b9   : > { %1358 = vrot.lane.b32.xlu1 %v1197_v62, %s5672_s28  ;;  %5445 = vmatpush3.bf16.xpose.msk.msra.mxu1 %vm5913_vm9, %v6297_v8  ;;  %v6403_v28 = vpack.c.bf16 %v5650_v27, %v5649_v26 }
 0x1ba   : > { %1294 = vrot.lane.b32.xlu0 %v1197_v62, %s5675_s30  ;;  %5232 = vmatprep.mubr.msk.f32.mxu1 %vm5674_vm10, %v5669_v7 }
 0x1bb   : > { %v1209_v36 = vpop.permute.xlu1 %1208  ;;  %v827_v41 = vpop.permute.xlu0 %826  ;;  %5450 = vmatprep.subr.bf16.mxu1 %v5671_v51 }
 0x1bc   : > { %1253 = vst.msk [vmem:[#allocation2 + $0x1d] sm:$0x1] %vm733_vm8, %v1209_v36  ;;  %868 = vst.msk [vmem:[#allocation2 + $0x31] sm:$0x1] %vm733_vm8, %v827_v41 }
 0x1bd   : > { %908 = vrot.lane.b32.xlu1 %v813_v1, %s5675_s30 }
 0x1be   : > { %844 = vrot.lane.b32.xlu0 %v813_v1, %s5673_s29 }
 0x1bf   : > { %v1337_v33 = vpop.permute.xlu1 %1336  ;;  %v955_v34 = vpop.permute.xlu0 %954 }
 0x1c0   : > { %1381 = vst.msk [vmem:[#allocation2 + $0x1f] sm:$0x1] %vm733_vm8, %v1337_v33  ;;  %996 = vst.msk [vmem:[#allocation2 + $0x33] sm:$0x1] %vm733_vm8, %v955_v34 }
 0x1c1   : > { %1232 = vrot.lane.b32.xlu1 %v1201_v37, %s5673_s29 }
 0x1c2   : > { %972 = vrot.lane.b32.xlu0 %v813_v1, %s5672_s28 }
 0x1c3   : > { %v1213_v10 = vpop.permute.xlu1 %1212  ;;  %v831_v9 = vpop.permute.xlu0 %830 }
 0x1c4   : > { %1255 = vst.msk [vmem:[#allocation2 + $0x2d] sm:$0x1] %vm733_vm8, %v1213_v10  ;;  %870 = vst.msk [vmem:[#allocation2 + $0x41] sm:$0x1] %vm733_vm8, %v831_v9  ;;  %v5652_v10 = vld [vmem:[%s5754_s23 + $0xc8] sm:$0xff] }
 0x1c5   : > { %1360 = vrot.lane.b32.xlu1 %v1201_v37, %s5672_s28 }
 0x1c6   : > { %1296 = vrot.lane.b32.xlu0 %v1201_v37, %s5675_s30  ;;  %v5651_v37 = vld [vmem:[%s5754_s23 + $0xc0] sm:$0xff] }
 0x1c7   : > { %v1341_v25 = vpop.permute.xlu1 %1340  ;;  %v959_v32 = vpop.permute.xlu0 %958  ;;  %v6418_v9 = vpack.c.bf16 %v5652_v10, %v5651_v37 }
 0x1c8   : > { %1383 = vst.msk [vmem:[#allocation2 + $0x2f] sm:$0x1] %vm733_vm8, %v1341_v25  ;;  %998 = vst.msk [vmem:[#allocation2 + $0x43] sm:$0x1] %vm733_vm8, %v959_v32  ;;  %v5653_v25 = vld [vmem:[%s5754_s23 + $0xb0] sm:$0xff]  ;;  %v5654_v32 = vld [vmem:[%s5754_s23 + $0xb8] sm:$0xff] }
 0x1cb   : > { %v1215_v38 = vpop.permute.xlu1 %1214  ;;  %v1273_v39 = vpop.permute.xlu0 %1272 }
 0x1cc   : > { %1256 = vst.msk [vmem:[#allocation2 + $0x35] sm:$0x1] %vm733_vm8, %v1215_v38  ;;  %1317 = vst.msk [vmem:[#allocation2 + $0x1e] sm:$0x1] %vm733_vm8, %v1273_v39  ;;  %v6422_v38 = vpack.c.bf16 %v5654_v32, %v5653_v25 }
 0x1cf   : > { %v1343_v30 = vpop.permute.xlu1 %1342  ;;  %v1277_v40 = vpop.permute.xlu0 %1276 }
 0x1d0   : > { %1384 = vst.msk [vmem:[#allocation2 + $0x37] sm:$0x1] %vm733_vm8, %v1343_v30  ;;  %1319 = vst.msk [vmem:[#allocation2 + $0x2e] sm:$0x1] %vm733_vm8, %v1277_v40 }
 0x1d3   : > { %v1219_v15 = vpop.permute.xlu1 %1218  ;;  %v1279_v16 = vpop.permute.xlu0 %1278  ;;  %v1397_v48 = vld [vmem:[#allocation2 + $0x18] sm:$0xff] }
 0x1d4   : > { %1258 = vst.msk [vmem:[#allocation2 + $0x45] sm:$0x1] %vm733_vm8, %v1219_v15  ;;  %1320 = vst.msk [vmem:[#allocation2 + $0x36] sm:$0x1] %vm733_vm8, %v1279_v16  ;;  %5212 = vmatmul.mubr.msk.f32.vlgmr.msra.gmra.mrb[0].mxu0 %vm317_vm0, %v1397_v48  ;;  %v5655_v16 = vld [vmem:[%s5754_s23 + $0xe0] sm:$0xff]  ;;  %v5656_v48 = vld [vmem:[%s5754_s23 + $0xe8] sm:$0xff] }
 0x1d5   : > { %5441 = vmatpush3.bf16.xpose.msk.msra.mxu0 %vm5913_vm9, %v6335_v47  ;;  %5225 = vmatprep.mubr.msk.f32.mxu0 %vm5674_vm10, %v5669_v7 }
 0x1d6   : > { %5446 = vmatprep.subr.bf16.mxu0 %v5671_v51 }
 0x1d7   : > { %v1347_v52 = vpop.permute.xlu1 %1346  ;;  %v1283_v13 = vpop.permute.xlu0 %1282  ;;  %v1399_v12 = vld [vmem:[#allocation2 + $0x28] sm:$0xff] }
 0x1d8   : > { %1386 = vst.msk [vmem:[#allocation2 + $0x47] sm:$0x1] %vm733_vm8, %v1347_v52  ;;  %1322 = vst.msk [vmem:[#allocation2 + $0x46] sm:$0x1] %vm733_vm8, %v1283_v13  ;;  %v6444_v52 = vpack.c.bf16 %v5656_v48, %v5655_v16 }
 0x1db   : > { %v893_v19 = vpop.permute.xlu1 %892  ;;  %v829_v55 = vpop.permute.xlu0 %828  ;;  %v1400_v63 = vld [vmem:[#allocation2 + $0x30] sm:$0xff] }
 0x1dc   : > { %5226 = vmatmul.mubr.msk.f32.vlgmr.msra.gmra.mrb[2].mxu0 %vm317_vm0, %v1399_v12  ;;  %933 = vst.msk [vmem:[#allocation2 + $0x3a] sm:$0x1] %vm733_vm8, %v893_v19  ;;  %869 = vst.msk [vmem:[#allocation2 + $0x39] sm:$0x1] %vm733_vm8, %v829_v55  ;;  %5233 = vmatmul.mubr.msk.f32.vlgmr.msra.gmra.mrb[12].mxu1 %vm317_vm0, %v1400_v63 }
 0x1dd   : > { %5453 = vmatpush3.bf16.xpose.msk.msra.mxu1 %vm5913_vm9, %v6350_v50  ;;  %5246 = vmatprep.mubr.msk.f32.mxu1 %vm5674_vm10, %v5669_v7 }
 0x1de   : > { %5449 = vmatpush3.bf16.xpose.msk.msra.mxu0 %vm5913_vm9, %v6354_v54  ;;  %5239 = vmatprep.mubr.msk.f32.mxu0 %vm5674_vm10, %v5669_v7 }
 0x1df   : > { %v897_v35 = vpop.permute.xlu1 %896  ;;  %v957_v42 = vpop.permute.xlu0 %956  ;;  %5454 = vmatprep.subr.bf16.mxu0 %v5671_v51  ;;  %5458 = vmatprep.subr.bf16.mxu1 %v5671_v51  ;;  %v1402_v56 = vld [vmem:[#allocation2 + $0x40] sm:$0xff] }
 0x1e0   : > { %935 = vst.msk [vmem:[#allocation2 + $0x4a] sm:$0x1] %vm733_vm8, %v897_v35  ;;  %997 = vst.msk [vmem:[#allocation2 + $0x3b] sm:$0x1] %vm733_vm8, %v957_v42 }
 0x1e3   : > { %v899_v58 = vpop.permute.xlu1 %898  ;;  %v833_v0 = vpop.permute.xlu0 %832 }
 0x1e4   : > { %5247 = vmatmul.mubr.msk.f32.vlgmr.msra.gmra.mrb[14].mxu1 %vm317_vm0, %v1402_v56  ;;  %936 = vst.msk [vmem:[#allocation2 + $0x52] sm:$0x1] %vm733_vm8, %v899_v58  ;;  %871 = vst.msk [vmem:[#allocation2 + $0x49] sm:$0x1] %vm733_vm8, %v833_v0 }
 0x1e5   : > { %5461 = vmatpush3.bf16.xpose.msk.msra.mxu1 %vm5913_vm9, %v6376_v20  ;;  %5260 = vmatprep.mubr.msk.f32.mxu1 %vm5674_vm10, %v5669_v7 }
 0x1e6   : > { %5466 = vmatprep.subr.bf16.mxu1 %v5671_v51 }
 0x1e7   : > { %v903_v60 = vpop.permute.xlu1 %902  ;;  %v961_v61 = vpop.permute.xlu0 %960 }
 0x1e8   : > { %938 = vst.msk [vmem:[#allocation2 + $0x62] sm:$0x1] %vm733_vm8, %v903_v60  ;;  %999 = vst.msk [vmem:[#allocation2 + $0x4b] sm:$0x1] %vm733_vm8, %v961_v61  ;;  %v5657_v61 = vld [vmem:[%s5754_s23 + $0xd0] sm:$0xff] }
 0x1eb   : > { %v1217_v2 = vpop.permute.xlu1 %1216  ;;  %v835_v21 = vpop.permute.xlu0 %834 }
 0x1ec   : > { %1257 = vst.msk [vmem:[#allocation2 + $0x3d] sm:$0x1] %vm733_vm8, %v1217_v2  ;;  %872 = vst.msk [vmem:[#allocation2 + $0x51] sm:$0x1] %vm733_vm8, %v835_v21  ;;  %v5658_v2 = vld [vmem:[%s5754_s23 + $0xd8] sm:$0xff] }
 0x1ed   : > { %v6467_v21 = vpack.c.bf16 %v5658_v2, %v5657_v61 }
 0x1ef   : > { %v1345_v22 = vpop.permute.xlu1 %1344  ;;  %v963_v17 = vpop.permute.xlu0 %962 }
 0x1f0   : > { %1385 = vst.msk [vmem:[#allocation2 + $0x3f] sm:$0x1] %vm733_vm8, %v1345_v22  ;;  %1000 = vst.msk [vmem:[#allocation2 + $0x53] sm:$0x1] %vm733_vm8, %v963_v17 }
 0x1f3   : > { %v1221_v18 = vpop.permute.xlu1 %1220  ;;  %v839_v59 = vpop.permute.xlu0 %838 }
 0x1f4   : > { %1259 = vst.msk [vmem:[#allocation2 + $0x4d] sm:$0x1] %vm733_vm8, %v1221_v18  ;;  %874 = vst.msk [vmem:[#allocation2 + $0x61] sm:$0x1] %vm733_vm8, %v839_v59 }
 0x1f7   : > { %v1349_v4 = vpop.permute.xlu1 %1348  ;;  %v967_v5 = vpop.permute.xlu0 %966 }
 0x1f8   : > { %1387 = vst.msk [vmem:[#allocation2 + $0x4f] sm:$0x1] %vm733_vm8, %v1349_v4  ;;  %1002 = vst.msk [vmem:[#allocation2 + $0x63] sm:$0x1] %vm733_vm8, %v967_v5  ;;  %v5659_v5 = vld [vmem:[%s5754_s23 + $0xf0] sm:$0xff] }
 0x1fb   : > { %v1223_v6 = vpop.permute.xlu1 %1222  ;;  %v1281_v24 = vpop.permute.xlu0 %1280 }
 0x1fc   : > { %1260 = vst.msk [vmem:[#allocation2 + $0x55] sm:$0x1] %vm733_vm8, %v1223_v6  ;;  %1321 = vst.msk [vmem:[#allocation2 + $0x3e] sm:$0x1] %vm733_vm8, %v1281_v24  ;;  %v5660_v6 = vld [vmem:[%s5754_s23 + $0xf8] sm:$0xff] }
 0x1fd   : > { %v6482_v24 = vpack.c.bf16 %v5660_v6, %v5659_v5 }
 0x1ff   : > { %v1351_v29 = vpop.permute.xlu1 %1350  ;;  %v1285_v62 = vpop.permute.xlu0 %1284 }
 0x200   : > { %1388 = vst.msk [vmem:[#allocation2 + $0x57] sm:$0x1] %vm733_vm8, %v1351_v29  ;;  %1323 = vst.msk [vmem:[#allocation2 + $0x4e] sm:$0x1] %vm733_vm8, %v1285_v62 }
 0x203   : > { %v1227_v36 = vpop.permute.xlu1 %1226  ;;  %v1287_v41 = vpop.permute.xlu0 %1286  ;;  %v1401_v1 = vld [vmem:[#allocation2 + $0x38] sm:$0xff] }
 0x204   : > { %1262 = vst.msk [vmem:[#allocation2 + $0x65] sm:$0x1] %vm733_vm8, %v1227_v36  ;;  %1324 = vst.msk [vmem:[#allocation2 + $0x56] sm:$0x1] %vm733_vm8, %v1287_v41  ;;  %5240 = vmatmul.mubr.msk.f32.vlgmr.msra.gmra.mrb[4].mxu0 %vm317_vm0, %v1401_v1 }
 0x205   : > { %5457 = vmatpush3.bf16.xpose.msk.msra.mxu0 %vm5913_vm9, %v6403_v28  ;;  %5253 = vmatprep.mubr.msk.f32.mxu0 %vm5674_vm10, %v5669_v7 }
 0x206   : > { %5462 = vmatprep.subr.bf16.mxu0 %v5671_v51 }
 0x207   : > { %v1355_v33 = vpop.permute.xlu1 %1354  ;;  %v1291_v34 = vpop.permute.xlu0 %1290  ;;  %v1403_v40 = vld [vmem:[#allocation2 + $0x48] sm:$0xff] }
 0x208   : > { %1390 = vst.msk [vmem:[#allocation2 + $0x67] sm:$0x1] %vm733_vm8, %v1355_v33  ;;  %1326 = vst.msk [vmem:[#allocation2 + $0x66] sm:$0x1] %vm733_vm8, %v1291_v34 }
 0x20b   : > { %v901_v39 = vpop.permute.xlu1 %900  ;;  %v837_v30 = vpop.permute.xlu0 %836  ;;  %v1404_v43 = vld [vmem:[#allocation2 + $0x50] sm:$0xff] }
 0x20c   : > { %937 = vst.msk [vmem:[#allocation2 + $0x5a] sm:$0x1] %vm733_vm8, %v901_v39  ;;  %873 = vst.msk [vmem:[#allocation2 + $0x59] sm:$0x1] %vm733_vm8, %v837_v30  ;;  %5254 = vmatmul.mubr.msk.f32.vlgmr.msra.gmra.mrb[6].mxu0 %vm317_vm0, %v1403_v40  ;;  %5261 = vmatmul.mubr.msk.f32.vlgmr.msra.gmra.mrb[16].mxu1 %vm317_vm0, %v1404_v43 }
 0x20d   : > { %5469 = vmatpush3.bf16.xpose.msk.msra.mxu1 %vm5913_vm9, %v6418_v9  ;;  %5274 = vmatprep.mubr.msk.f32.mxu1 %vm5674_vm10, %v5669_v7 }
 0x20e   : > { %5465 = vmatpush3.bf16.xpose.msk.msra.mxu0 %vm5913_vm9, %v6422_v38  ;;  %5267 = vmatprep.mubr.msk.f32.mxu0 %vm5674_vm10, %v5669_v7 }
 0x20f   : > { %v905_v44 = vpop.permute.xlu1 %904  ;;  %v965_v15 = vpop.permute.xlu0 %964  ;;  %5470 = vmatprep.subr.bf16.mxu0 %v5671_v51  ;;  %5474 = vmatprep.subr.bf16.mxu1 %v5671_v51  ;;  %v1406_v14 = vld [vmem:[#allocation2 + $0x60] sm:$0xff] }
 0x210   : > { %939 = vst.msk [vmem:[#allocation2 + $0x6a] sm:$0x1] %vm733_vm8, %v905_v44  ;;  %1001 = vst.msk [vmem:[#allocation2 + $0x5b] sm:$0x1] %vm733_vm8, %v965_v15 }
 0x213   : > { %v907_v13 = vpop.permute.xlu1 %906  ;;  %v841_v53 = vpop.permute.xlu0 %840 }
 0x214   : > { %940 = vst.msk [vmem:[#allocation2 + $0x72] sm:$0x1] %vm733_vm8, %v907_v13  ;;  %5275 = vmatmul.mubr.msk.f32.vlgmr.msra.gmra.mrb[18].mxu1 %vm317_vm0, %v1406_v14  ;;  %875 = vst.msk [vmem:[#allocation2 + $0x69] sm:$0x1] %vm733_vm8, %v841_v53 }
 0x215   : > { %5477 = vmatpush3.bf16.xpose.msk.msra.mxu1 %vm5913_vm9, %v6444_v52  ;;  %5288 = vmatprep.mubr.msk.f32.mxu1 %vm5674_vm10, %v5669_v7 }
 0x216   : > { %5482 = vmatprep.subr.bf16.mxu1 %v5671_v51 }
 0x217   : > { %v1225_v12 = vpop.permute.xlu1 %1224  ;;  %v969_v19 = vpop.permute.xlu0 %968 }
 0x218   : > { %1261 = vst.msk [vmem:[#allocation2 + $0x5d] sm:$0x1] %vm733_vm8, %v1225_v12  ;;  %1003 = vst.msk [vmem:[#allocation2 + $0x6b] sm:$0x1] %vm733_vm8, %v969_v19 }
 0x21b   : > { %v1353_v55 = vpop.permute.xlu1 %1352 }
 0x21c   : > { %1389 = vst.msk [vmem:[#allocation2 + $0x5f] sm:$0x1] %vm733_vm8, %v1353_v55  ;;  %v843_v63 = vpop.permute.xlu0 %842 }
 0x21d   : > { %876 = vst.msk [vmem:[#allocation2 + $0x71] sm:$0x1] %vm733_vm8, %v843_v63 }
 0x21f   : > { %v1229_v35 = vpop.permute.xlu1 %1228 }
 0x220   : > { %1263 = vst.msk [vmem:[#allocation2 + $0x6d] sm:$0x1] %vm733_vm8, %v1229_v35  ;;  %v971_v42 = vpop.permute.xlu0 %970 }
 0x221   : > { %1004 = vst.msk [vmem:[#allocation2 + $0x73] sm:$0x1] %vm733_vm8, %v971_v42 }
 0x223   : > { %v1357_v56 = vpop.permute.xlu1 %1356 }
 0x224   : > { %1391 = vst.msk [vmem:[#allocation2 + $0x6f] sm:$0x1] %vm733_vm8, %v1357_v56  ;;  %v1289_v58 = vpop.permute.xlu0 %1288 }
 0x225   : > { %1325 = vst.msk [vmem:[#allocation2 + $0x5e] sm:$0x1] %vm733_vm8, %v1289_v58 }
 0x227   : > { %v1231_v0 = vpop.permute.xlu1 %1230 }
 0x228   : > { %1264 = vst.msk [vmem:[#allocation2 + $0x75] sm:$0x1] %vm733_vm8, %v1231_v0  ;;  %v1293_v60 = vpop.permute.xlu0 %1292 }
 0x229   : > { %1327 = vst.msk [vmem:[#allocation2 + $0x6e] sm:$0x1] %vm733_vm8, %v1293_v60 }
 0x22b   : > { %v1359_v22 = vpop.permute.xlu1 %1358 }
 0x22c   : > { %1392 = vst.msk [vmem:[#allocation2 + $0x77] sm:$0x1] %vm733_vm8, %v1359_v22  ;;  %v1295_v17 = vpop.permute.xlu0 %1294  ;;  %v1405_v18 = vld [vmem:[#allocation2 + $0x58] sm:$0xff] }
 0x22d   : > { %1328 = vst.msk [vmem:[#allocation2 + $0x76] sm:$0x1] %vm733_vm8, %v1295_v17  ;;  %5268 = vmatmul.mubr.msk.f32.vlgmr.msra.gmra.mrb[8].mxu0 %vm317_vm0, %v1405_v18 }
 0x22e   : > { %5473 = vmatpush3.bf16.xpose.msk.msra.mxu0 %vm5913_vm9, %v6467_v21  ;;  %5281 = vmatprep.mubr.msk.f32.mxu0 %vm5674_vm10, %v5669_v7 }
 0x22f   : > { %v909_v59 = vpop.permute.xlu1 %908  ;;  %5478 = vmatprep.subr.bf16.mxu0 %v5671_v51 }
 0x230   : > { %941 = vst.msk [vmem:[#allocation2 + $0x7a] sm:$0x1] %vm733_vm8, %v909_v59  ;;  %v845_v4 = vpop.permute.xlu0 %844  ;;  %v1407_v26 = vld [vmem:[#allocation2 + $0x68] sm:$0xff] }
 0x231   : > { %877 = vst.msk [vmem:[#allocation2 + $0x79] sm:$0x1] %vm733_vm8, %v845_v4 }
 0x233   : > { %v1233_v29 = vpop.permute.xlu1 %1232 }
 0x234   : > { %1265 = vst.msk [vmem:[#allocation2 + $0x7d] sm:$0x1] %vm733_vm8, %v1233_v29  ;;  %v973_v62 = vpop.permute.xlu0 %972  ;;  %v1408_v27 = vld [vmem:[#allocation2 + $0x70] sm:$0xff] }
 0x235   : > { %1005 = vst.msk [vmem:[#allocation2 + $0x7b] sm:$0x1] %vm733_vm8, %v973_v62  ;;  %5282 = vmatmul.mubr.msk.f32.vlgmr.msra.gmra.mrb[10].mxu0 %vm317_vm0, %v1407_v26  ;;  %5289 = vmatmul.mubr.msk.f32.vlgmr.msra.gmra.mrb[20].mxu1 %vm317_vm0, %v1408_v27 }
 0x236   : > { %5481 = vmatpush3.bf16.xpose.msk.msra.mxu0 %vm5913_vm9, %v6482_v24  ;;  %5295 = vmatprep.mubr.msk.f32.mxu0 %vm5674_vm10, %v5669_v7 }
 0x237   : > { %v1361_v36 = vpop.permute.xlu1 %1360  ;;  %5484 = vmatpush3.bf16.msra.mxu1 %v5909_v45  ;;  %5302 = vmatprep.mubr.msk.f32.mxu1 %vm5674_vm10, %v5669_v7 }
 0x238   : > { %1393 = vst.msk [vmem:[#allocation2 + $0x7f] sm:$0x1] %vm733_vm8, %v1361_v36  ;;  %v1297_v41 = vpop.permute.xlu0 %1296  ;;  %5485 = vmatprep.subr.bf16.mxu1 %v5671_v51  ;;  %5488 = vmatprep.subr.bf16.mxu0 %v5671_v51 }
 0x239   : > { %1329 = vst.msk [vmem:[#allocation2 + $0x7e] sm:$0x1] %vm733_vm8, %v1297_v41 }
 0x240   : > { %v1409_v46 = vld [vmem:[#allocation2 + $0x78] sm:$0xff] }
 0x241   : > { %5296 = vmatmul.mubr.msk.f32.vlgmr.msra.gmra.mrb[12].mxu0 %vm317_vm0, %v1409_v46 }
 0x242   : > { %5490 = vmatpush3.bf16.msra.mxu0 %v6256_v57  ;;  %5316 = vmatprep.mubr.msk.f32.mxu0 %vm5674_vm10, %v5669_v7 }
 0x243   : > { %5494 = vmatprep.subr.bf16.mxu0 %v5671_v51 }
 0x25f   : > { %v1485_v45 = vpop.f32.mrb[4].mxu1 }
 0x260   : > { %v5192_v1 = vpop.f32.mrb[5].mxu1  ;;  %v2675_v33 = vsel %vm2674_vm11, %v1485_v45, -inf }
 0x261   : > { %2676 = vmax.xlane.f32.xlu0 %v2675_v33 }
 0x27b   : > { %v6506_v34 = vpop.f32.mrb[6].mxu1 }
 0x27c   : > { %v5199_v37 = vpop.f32.mrb[7].mxu1  ;;  %v2678_v10 = vsel %vm2674_vm11, %v6506_v34, -inf }
 0x27d   : > { %2679 = vmax.xlane.f32.xlu1 %v2678_v10 }
 0x283   : > { %v6510_v25 = vpop.f32.mrb[8].mxu1 }
 0x284   : > { %v5206_v57 = vpop.f32.mrb[9].mxu1  ;;  %v2681_v32 = vsel %vm2674_vm11, %v6510_v25, -inf }
 0x285   : > { %2682 = vmax.xlane.f32.xlu0 %v2681_v32 }
 0x28b   : > { %v6514_v39 = vpop.f32.mrb[10].mxu1 }
 0x28c   : > { %v5220_v30 = vpop.f32.mrb[11].mxu1  ;;  %v2687_v40 = vsel %vm2674_vm11, %v6514_v39, -inf }
 0x28d   : > { %2688 = vmax.xlane.f32.xlu1 %v2687_v40 }
 0x2a7   : > { %v6518_v43 = vpop.f32.mrb[0].mxu0 }
 0x2a8   : > { %v5213_v44 = vpop.f32.mrb[1].mxu0  ;;  %v2684_v15 = vsel %vm2674_vm11, %v6518_v43, -inf }
 0x2a9   : > { %2685 = vmax.xlane.f32.xlu0 %v2684_v15 }
 0x2af   : > { %v6522_v16 = vpop.f32.mrb[2].mxu0  ;;  %v6524_v48 = vpop.f32.mrb[12].mxu1 }
 0x2b0   : > { %v5227_v13 = vpop.f32.mrb[3].mxu0  ;;  %v5234_v14 = vpop.f32.mrb[13].mxu1  ;;  %v2690_v53 = vsel %vm2674_vm11, %v6522_v16, -inf  ;;  %v2693_v12 = vsel %vm2674_vm11, %v6524_v48, -inf }
 0x2b1   : > { %2691 = vmax.xlane.f32.xlu0 %v2690_v53  ;;  %2694 = vmax.xlane.f32.xlu1 %v2693_v12 }
 0x2b7   : > { %v6530_v19 = vpop.f32.mrb[14].mxu1 }
 0x2b8   : > { %v5248_v55 = vpop.f32.mrb[15].mxu1  ;;  %v2699_v63 = vsel %vm2674_vm11, %v6530_v19, -inf }
 0x2b9   : > { %2700 = vmax.xlane.f32.xlu1 %v2699_v63 }
 0x2d7   : > { %v6534_v35 = vpop.f32.mrb[4].mxu0 }
 0x2d8   : > { %v5241_v42 = vpop.f32.mrb[5].mxu0  ;;  %v2696_v56 = vsel %vm2674_vm11, %v6534_v35, -inf }
 0x2d9   : > { %2697 = vmax.xlane.f32.xlu0 %v2696_v56 }
 0x2df   : > { %v6538_v58 = vpop.f32.mrb[6].mxu0  ;;  %v6540_v0 = vpop.f32.mrb[16].mxu1 }
 0x2e0   : > { %v5255_v60 = vpop.f32.mrb[7].mxu0  ;;  %v5262_v61 = vpop.f32.mrb[17].mxu1  ;;  %v2702_v2 = vsel %vm2674_vm11, %v6538_v58, -inf  ;;  %v2705_v22 = vsel %vm2674_vm11, %v6540_v0, -inf }
 0x2e1   : > { %2703 = vmax.xlane.f32.xlu0 %v2702_v2  ;;  %2706 = vmax.xlane.f32.xlu1 %v2705_v22 }
 0x2e7   : > { %v6546_v17 = vpop.f32.mrb[18].mxu1 }
 0x2e8   : > { %v5276_v18 = vpop.f32.mrb[19].mxu1  ;;  %v2711_v59 = vsel %vm2674_vm11, %v6546_v17, -inf }
 0x2e9   : > { %2712 = vmax.xlane.f32.xlu1 %v2711_v59 }
 0x2ee   : > { %v2677_v4 = vpop.xlane.xlu0 %2676 }
 0x2ef   : > { %v2723_v5 = vsub.f32 %v1485_v45, %v2677_v4 }
 0x2f1   : > { %v2739_v6 = vmul.f32 1.442695, %v2723_v5 }
 0x2f3   : > { %5577 = vpow2.f32 %v2739_v6 }
 0x2fd   : > { %v6562_v33 = vpop.eup %5577 }
 0x2fe   : > { %v2771_v32 = vsel %vm2674_vm11, %v6562_v33, 0.0 }
 0x300   : > { %v6550_v29 = vpop.f32.mrb[8].mxu0 }
 0x301   : > { %v5269_v62 = vpop.f32.mrb[9].mxu0  ;;  %v2708_v26 = vsel %vm2674_vm11, %v6550_v29, -inf }
 0x302   : > { %2709 = vmax.xlane.f32.xlu0 %v2708_v26 }
 0x308   : > { %v6554_v27 = vpop.f32.mrb[10].mxu0  ;;  %v6556_v36 = vpop.f32.mrb[20].mxu1 }
 0x309   : > { %v5283_v41 = vpop.f32.mrb[11].mxu0  ;;  %v5290_v46 = vpop.f32.mrb[21].mxu1  ;;  %v2714_v1 = vsel %vm2674_vm11, %v6554_v27, -inf  ;;  %v2717_v45 = vsel %vm2674_vm11, %v6556_v36, -inf }
 0x30a   : > { %2715 = vmax.xlane.f32.xlu0 %v2714_v1  ;;  %2718 = vmax.xlane.f32.xlu1 %v2717_v45  ;;  %v2680_v37 = vpop.xlane.xlu1 %2679 }
 0x30b   : > { %v2724_v10 = vsub.f32 %v6506_v34, %v2680_v37 }
 0x30d   : > { %v2741_v57 = vmul.f32 1.442695, %v2724_v10 }
 0x30e   : > { %2772 = vadd.xlane.f32.xlu1 %v2771_v32 }
 0x30f   : > { %5579 = vpow2.f32 %v2741_v57 }
 0x312   : > { %v2683_v30 = vpop.xlane.xlu0 %2682 }
 0x313   : > { %v2725_v40 = vsub.f32 %v6510_v25, %v2683_v30 }
 0x314   : > { %v6568_v44 = vpop.f32.mrb[12].mxu0 }
 0x315   : > { %v2743_v15 = vmul.f32 1.442695, %v2725_v40  ;;  %v5297_v13 = vpop.f32.mrb[13].mxu0  ;;  %v2720_v14 = vsel %vm2674_vm11, %v6568_v44, -inf }
 0x316   : > { %2721 = vmax.xlane.f32.xlu0 %v2720_v14 }
 0x317   : > { %5581 = vpow2.f32 %v2743_v15 }
 0x319   : > { %v6572_v53 = vpop.eup %5579 }
 0x31a   : > { %v2689_v34 = vpop.xlane.xlu1 %2688  ;;  %v2774_v12 = vsel %vm2674_vm11, %v6572_v53, 0.0 }
 0x31b   : > { %v2727_v55 = vsub.f32 %v6514_v39, %v2689_v34  ;;  %2775 = vadd.xlane.f32.xlu0 %v2774_v12 }
 0x31d   : > { %v2747_v63 = vmul.f32 1.442695, %v2727_v55 }
 0x31f   : > { %5583 = vpow2.f32 %v2747_v63 }
 0x321   : > { %v6577_v25 = vpop.eup %5581 }
 0x322   : > { %v2777_v42 = vsel %vm2674_vm11, %v6577_v25, 0.0 }
 0x323   : > { %2778 = vadd.xlane.f32.xlu1 %v2777_v42 }
 0x329   : > { %v6581_v56 = vpop.eup %5583 }
 0x32a   : > { %v2783_v60 = vsel %vm2674_vm11, %v6581_v56, 0.0 }
 0x32b   : > { %2784 = vadd.xlane.f32.xlu1 %v2783_v60 }
 0x336   : > { %v2686_v61 = vpop.xlane.xlu0 %2685 }
 0x337   : > { %v2726_v2 = vsub.f32 %v6518_v43, %v2686_v61 }
 0x339   : > { %v2745_v22 = vmul.f32 1.442695, %v2726_v2 }
 0x33b   : > { %5585 = vpow2.f32 %v2745_v22 }
 0x33e   : > { %v2692_v39 = vpop.xlane.xlu0 %2691  ;;  %v2695_v18 = vpop.xlane.xlu1 %2694 }
 0x33f   : > { %v2728_v59 = vsub.f32 %v6522_v16, %v2692_v39  ;;  %v2729_v4 = vsub.f32 %v6524_v48, %v2695_v18 }
 0x341   : > { %v2749_v5 = vmul.f32 1.442695, %v2728_v59  ;;  %v2751_v6 = vmul.f32 1.442695, %v2729_v4 }
 0x343   : > { %5587 = vpow2.f32 %v2749_v5 }
 0x344   : > { %5589 = vpow2.f32 %v2751_v6 }
 0x345   : > { %v6588_v62 = vpop.eup %5585 }
 0x346   : > { %v2701_v26 = vpop.xlane.xlu1 %2700  ;;  %v2780_v41 = vsel %vm2674_vm11, %v6588_v62, 0.0 }
 0x347   : > { %v2731_v43 = vsub.f32 %v6530_v19, %v2701_v26  ;;  %2781 = vadd.xlane.f32.xlu0 %v2780_v41 }
 0x349   : > { %v2755_v46 = vmul.f32 1.442695, %v2731_v43 }
 0x34b   : > { %5591 = vpow2.f32 %v2755_v46 }
 0x34d   : > { %v6593_v1 = vpop.eup %5587 }
 0x34e   : > { %v6595_v16 = vpop.eup %5589  ;;  %v2786_v48 = vsel %vm2674_vm11, %v6593_v1, 0.0 }
 0x34f   : > { %2787 = vadd.xlane.f32.xlu0 %v2786_v48  ;;  %v2789_v45 = vsel %vm2674_vm11, %v6595_v16, 0.0 }
 0x350   : > { %2790 = vadd.xlane.f32.xlu1 %v2789_v45 }
 0x355   : > { %v6601_v37 = vpop.eup %5591 }
 0x356   : > { %v2795_v19 = vsel %vm2674_vm11, %v6601_v37, 0.0 }
 0x357   : > { %2796 = vadd.xlane.f32.xlu1 %v2795_v19 }
 0x366   : > { %v2698_v10 = vpop.xlane.xlu0 %2697 }
 0x367   : > { %v2730_v57 = vsub.f32 %v6534_v35, %v2698_v10 }
 0x369   : > { %v2753_v32 = vmul.f32 1.442695, %v2730_v57 }
 0x36b   : > { %5593 = vpow2.f32 %v2753_v32 }
 0x36e   : > { %v2704_v30 = vpop.xlane.xlu0 %2703  ;;  %v2707_v40 = vpop.xlane.xlu1 %2706 }
 0x36f   : > { %v2732_v15 = vsub.f32 %v6538_v58, %v2704_v30  ;;  %v2733_v13 = vsub.f32 %v6540_v0, %v2707_v40 }
 0x371   : > { %v2757_v14 = vmul.f32 1.442695, %v2732_v15  ;;  %v2759_v34 = vmul.f32 1.442695, %v2733_v13 }
 0x373   : > { %5595 = vpow2.f32 %v2757_v14 }
 0x374   : > { %5597 = vpow2.f32 %v2759_v34 }
 0x375   : > { %v6608_v12 = vpop.eup %5593 }
 0x376   : > { %v2713_v55 = vpop.xlane.xlu1 %2712  ;;  %v2792_v63 = vsel %vm2674_vm11, %v6608_v12, 0.0 }
 0x377   : > { %v2735_v35 = vsub.f32 %v6546_v17, %v2713_v55  ;;  %2793 = vadd.xlane.f32.xlu0 %v2792_v63 }
 0x379   : > { %v2763_v42 = vmul.f32 1.442695, %v2735_v35 }
 0x37b   : > { %5599 = vpow2.f32 %v2763_v42 }
 0x37d   : > { %v6613_v60 = vpop.eup %5595 }
 0x37e   : > { %v6615_v58 = vpop.eup %5597  ;;  %v2798_v0 = vsel %vm2674_vm11, %v6613_v60, 0.0 }
 0x37f   : > { %2799 = vadd.xlane.f32.xlu0 %v2798_v0  ;;  %v2801_v61 = vsel %vm2674_vm11, %v6615_v58, 0.0 }
 0x380   : > { %2802 = vadd.xlane.f32.xlu1 %v2801_v61 }
 0x385   : > { %v6621_v2 = vpop.eup %5599 }
 0x386   : > { %v2807_v17 = vsel %vm2674_vm11, %v6621_v2, 0.0 }
 0x387   : > { %2808 = vadd.xlane.f32.xlu1 %v2807_v17 }
 0x38f   : > { %v2710_v22 = vpop.xlane.xlu0 %2709 }
 0x390   : > { %v2734_v39 = vsub.f32 %v6550_v29, %v2710_v22 }
 0x392   : > { %v2761_v18 = vmul.f32 1.442695, %v2734_v39 }
 0x394   : > { %5601 = vpow2.f32 %v2761_v18 }
 0x397   : > { %v2716_v59 = vpop.xlane.xlu0 %2715  ;;  %v2719_v4 = vpop.xlane.xlu1 %2718 }
 0x398   : > { %v2736_v5 = vsub.f32 %v6554_v27, %v2716_v59  ;;  %v2737_v6 = vsub.f32 %v6556_v36, %v2719_v4 }
 0x39a   : > { %v2765_v26 = vmul.f32 1.442695, %v2736_v5  ;;  %v2767_v41 = vmul.f32 1.442695, %v2737_v6 }
 0x39b   : > { %v2773_v43 = vpop.xlane.xlu1 %2772 }
 0x39c   : > { %5603 = vpow2.f32 %v2765_v26 }
 0x39d   : > { %5605 = vpow2.f32 %v2767_v41 }
 0x39e   : > { %v6628_v46 = vpop.eup %5601  ;;  %5607 = vrcp.f32 %v2773_v43 }
 0x39f   : > { %v2804_v48 = vsel %vm2674_vm11, %v6628_v46, 0.0 }
 0x3a0   : > { %2805 = vadd.xlane.f32.xlu0 %v2804_v48 }
 0x3a3   : > { %v2722_v29 = vpop.xlane.xlu0 %2721 }
 0x3a4   : > { %v2738_v45 = vsub.f32 %v6568_v44, %v2722_v29 }
 0x3a6   : > { %v6633_v19 = vpop.eup %5603  ;;  %v2769_v27 = vmul.f32 1.442695, %v2738_v45 }
 0x3a7   : > { %v6635_v10 = vpop.eup %5605  ;;  %v2810_v36 = vsel %vm2674_vm11, %v6633_v19, 0.0 }
 0x3a8   : > { %v5608_v57 = vpop.eup %5607  ;;  %5609 = vpow2.f32 %v2769_v27  ;;  %2811 = vadd.xlane.f32.xlu0 %v2810_v36  ;;  %v2813_v32 = vsel %vm2674_vm11, %v6635_v10, 0.0  ;;  %v2776_v30 = vpop.xlane.xlu0 %2775 }
 0x3a9   : > { %v2820_v40 = vmul.f32 %v5608_v57, %v6562_v33  ;;  %2814 = vadd.xlane.f32.xlu1 %v2813_v32  ;;  %5611 = vrcp.f32 %v2776_v30 }
 0x3ab   : > { %v2851_v44 = vsel %vm2674_vm11, %v2820_v40, 0.0  ;;  %5303 = vmatmul.mubr.msk.f32.vlgmr.msra.gmra.mrb[22].mxu1 %vm2674_vm11, %v2820_v40 }
 0x3ac   : > { %v2852_v15 = vrot.slane %v2851_v44, 4  ;;  %5487 = vmatpush3.bf16.msra.mxu1 %v6207_v31  ;;  %5309 = vmatprep.mubr.msk.f32.mxu1 %vm5674_vm10, %v5669_v7 }
 0x3ad   : > { %5491 = vmatprep.subr.bf16.mxu1 %v5671_v51 }
 0x3ae   : > { %v2853_v13 = vadd.f32 %v2852_v15, %v2851_v44 }
 0x3b0   : > { %v2779_v14 = vpop.xlane.xlu1 %2778  ;;  %v2854_v55 = vrot.slane %v2853_v13, 2 }
 0x3b1   : > { %5613 = vrcp.f32 %v2779_v14 }
 0x3b2   : > { %v6648_v34 = vpop.eup %5609  ;;  %v2855_v42 = vadd.f32 %v2854_v55, %v2853_v13 }
 0x3b3   : > { %v5612_v33 = vpop.eup %5611  ;;  %v2816_v63 = vsel %vm2674_vm11, %v6648_v34, 0.0 }
 0x3b4   : > { %v2822_v35 = vmul.f32 %v5612_v33, %v6572_v53  ;;  %2817 = vadd.xlane.f32.xlu0 %v2816_v63  ;;  %v2856_v39 = vrot.slane %v2855_v42, 1 }
 0x3b6   : > { %v2858_v31 = vsel %vm2674_vm11, %v2822_v35, 0.0  ;;  %5310 = vmatmul.mubr.msk.f32.vlgmr.msra.gmra.mrb[24].mxu1 %vm2674_vm11, %v2822_v35  ;;  %v2857_v5 = vadd.f32 %v2856_v39, %v2855_v42 }
 0x3b7   : > { %v2859_v0 = vrot.slane %v2858_v31, 4  ;;  %5493 = vmatpush3.bf16.msra.mxu1 %v6139_v3  ;;  %5323 = vmatprep.mubr.msk.f32.mxu1 %vm5674_vm10, %v5669_v7 }
 0x3b8   : > { %v2785_v61 = vpop.xlane.xlu1 %2784  ;;  %5497 = vmatprep.subr.bf16.mxu1 %v5671_v51  ;;  %v2964_v48 = vmul.f32 0.125, %v2857_v5 }
 0x3b9   : > { %v2860_v17 = vadd.f32 %v2859_v0, %v2858_v31  ;;  %5615 = vrcp.f32 %v2785_v61 }
 0x3bb   : > { %v5614_v22 = vpop.eup %5613  ;;  %v2861_v53 = vrot.slane %v2860_v17, 2 }
 0x3bc   : > { %v2824_v18 = vmul.f32 %v5614_v22, %v6577_v25 }
 0x3bd   : > { %v2862_v59 = vadd.f32 %v2861_v53, %v2860_v17 }
 0x3be   : > { %v2865_v4 = vsel %vm2674_vm11, %v2824_v18, 0.0  ;;  %5317 = vmatmul.mubr.msk.f32.vlgmr.msra.gmra.mrb[14].mxu0 %vm2674_vm11, %v2824_v18 }
 0x3bf   : > { %v2863_v3 = vrot.slane %v2862_v59, 1  ;;  %v2866_v6 = vrot.slane %v2865_v4, 4  ;;  %5496 = vmatpush3.bf16.msra.mxu0 %v6276_v23  ;;  %5330 = vmatprep.mubr.msk.f32.mxu0 %vm5674_vm10, %v5669_v7 }
 0x3c0   : > { %5500 = vmatprep.subr.bf16.mxu0 %v5671_v51 }
 0x3c1   : > { %v2864_v26 = vadd.f32 %v2863_v3, %v2862_v59  ;;  %v2867_v41 = vadd.f32 %v2866_v6, %v2865_v4 }
 0x3c3   : > { %v5616_v43 = vpop.eup %5615  ;;  %v2965_v25 = vmul.f32 0.125, %v2864_v26  ;;  %v2868_v29 = vrot.slane %v2867_v41, 2 }
 0x3c4   : > { %v2828_v45 = vmul.f32 %v5616_v43, %v6581_v56 }
 0x3c5   : > { %v2869_v27 = vadd.f32 %v2868_v29, %v2867_v41  ;;  %v4888_v36 = vsel %vm515_vm1, %v2965_v25, %v2964_v48 }
 0x3c6   : > { %5331 = vmatmul.mubr.msk.f32.vlgmr.msra.gmra.mrb[16].mxu0 %vm2674_vm11, %v2828_v45  ;;  %v2879_v56 = vsel %vm2674_vm11, %v2828_v45, 0.0 }
 0x3c7   : > { %v2870_v57 = vrot.slane %v2869_v27, 1  ;;  %5502 = vmatpush3.bf16.msra.mxu0 %v6297_v8  ;;  %5344 = vmatprep.mubr.msk.f32.mxu0 %vm5674_vm10, %v5669_v7  ;;  %v2880_v44 = vrot.slane %v2879_v56, 4 }
 0x3c8   : > { %5506 = vmatprep.subr.bf16.mxu0 %v5671_v51 }
 0x3c9   : > { %v2871_v23 = vadd.f32 %v2870_v57, %v2869_v27  ;;  %v2881_v15 = vadd.f32 %v2880_v44, %v2879_v56 }
 0x3cb   : > { %v2966_v32 = vmul.f32 0.125, %v2871_v23  ;;  %v2882_v33 = vrot.slane %v2881_v15, 2 }
 0x3cd   : > { %v4889_v30 = vsel %vm517_vm2, %v2966_v32, %v4888_v36  ;;  %v2883_v31 = vadd.f32 %v2882_v33, %v2881_v15 }
 0x3cf   : > { %v2884_v39 = vrot.slane %v2883_v31, 1 }
 0x3d4   : > { %v2782_v40 = vpop.xlane.xlu0 %2781 }
 0x3d5   : > { %5617 = vrcp.f32 %v2782_v40 }
 0x3dc   : > { %v2788_v13 = vpop.xlane.xlu0 %2787 }
 0x3dd   : > { %5619 = vrcp.f32 %v2788_v13  ;;  %v2791_v14 = vpop.xlane.xlu1 %2790 }
 0x3de   : > { %5621 = vrcp.f32 %v2791_v14 }
 0x3df   : > { %v5618_v8 = vpop.eup %5617 }
 0x3e0   : > { %v2826_v55 = vmul.f32 %v5618_v8, %v6588_v62 }
 0x3e2   : > { %v2872_v63 = vsel %vm2674_vm11, %v2826_v55, 0.0  ;;  %5324 = vmatmul.mubr.msk.f32.vlgmr.msra.gmra.mrb[26].mxu1 %vm2674_vm11, %v2826_v55 }
 0x3e3   : > { %v2873_v35 = vrot.slane %v2872_v63, 4  ;;  %5499 = vmatpush3.bf16.msra.mxu1 %v6335_v47  ;;  %5337 = vmatprep.mubr.msk.f32.mxu1 %vm5674_vm10, %v5669_v7 }
 0x3e4   : > { %v2797_v42 = vpop.xlane.xlu1 %2796  ;;  %5503 = vmatprep.subr.bf16.mxu1 %v5671_v51 }
 0x3e5   : > { %v2874_v0 = vadd.f32 %v2873_v35, %v2872_v63  ;;  %5623 = vrcp.f32 %v2797_v42 }
 0x3e7   : > { %v5620_v61 = vpop.eup %5619  ;;  %v2875_v17 = vrot.slane %v2874_v0, 2 }
 0x3e8   : > { %v5622_v22 = vpop.eup %5621  ;;  %v2830_v62 = vmul.f32 %v5620_v61, %v6593_v1  ;;  %v2885_v1 = vadd.f32 %v2884_v39, %v2883_v31 }
 0x3e9   : > { %v2876_v53 = vadd.f32 %v2875_v17, %v2874_v0  ;;  %v2832_v18 = vmul.f32 %v5622_v22, %v6595_v16 }
 0x3ea   : > { %v2886_v47 = vsel %vm2674_vm11, %v2830_v62, 0.0  ;;  %5338 = vmatmul.mubr.msk.f32.vlgmr.msra.gmra.mrb[28].mxu1 %vm2674_vm11, %v2830_v62  ;;  %v2968_v25 = vmul.f32 0.125, %v2885_v1 }
 0x3eb   : > { %v2877_v59 = vrot.slane %v2876_v53, 1  ;;  %v2887_v4 = vrot.slane %v2886_v47, 4  ;;  %v2893_v5 = vsel %vm2674_vm11, %v2832_v18, 0.0  ;;  %5345 = vmatmul.mubr.msk.f32.vlgmr.msra.gmra.mrb[18].mxu0 %vm2674_vm11, %v2832_v18  ;;  %5505 = vmatpush3.bf16.msra.mxu1 %v6354_v54 }
 0x3ec   : > { %v2894_v3 = vrot.slane %v2893_v5, 4  ;;  %5508 = vmatpush3.bf16.msra.mxu0 %v6350_v50  ;;  %5358 = vmatprep.mubr.msk.f32.mxu0 %vm5674_vm10, %v5669_v7 }
 0x3ed   : > { %v2888_v16 = vadd.f32 %v2887_v4, %v2886_v47  ;;  %5351 = vmatprep.mubr.msk.f32.mxu1 %vm5674_vm10, %v5669_v7  ;;  %5509 = vmatprep.subr.bf16.mxu1 %v5671_v51  ;;  %v2878_v6 = vadd.f32 %v2877_v59, %v2876_v53 }
 0x3ee   : > { %v2895_v26 = vadd.f32 %v2894_v3, %v2893_v5  ;;  %5512 = vmatprep.subr.bf16.mxu0 %v5671_v51 }
 0x3ef   : > { %v5624_v41 = vpop.eup %5623  ;;  %v2889_v43 = vrot.slane %v2888_v16, 2  ;;  %v2967_v54 = vmul.f32 0.125, %v2878_v6 }
 0x3f0   : > { %v2836_v48 = vmul.f32 %v5624_v41, %v6601_v37  ;;  %v2896_v50 = vrot.slane %v2895_v26, 2 }
 0x3f1   : > { %v2890_v29 = vadd.f32 %v2889_v43, %v2888_v16  ;;  %v4890_v45 = vsel %vm519_vm3, %v2967_v54, %v4889_v30 }
 0x3f2   : > { %5359 = vmatmul.mubr.msk.f32.vlgmr.msra.gmra.mrb[20].mxu0 %vm2674_vm11, %v2836_v48  ;;  %v2897_v27 = vadd.f32 %v2896_v50, %v2895_v26  ;;  %v4891_v36 = vsel %vm521_vm4, %v2968_v25, %v4890_v45  ;;  %v2907_v13 = vsel %vm2674_vm11, %v2836_v48, 0.0 }
 0x3f3   : > { %5514 = vmatpush3.bf16.msra.mxu0 %v6376_v20  ;;  %5372 = vmatprep.mubr.msk.f32.mxu0 %vm5674_vm10, %v5669_v7  ;;  %v2891_v57 = vrot.slane %v2890_v29, 1  ;;  %v2908_v33 = vrot.slane %v2907_v13, 4 }
 0x3f4   : > { %5518 = vmatprep.subr.bf16.mxu0 %v5671_v51  ;;  %v2898_v23 = vrot.slane %v2897_v27, 1 }
 0x3f5   : > { %v2892_v37 = vadd.f32 %v2891_v57, %v2890_v29  ;;  %v2909_v35 = vadd.f32 %v2908_v33, %v2907_v13 }
 0x3f6   : > { %v2899_v32 = vadd.f32 %v2898_v23, %v2897_v27 }
 0x3f7   : > { %v2969_v40 = vmul.f32 0.125, %v2892_v37  ;;  %v2910_v17 = vrot.slane %v2909_v35, 2 }
 0x3f8   : > { %v2970_v56 = vmul.f32 0.125, %v2899_v32 }
 0x3f9   : > { %v4892_v30 = vsel %vm523_vm5, %v2969_v40, %v4891_v36  ;;  %v2911_v18 = vadd.f32 %v2910_v17, %v2909_v35 }
 0x3fa   : > { %v4893_v44 = vsel %vm525_vm6, %v2970_v56, %v4892_v30 }
 0x3fb   : > { %v2912_v16 = vrot.slane %v2911_v18, 1 }
 0x3fd   : > { %v2913_v48 = vadd.f32 %v2912_v16, %v2911_v18 }
 0x3ff   : > { %v2972_v27 = vmul.f32 0.125, %v2913_v48 }
 0x404   : > { %v2794_v15 = vpop.xlane.xlu0 %2793 }
 0x405   : > { %5625 = vrcp.f32 %v2794_v15 }
 0x40c   : > { %v2800_v20 = vpop.xlane.xlu0 %2799 }
 0x40d   : > { %5627 = vrcp.f32 %v2800_v20  ;;  %v2803_v14 = vpop.xlane.xlu1 %2802 }
 0x40e   : > { %5629 = vrcp.f32 %v2803_v14 }
 0x40f   : > { %v5626_v8 = vpop.eup %5625 }
 0x410   : > { %v2834_v55 = vmul.f32 %v5626_v8, %v6608_v12 }
 0x412   : > { %5352 = vmatmul.mubr.msk.f32.vlgmr.msra.gmra.mrb[30].mxu1 %vm2674_vm11, %v2834_v55  ;;  %v2900_v63 = vsel %vm2674_vm11, %v2834_v55, 0.0 }
 0x413   : > { %5511 = vmatpush3.bf16.msra.mxu1 %v6403_v28  ;;  %5365 = vmatprep.mubr.msk.f32.mxu1 %vm5674_vm10, %v5669_v7  ;;  %v2901_v31 = vrot.slane %v2900_v63, 4 }
 0x414   : > { %v2809_v42 = vpop.xlane.xlu1 %2808  ;;  %5515 = vmatprep.subr.bf16.mxu1 %v5671_v51 }
 0x415   : > { %5631 = vrcp.f32 %v2809_v42  ;;  %v2902_v0 = vadd.f32 %v2901_v31, %v2900_v63 }
 0x417   : > { %v5628_v61 = vpop.eup %5627  ;;  %v2903_v22 = vrot.slane %v2902_v0, 2 }
 0x418   : > { %v5630_v12 = vpop.eup %5629  ;;  %v2838_v62 = vmul.f32 %v5628_v61, %v6613_v60 }
 0x419   : > { %v2840_v39 = vmul.f32 %v5630_v12, %v6615_v58  ;;  %v2904_v53 = vadd.f32 %v2903_v22, %v2902_v0 }
 0x41a   : > { %v2914_v28 = vsel %vm2674_vm11, %v2838_v62, 0.0  ;;  %5366 = vmatmul.mubr.msk.f32.vlgmr.msra.gmra.mrb[32].mxu1 %vm2674_vm11, %v2838_v62 }
 0x41b   : > { %v2915_v47 = vrot.slane %v2914_v28, 4  ;;  %v2921_v59 = vsel %vm2674_vm11, %v2840_v39, 0.0  ;;  %5373 = vmatmul.mubr.msk.f32.vlgmr.msra.gmra.mrb[22].mxu0 %vm2674_vm11, %v2840_v39  ;;  %5517 = vmatpush3.bf16.msra.mxu1 %v6422_v38  ;;  %v2905_v4 = vrot.slane %v2904_v53, 1 }
 0x41c   : > { %v2922_v5 = vrot.slane %v2921_v59, 4  ;;  %5520 = vmatpush3.bf16.msra.mxu0 %v6418_v9  ;;  %5386 = vmatprep.mubr.msk.f32.mxu0 %vm5674_vm10, %v5669_v7 }
 0x41d   : > { %v2916_v60 = vadd.f32 %v2915_v47, %v2914_v28  ;;  %5379 = vmatprep.mubr.msk.f32.mxu1 %vm5674_vm10, %v5669_v7  ;;  %5521 = vmatprep.subr.bf16.mxu1 %v5671_v51  ;;  %v2906_v58 = vadd.f32 %v2905_v4, %v2904_v53 }
 0x41e   : > { %v2923_v3 = vadd.f32 %v2922_v5, %v2921_v59  ;;  %5524 = vmatprep.subr.bf16.mxu0 %v5671_v51 }
 0x41f   : > { %v5632_v1 = vpop.eup %5631  ;;  %v2917_v38 = vrot.slane %v2916_v60, 2  ;;  %v2971_v6 = vmul.f32 0.125, %v2906_v58 }
 0x420   : > { %v2924_v26 = vrot.slane %v2923_v3, 2  ;;  %v2844_v9 = vmul.f32 %v5632_v1, %v6621_v2 }
 0x421   : > { %v2918_v41 = vadd.f32 %v2917_v38, %v2916_v60  ;;  %v6730_v43 = vsel %vm527_vm7, %v2971_v6, %v4893_v44 }
 0x422   : > { %v2925_v54 = vadd.f32 %v2924_v26, %v2923_v3  ;;  %5387 = vmatmul.mubr.msk.f32.vlgmr.msra.gmra.mrb[24].mxu0 %vm2674_vm11, %v2844_v9  ;;  %v2935_v32 = vsel %vm2674_vm11, %v2844_v9, 0.0 }
 0x423   : > { %v2919_v50 = vrot.slane %v2918_v41, 1  ;;  %5526 = vmatpush3.bf16.msra.mxu0 %v6444_v52  ;;  %5400 = vmatprep.mubr.msk.f32.mxu0 %vm5674_vm10, %v5669_v7  ;;  %v2936_v40 = vrot.slane %v2935_v32, 4 }
 0x424   : > { %v2926_v25 = vrot.slane %v2925_v54, 1 }
 0x425   : > { %v2920_v29 = vadd.f32 %v2919_v50, %v2918_v41  ;;  %v2937_v56 = vadd.f32 %v2936_v40, %v2935_v32 }
 0x426   : > { %v2927_v45 = vadd.f32 %v2926_v25, %v2925_v54 }
 0x427   : > { %v2973_v36 = vmul.f32 0.125, %v2920_v29  ;;  %v2938_v15 = vrot.slane %v2937_v56, 2 }
 0x428   : > { %v2974_v2 = vmul.f32 0.125, %v2927_v45 }
 0x429   : > { %v4895_v57 = vsel %vm515_vm1, %v2973_v36, %v2972_v27  ;;  %v2939_v8 = vadd.f32 %v2938_v15, %v2937_v56  ;;  %v4723_v15 = vld [vmem:[%s7160_s3 + $0x80] sm:$0xff] }
 0x42a   : > { %v4896_v23 = vsel %vm517_vm2, %v2974_v2, %v4895_v57 }
 0x42b   : > { %v2940_v42 = vrot.slane %v2939_v8, 1 }
 0x42d   : > { %v2806_v37 = vpop.xlane.xlu0 %2805 }
 0x42e   : > { %5633 = vrcp.f32 %v2806_v37 }
 0x435   : > { %v2812_v52 = vpop.xlane.xlu0 %2811 }
 0x436   : > { %5635 = vrcp.f32 %v2812_v52  ;;  %v2815_v30 = vpop.xlane.xlu1 %2814 }
 0x437   : > { %5637 = vrcp.f32 %v2815_v30 }
 0x438   : > { %v5634_v44 = vpop.eup %5633 }
 0x439   : > { %v2842_v13 = vmul.f32 %v5634_v44, %v6628_v46 }
 0x43b   : > { %v2928_v20 = vsel %vm2674_vm11, %v2842_v13, 0.0  ;;  %5380 = vmatmul.mubr.msk.f32.vlgmr.msra.gmra.mrb[34].mxu1 %vm2674_vm11, %v2842_v13  ;;  %v4724_v13 = vld [vmem:[%s7160_s3 + $0x88] sm:$0xff] }
 0x43c   : > { %v2929_v14 = vrot.slane %v2928_v20, 4  ;;  %5523 = vmatpush3.bf16.msra.mxu1 %v6467_v21  ;;  %5393 = vmatprep.mubr.msk.f32.mxu1 %vm5674_vm10, %v5669_v7 }
 0x43d   : > { %5527 = vmatprep.subr.bf16.mxu1 %v5671_v51 }
 0x43e   : > { %v2930_v33 = vadd.f32 %v2929_v14, %v2928_v20  ;;  %v4707_v20 = vld [vmem:[%s7160_s3] sm:$0xff]  ;;  %v5530_v14 = vpack.c.bf16 %v4724_v13, %v4723_v15 }
 0x440   : > { %v5636_v55 = vpop.eup %5635  ;;  %v2931_v63 = vrot.slane %v2930_v33, 2  ;;  %5531 = vmatprep.subr.bf16.mxu0 %v5530_v14 }
 0x441   : > { %v5638_v35 = vpop.eup %5637  ;;  %v2846_v31 = vmul.f32 %v5636_v55, %v6633_v19  ;;  %v2818_v46 = vpop.xlane.xlu0 %2817  ;;  %v2941_v19 = vadd.f32 %v2940_v42, %v2939_v8  ;;  %v4708_v8 = vld [vmem:[%s7160_s3 + $0x8] sm:$0xff]  ;;  %v4726_v55 = vld [vmem:[%s7160_s3 + $0x98] sm:$0xff]  ;;  %v4727_v42 = vld [vmem:[%s7160_s3 + $0xa0] sm:$0xff] }
 0x442   : > { %v2932_v0 = vadd.f32 %v2931_v63, %v2930_v33  ;;  %v2848_v61 = vmul.f32 %v5638_v35, %v6635_v10  ;;  %5639 = vrcp.f32 %v2818_v46  ;;  %v4725_v33 = vld [vmem:[%s7160_s3 + $0x90] sm:$0xff]  ;;  %v5532_v63 = vpack.c.bf16 %v4708_v8, %v4707_v20  ;;  %v4710_v46 = vld [vmem:[%s7160_s3 + $0x18] sm:$0xff] }
 0x443   : > { %v2942_v21 = vsel %vm2674_vm11, %v2846_v31, 0.0  ;;  %5394 = vmatmul.mubr.msk.f32.vlgmr.msra.gmra.mrb[36].mxu1 %vm2674_vm11, %v2846_v31  ;;  %v2976_v47 = vmul.f32 0.125, %v2941_v19  ;;  %v5534_v35 = vpack.c.bf16 %v4726_v55, %v4725_v33  ;;  %v4709_v31 = vld [vmem:[%s7160_s3 + $0x10] sm:$0xff] }
 0x444   : > { %v2933_v17 = vrot.slane %v2932_v0, 1  ;;  %v2943_v22 = vrot.slane %v2942_v21, 4  ;;  %v2949_v51 = vsel %vm2674_vm11, %v2848_v61, 0.0  ;;  %5401 = vmatmul.mubr.msk.f32.vlgmr.msra.gmra.mrb[26].mxu0 %vm2674_vm11, %v2848_v61  ;;  %5529 = vmatpush3.bf16.msra.mxu1 %v6482_v24  ;;  %v5536_v61 = vpack.c.bf16 %v4710_v46, %v4709_v31 }
 0x445   : > { %v2950_v12 = vrot.slane %v2949_v51, 4  ;;  %5407 = vmatprep.mubr.msk.f32.mxu1 %vm5674_vm10, %v5669_v7  ;;  %5533 = vmatpush3.bf16.msra.mxu0 %v5532_v63 }
 0x446   : > { %v2944_v62 = vadd.f32 %v2943_v22, %v2942_v21  ;;  %v2934_v10 = vadd.f32 %v2933_v17, %v2932_v0  ;;  %v4728_v0 = vld [vmem:[%s7160_s3 + $0xa8] sm:$0xff]  ;;  %5535 = vmatprep.subr.bf16.mxu0 %v5534_v35  ;;  %v4711_v17 = vld [vmem:[%s7160_s3 + $0x20] sm:$0xff] }
 0x447   : > { %v2951_v39 = vadd.f32 %v2950_v12, %v2949_v51  ;;  %v5538_v21 = vpack.c.bf16 %v4728_v0, %v4727_v42  ;;  %v4712_v22 = vld [vmem:[%s7160_s3 + $0x28] sm:$0xff] }
 0x448   : > { %v2945_v53 = vrot.slane %v2944_v62, 2  ;;  %v2975_v28 = vmul.f32 0.125, %v2934_v10 }
 0x449   : > { %v2952_v18 = vrot.slane %v2951_v39, 2  ;;  %5537 = vmatpush3.bf16.msra.mxu0 %v5536_v61 }
 0x44a   : > { %v2946_v59 = vadd.f32 %v2945_v53, %v2944_v62  ;;  %v4897_v4 = vsel %vm519_vm3, %v2975_v28, %v4896_v23  ;;  %v5540_v62 = vpack.c.bf16 %v4712_v22, %v4711_v17  ;;  %5539 = vmatprep.subr.bf16.mxu0 %v5538_v21 }
 0x44b   : > { %v2953_v5 = vadd.f32 %v2952_v18, %v2951_v39  ;;  %v4898_v60 = vsel %vm521_vm4, %v2976_v47, %v4897_v4 }
 0x44c   : > { %v5640_v58 = vpop.eup %5639  ;;  %v2947_v24 = vrot.slane %v2946_v59, 1 }
 0x44d   : > { %v2850_v3 = vmul.f32 %v5640_v58, %v6648_v34  ;;  %v2954_v1 = vrot.slane %v2953_v5, 1  ;;  %5541 = vmatpush3.bf16.msra.mxu0 %v5540_v62 }
 0x44e   : > { %v2948_v16 = vadd.f32 %v2947_v24, %v2946_v59 }
 0x44f   : > { %5408 = vmatmul.mubr.msk.f32.vlgmr.msra.gmra.mrb[38].mxu1 %vm2674_vm11, %v2850_v3  ;;  %v2955_v38 = vadd.f32 %v2954_v1, %v2953_v5  ;;  %v2956_v6 = vsel %vm2674_vm11, %v2850_v3, 0.0 }
 0x450   : > { %v2957_v26 = vrot.slane %v2956_v6, 4  ;;  %v2977_v9 = vmul.f32 0.125, %v2948_v16 }
 0x451   : > { %v2978_v41 = vmul.f32 0.125, %v2955_v38 }
 0x452   : > { %v2958_v54 = vadd.f32 %v2957_v26, %v2956_v6  ;;  %v4899_v48 = vsel %vm523_vm5, %v2977_v9, %v4898_v60 }
 0x453   : > { %v4900_v50 = vsel %vm525_vm6, %v2978_v41, %v4899_v48 }
 0x454   : > { %v2959_v25 = vrot.slane %v2958_v54, 2 }
 0x456   : > { %v2960_v29 = vadd.f32 %v2959_v25, %v2958_v54 }
 0x458   : > { %v2961_v45 = vrot.slane %v2960_v29, 1 }
 0x45a   : > { %v2962_v27 = vadd.f32 %v2961_v45, %v2960_v29 }
 0x45c   : > { %v2979_v34 = vmul.f32 0.125, %v2962_v27 }
 0x45e   : > { %v6763_v36 = vsel %vm527_vm7, %v2979_v34, %v4900_v50 }
 0x47e   : > { %v3049_v2 = vpop.f32.mrb[22].mxu1 }
 0x47f   : > { %4148 = vst.msk [vmem:[#allocation2] sm:$0xff] %vm317_vm0, %v3049_v2  ;;  %v5304_v57 = vpop.f32.mrb[23].mxu1 }
 0x486   : > { %v4499_v48 = vld [vmem:[#allocation2 + $0x5] sm:$0x1]  ;;  %v4228_v25 = vld [vmem:[#allocation2 + $0x1] sm:$0x1]  ;;  %v4567_v45 = vld [vmem:[#allocation2 + $0x6] sm:$0x1] }
 0x487   : > { %v4635_v27 = vld [vmem:[#allocation2 + $0x7] sm:$0x1] }
 0x489   : > { %v3122_v23 = vpop.f32.mrb[24].mxu1 }
 0x48a   : > { %4149 = vst.msk [vmem:[#allocation2 + $0x8] sm:$0xff] %vm317_vm0, %v3122_v23  ;;  %v5311_v37 = vpop.f32.mrb[25].mxu1 }
 0x491   : > { %v3195_v32 = vpop.f32.mrb[14].mxu0  ;;  %v4500_v28 = vld [vmem:[#allocation2 + $0xd] sm:$0x1]  ;;  %v4229_v18 = vld [vmem:[#allocation2 + $0x9] sm:$0x1] }
 0x492   : > { %4150 = vst.msk [vmem:[#allocation2 + $0x10] sm:$0xff] %vm317_vm0, %v3195_v32  ;;  %v5318_v40 = vpop.f32.mrb[15].mxu0  ;;  %v4568_v47 = vld [vmem:[#allocation2 + $0xe] sm:$0x1]  ;;  %v4636_v59 = vld [vmem:[#allocation2 + $0xf] sm:$0x1] }
 0x493   : > { %v4298_v4 = vld [vmem:[#allocation2 + $0xa] sm:$0x1]  ;;  %v4367_v5 = vld [vmem:[#allocation2 + $0xb] sm:$0x1]  ;;  %v4436_v60 = vld [vmem:[#allocation2 + $0xc] sm:$0x1] }
 0x494   : > { %v4165_v3 = vld [vmem:[#allocation2 + $0x8] sm:$0x1]  ;;  %v4531_v1 = vrot.slane %v4500_v28, 7  ;;  %v4260_v16 = vrot.slane %v4229_v18, 7  ;;  %v4599_v26 = vrot.slane %v4568_v47, 7  ;;  %v4667_v9 = vrot.slane %v4636_v59, 7 }
 0x495   : > { %v4329_v41 = vrot.slane %v4298_v4, 7  ;;  %v4398_v54 = vrot.slane %v4367_v5, 7  ;;  %v4467_v2 = vrot.slane %v4436_v60, 7  ;;  %v4196_v57 = vrot.slane %v4165_v3, 7  ;;  %v4297_v32 = vld [vmem:[#allocation2 + $0x2] sm:$0x1] }
 0x496   : > { %v4366_v40 = vld [vmem:[#allocation2 + $0x3] sm:$0x1]  ;;  %v4532_v8 = vsel %vm515_vm1, %v4531_v1, %v4499_v48  ;;  %v4261_v55 = vsel %vm515_vm1, %v4260_v16, %v4228_v25  ;;  %v4600_v35 = vsel %vm515_vm1, %v4599_v26, %v4567_v45  ;;  %v4668_v31 = vsel %vm515_vm1, %v4667_v9, %v4635_v27 }
 0x497   : > { %v4330_v61 = vsel %vm515_vm1, %v4329_v41, %v4297_v32  ;;  %v4399_v21 = vsel %vm515_vm1, %v4398_v54, %v4366_v40 }
 0x499   : > { %v3341_v56 = vpop.f32.mrb[16].mxu0  ;;  %v4501_v58 = vld [vmem:[#allocation2 + $0x15] sm:$0x1]  ;;  %v4230_v24 = vld [vmem:[#allocation2 + $0x11] sm:$0x1] }
 0x49a   : > { %4152 = vst.msk [vmem:[#allocation2 + $0x20] sm:$0xff] %vm317_vm0, %v3341_v56  ;;  %v5332_v52 = vpop.f32.mrb[17].mxu0  ;;  %v4569_v38 = vld [vmem:[#allocation2 + $0x16] sm:$0x1]  ;;  %v4637_v6 = vld [vmem:[#allocation2 + $0x17] sm:$0x1] }
 0x49b   : > { %v4533_v50 = vrot.slane %v4501_v58, 6  ;;  %v4262_v29 = vrot.slane %v4230_v24, 6  ;;  %v4299_v34 = vld [vmem:[#allocation2 + $0x12] sm:$0x1]  ;;  %v4601_v23 = vrot.slane %v4569_v38, 6  ;;  %v4669_v37 = vrot.slane %v4637_v6, 6 }
 0x49c   : > { %v4368_v56 = vld [vmem:[#allocation2 + $0x13] sm:$0x1]  ;;  %v4435_v52 = vld [vmem:[#allocation2 + $0x4] sm:$0x1]  ;;  %v6815_v20 = vld [vmem:[#allocation2 + $0x10] sm:$0x1] }
 0x49d   : > { %v4468_v17 = vsel %vm515_vm1, %v4467_v2, %v4435_v52  ;;  %v4534_v24 = vsel %vm517_vm2, %v4533_v50, %v4532_v8  ;;  %v4263_v3 = vsel %vm517_vm2, %v4262_v29, %v4261_v55  ;;  %v4602_v1 = vsel %vm517_vm2, %v4601_v23, %v4600_v35  ;;  %v4730_v52 = vld [vmem:[%s7160_s3 + $0xb8] sm:$0xff] }
 0x49e   : > { %v4670_v16 = vsel %vm517_vm2, %v4669_v37, %v4668_v31 }
 0x4a1   : > { %v6811_v15 = vld [vmem:[#allocation2 + $0x25] sm:$0x1]  ;;  %v6813_v13 = vld [vmem:[#allocation2 + $0x21] sm:$0x1]  ;;  %v6821_v46 = vld [vmem:[#allocation2 + $0x26] sm:$0x1] }
 0x4a2   : > { %v4301_v47 = vld [vmem:[#allocation2 + $0x22] sm:$0x1]  ;;  %v4266_v59 = vrot.slane %v6813_v13, 4  ;;  %v4605_v4 = vrot.slane %v6821_v46, 4  ;;  %v6834_v58 = vld [vmem:[#allocation2 + $0x24] sm:$0x1] }
 0x4a3   : > { %v4335_v48 = vrot.slane %v4301_v47, 4  ;;  %v6843_v45 = vld [vmem:[#allocation2 + $0x20] sm:$0x1]  ;;  %v4473_v2 = vrot.slane %v6834_v58, 4 }
 0x4a4   : > { %v4731_v58 = vld [vmem:[%s7160_s3 + $0xc0] sm:$0xff] }
 0x4b5   : > { %v3268_v30 = vpop.f32.mrb[26].mxu1 }
 0x4b6   : > { %4151 = vst.msk [vmem:[#allocation2 + $0x18] sm:$0xff] %vm317_vm0, %v3268_v30  ;;  %v5325_v44 = vpop.f32.mrb[27].mxu1  ;;  %v6809_v30 = vld [vmem:[#allocation2 + $0x14] sm:$0x1] }
 0x4b7   : > { %v4164_v44 = vld [vmem:[#allocation2] sm:$0x1]  ;;  %v4469_v62 = vrot.slane %v6809_v30, 6  ;;  %v4713_v30 = vld [vmem:[%s7160_s3 + $0x30] sm:$0xff] }
 0x4b8   : > { %v4197_v22 = vsel %vm515_vm1, %v4196_v57, %v4164_v44 }
 0x4b9   : > { %v4470_v46 = vsel %vm517_vm2, %v4469_v62, %v4468_v17 }
 0x4bd   : > { %v3414_v51 = vpop.f32.mrb[28].mxu1  ;;  %v4502_v14 = vld [vmem:[#allocation2 + $0x1d] sm:$0x1]  ;;  %v4231_v33 = vld [vmem:[#allocation2 + $0x19] sm:$0x1] }
 0x4be   : > { %4153 = vst.msk [vmem:[#allocation2 + $0x28] sm:$0xff] %vm317_vm0, %v3414_v51  ;;  %v5339_v12 = vpop.f32.mrb[29].mxu1  ;;  %v3487_v19 = vpop.f32.mrb[18].mxu0  ;;  %v4570_v63 = vld [vmem:[#allocation2 + $0x1e] sm:$0x1]  ;;  %v4264_v28 = vrot.slane %v4231_v33, 5 }
 0x4bf   : > { %4154 = vst.msk [vmem:[#allocation2 + $0x30] sm:$0xff] %vm317_vm0, %v3487_v19  ;;  %v5346_v10 = vpop.f32.mrb[19].mxu0  ;;  %v4638_v42 = vld [vmem:[#allocation2 + $0x1f] sm:$0x1]  ;;  %v4300_v0 = vld [vmem:[#allocation2 + $0x1a] sm:$0x1] }
 0x4c0   : > { %v6827_v51 = vld [vmem:[#allocation2 + $0x27] sm:$0x1]  ;;  %v4331_v12 = vrot.slane %v4299_v34, 6  ;;  %v4400_v19 = vrot.slane %v4368_v56, 6  ;;  %v4198_v10 = vrot.slane %v6815_v20, 6  ;;  %v4603_v18 = vrot.slane %v4570_v63, 5 }
 0x4c1   : > { %v4671_v5 = vrot.slane %v4638_v42, 5  ;;  %v4333_v60 = vrot.slane %v4300_v0, 5  ;;  %v4369_v38 = vld [vmem:[#allocation2 + $0x1b] sm:$0x1]  ;;  %v4438_v6 = vld [vmem:[#allocation2 + $0x1c] sm:$0x1]  ;;  %v4265_v27 = vsel %vm519_vm3, %v4264_v28, %v4263_v3 }
 0x4c2   : > { %v4167_v26 = vld [vmem:[#allocation2 + $0x18] sm:$0x1]  ;;  %v4673_v41 = vrot.slane %v6827_v51, 4  ;;  %v4332_v54 = vsel %vm517_vm2, %v4331_v12, %v4330_v61  ;;  %v4401_v25 = vsel %vm517_vm2, %v4400_v19, %v4399_v21  ;;  %v4604_v34 = vsel %vm519_vm3, %v4603_v18, %v4602_v1  ;;  %v4729_v56 = vld [vmem:[%s7160_s3 + $0xb0] sm:$0xff]  ;;  %v4715_v3 = vld [vmem:[%s7160_s3 + $0x40] sm:$0xff] }
 0x4c3   : > { %v4672_v23 = vsel %vm519_vm3, %v4671_v5, %v4670_v16  ;;  %v4402_v37 = vrot.slane %v4369_v38, 5  ;;  %v4471_v32 = vrot.slane %v4438_v6, 5  ;;  %v4200_v40 = vrot.slane %v4167_v26, 5  ;;  %v4714_v33 = vld [vmem:[%s7160_s3 + $0x38] sm:$0xff]  ;;  %v4716_v26 = vld [vmem:[%s7160_s3 + $0x48] sm:$0xff] }
 0x4c4   : > { %v4334_v20 = vsel %vm519_vm3, %v4333_v60, %v4332_v54  ;;  %v5542_v8 = vpack.c.bf16 %v4730_v52, %v4729_v56  ;;  %v4199_v42 = vsel %vm517_vm2, %v4198_v10, %v4197_v22  ;;  %v5544_v0 = vpack.c.bf16 %v4714_v33, %v4713_v30 }
 0x4c5   : > { %v3633_v39 = vpop.f32.mrb[20].mxu0  ;;  %v4504_v9 = vld [vmem:[#allocation2 + $0x2d] sm:$0x1]  ;;  %v4233_v29 = vld [vmem:[#allocation2 + $0x29] sm:$0x1]  ;;  %v4267_v21 = vsel %vm521_vm4, %v4266_v59, %v4265_v27  ;;  %v4606_v51 = vsel %vm521_vm4, %v4605_v4, %v4604_v34  ;;  %v6880_v18 = vsel %vm521_vm4, %v4335_v48, %v4334_v20  ;;  %v6883_v17 = vsel %vm519_vm3, %v4402_v37, %v4401_v25  ;;  %v4717_v37 = vld [vmem:[%s7160_s3 + $0x50] sm:$0xff] }
 0x4c6   : > { %4156 = vst.msk [vmem:[#allocation2 + $0x40] sm:$0xff] %vm317_vm0, %v3633_v39  ;;  %v5360_v53 = vpop.f32.mrb[21].mxu0  ;;  %v4535_v39 = vrot.slane %v4502_v14, 5  ;;  %v6849_v57 = vld [vmem:[#allocation2 + $0x35] sm:$0x1]  ;;  %v4202_v14 = vrot.slane %v6843_v45, 4  ;;  %5543 = vmatprep.subr.bf16.mxu0 %v5542_v8  ;;  %v4472_v62 = vsel %vm519_vm3, %v4471_v32, %v4470_v46  ;;  %v4201_v47 = vsel %vm519_vm3, %v4200_v40, %v4199_v42 }
 0x4c7   : > { %v4537_v53 = vrot.slane %v6811_v15, 4  ;;  %v4539_v15 = vrot.slane %v4504_v9, 3  ;;  %v4234_v13 = vld [vmem:[#allocation2 + $0x31] sm:$0x1]  ;;  %v4268_v63 = vrot.slane %v4233_v29, 3  ;;  %5545 = vmatpush3.bf16.msra.mxu0 %v5544_v0  ;;  %v4541_v4 = vrot.slane %v6849_v57, 2 }
 0x4c8   : > { %v4536_v50 = vsel %vm519_vm3, %v4535_v39, %v4534_v24  ;;  %v4572_v35 = vld [vmem:[#allocation2 + $0x2e] sm:$0x1]  ;;  %v6867_v31 = vld [vmem:[#allocation2 + $0x36] sm:$0x1]  ;;  %v4640_v12 = vld [vmem:[#allocation2 + $0x2f] sm:$0x1]  ;;  %v4674_v39 = vsel %vm521_vm4, %v4673_v41, %v4672_v23  ;;  %v4474_v41 = vsel %vm521_vm4, %v4473_v2, %v4472_v62  ;;  %v5548_v45 = vpack.c.bf16 %v4716_v26, %v4715_v3 }
 0x4c9   : > { %v4538_v61 = vsel %vm521_vm4, %v4537_v53, %v4536_v50  ;;  %v6874_v19 = vld [vmem:[#allocation2 + $0x37] sm:$0x1]  ;;  %v6877_v28 = vld [vmem:[#allocation2 + $0x2a] sm:$0x1]  ;;  %v4440_v22 = vld [vmem:[#allocation2 + $0x2c] sm:$0x1]  ;;  %v4269_v1 = vsel %vm523_vm5, %v4268_v63, %v4267_v21  ;;  %v4203_v57 = vsel %vm521_vm4, %v4202_v14, %v4201_v47 }
 0x4ca   : > { %v6886_v10 = vld [vmem:[#allocation2 + $0x34] sm:$0x1]  ;;  %v4169_v53 = vld [vmem:[#allocation2 + $0x28] sm:$0x1]  ;;  %v4540_v59 = vsel %vm523_vm5, %v4539_v15, %v4538_v61  ;;  %v4270_v5 = vrot.slane %v4234_v13, 2  ;;  %v4607_v60 = vrot.slane %v4572_v35, 3 }
 0x4cb   : > { %v4732_v24 = vld [vmem:[%s7160_s3 + $0xc8] sm:$0xff]  ;;  %v4609_v16 = vrot.slane %v6867_v31, 2  ;;  %v4675_v38 = vrot.slane %v4640_v12, 3  ;;  %v6905_v9 = vld [vmem:[#allocation2 + $0x32] sm:$0x1]  ;;  %v4475_v54 = vrot.slane %v4440_v22, 3  ;;  %v4542_v56 = vsel %vm525_vm6, %v4541_v4, %v4540_v59 }
 0x4cc   : > { %v5546_v6 = vpack.c.bf16 %v4732_v24, %v4731_v58  ;;  %v4204_v48 = vrot.slane %v4169_v53, 3  ;;  %v6908_v25 = vld [vmem:[#allocation2 + $0x30] sm:$0x1]  ;;  %v4677_v50 = vrot.slane %v6874_v19, 2  ;;  %v4337_v29 = vrot.slane %v6877_v28, 3  ;;  %v4734_v23 = vld [vmem:[%s7160_s3 + $0xd8] sm:$0xff] }
 0x4cd   : > { %v6912_v27 = vld [vmem:[#allocation2 + $0x2b] sm:$0x1]  ;;  %v4477_v34 = vrot.slane %v6886_v10, 2  ;;  %v4733_v2 = vld [vmem:[%s7160_s3 + $0xd0] sm:$0xff]  ;;  %v4271_v30 = vsel %vm525_vm6, %v4270_v5, %v4269_v1  ;;  %v4718_v13 = vld [vmem:[%s7160_s3 + $0x58] sm:$0xff]  ;;  %v4676_v63 = vsel %vm523_vm5, %v4675_v38, %v4674_v39  ;;  %v4339_v42 = vrot.slane %v6905_v9, 2 }
 0x4ce   : > { %5547 = vmatprep.subr.bf16.mxu0 %v5546_v6  ;;  %v5550_v15 = vpack.c.bf16 %v4734_v23, %v4733_v2  ;;  %v5552_v35 = vpack.c.bf16 %v4718_v13, %v4717_v37  ;;  %v4476_v0 = vsel %vm523_vm5, %v4475_v54, %v4474_v41  ;;  %v4205_v61 = vsel %vm523_vm5, %v4204_v48, %v4203_v57  ;;  %v4370_v22 = vld [vmem:[#allocation2 + $0x23] sm:$0x1]  ;;  %v4720_v38 = vld [vmem:[%s7160_s3 + $0x68] sm:$0xff]  ;;  %v4737_v6 = vld [vmem:[%s7160_s3 + $0xf0] sm:$0xff] }
 0x4cf   : > { %5549 = vmatpush3.bf16.msra.mxu0 %v5548_v45  ;;  %v4206_v21 = vrot.slane %v6908_v25, 2  ;;  %v4678_v53 = vsel %vm525_vm6, %v4677_v50, %v4676_v63  ;;  %v4406_v47 = vrot.slane %v6912_v27, 3  ;;  %v4735_v5 = vld [vmem:[%s7160_s3 + $0xe0] sm:$0xff]  ;;  %v4338_v58 = vsel %vm523_vm5, %v4337_v29, %v6880_v18  ;;  %v4738_v54 = vld [vmem:[%s7160_s3 + $0xf8] sm:$0xff]  ;;  %v4721_v48 = vld [vmem:[%s7160_s3 + $0x70] sm:$0xff] }
 0x4d0   : > { %5551 = vmatprep.subr.bf16.mxu0 %v5550_v15  ;;  %v4478_v24 = vsel %vm525_vm6, %v4477_v34, %v4476_v0  ;;  %v4722_v25 = vld [vmem:[%s7160_s3 + $0x78] sm:$0xff]  ;;  %v4372_v29 = vld [vmem:[#allocation2 + $0x33] sm:$0x1]  ;;  %v5558_v34 = vpack.c.bf16 %v4738_v54, %v4737_v6  ;;  %v4404_v23 = vrot.slane %v4370_v22, 4 }
 0x4d1   : > { %v4207_v9 = vsel %vm525_vm6, %v4206_v21, %v4205_v61 }
 0x4d3   : > { %5553 = vmatpush3.bf16.msra.mxu0 %v5552_v35 }
 0x4e5   : > { %v3560_v44 = vpop.f32.mrb[30].mxu1 }
 0x4e6   : > { %4155 = vst.msk [vmem:[#allocation2 + $0x38] sm:$0xff] %vm317_vm0, %v3560_v44  ;;  %v5353_v55 = vpop.f32.mrb[31].mxu1  ;;  %v4608_v44 = vsel %vm523_vm5, %v4607_v60, %v4606_v51  ;;  %v4736_v60 = vld [vmem:[%s7160_s3 + $0xe8] sm:$0xff] }
 0x4e7   : > { %v4610_v10 = vsel %vm525_vm6, %v4609_v16, %v4608_v44  ;;  %v5554_v1 = vpack.c.bf16 %v4736_v60, %v4735_v5  ;;  %v4719_v16 = vld [vmem:[%s7160_s3 + $0x60] sm:$0xff] }
 0x4e8   : > { %v5556_v41 = vpack.c.bf16 %v4720_v38, %v4719_v16 }
 0x4e9   : > { %5555 = vmatprep.subr.bf16.mxu0 %v5554_v1 }
 0x4ea   : > { %5557 = vmatpush3.bf16.msra.mxu0 %v5556_v41 }
 0x4eb   : > { %5559 = vmatprep.subr.bf16.mxu0 %v5558_v34 }
 0x4ed   : > { %v3706_v32 = vpop.f32.mrb[32].mxu1  ;;  %v4506_v40 = vld [vmem:[#allocation2 + $0x3d] sm:$0x1]  ;;  %v4235_v52 = vld [vmem:[#allocation2 + $0x39] sm:$0x1] }
 0x4ee   : > { %4157 = vst.msk [vmem:[#allocation2 + $0x48] sm:$0xff] %vm317_vm0, %v3706_v32  ;;  %v5367_v20 = vpop.f32.mrb[33].mxu1  ;;  %v3779_v14 = vpop.f32.mrb[22].mxu0  ;;  %v4543_v8 = vrot.slane %v4506_v40, 1  ;;  %v4272_v33 = vrot.slane %v4235_v52, 1  ;;  %v5560_v32 = vpack.c.bf16 %v4722_v25, %v4721_v48  ;;  %v4340_v40 = vsel %vm525_vm6, %v4339_v42, %v4338_v58 }
 0x4ef   : > { %v4574_v55 = vld [vmem:[#allocation2 + $0x3e] sm:$0x1]  ;;  %4158 = vst.msk [vmem:[#allocation2 + $0x50] sm:$0xff] %vm317_vm0, %v3779_v14  ;;  %v5374_v31 = vpop.f32.mrb[23].mxu0  ;;  %v4642_v46 = vld [vmem:[#allocation2 + $0x3f] sm:$0x1] }
 0x4f0   : > { %v4544_v51 = vsel %vm527_vm7, %v4543_v8, %v4542_v56  ;;  %v4273_v12 = vsel %vm527_vm7, %v4272_v33, %v4271_v30  ;;  %v4611_v19 = vrot.slane %v4574_v55, 1  ;;  %v4679_v39 = vrot.slane %v4642_v46, 1  ;;  %v4304_v28 = vld [vmem:[#allocation2 + $0x3a] sm:$0x1]  ;;  %v4442_v62 = vld [vmem:[#allocation2 + $0x3c] sm:$0x1]  ;;  %5561 = vmatpush3.bf16.msra.mxu0 %v5560_v32 }
 0x4f1   : > { %4559 = vrot.lane.b32.xlu1 %v4544_v51, %s5672_s28  ;;  %4288 = vrot.lane.b32.xlu0 %v4273_v12, %s5672_s28  ;;  %v4479_v59 = vrot.slane %v4442_v62, 1  ;;  %v4171_v4 = vld [vmem:[#allocation2 + $0x38] sm:$0x1]  ;;  %v4341_v26 = vrot.slane %v4304_v28, 1  ;;  %v4373_v2 = vld [vmem:[#allocation2 + $0x3b] sm:$0x1]  ;;  %v4405_v56 = vsel %vm521_vm4, %v4404_v23, %v6883_v17 }
 0x4f2   : > { %v4208_v3 = vrot.slane %v4171_v4, 1  ;;  %v4612_v45 = vsel %vm527_vm7, %v4611_v19, %v4610_v10  ;;  %v4680_v50 = vsel %vm527_vm7, %v4679_v39, %v4678_v53  ;;  %v4408_v52 = vrot.slane %v4372_v29, 2  ;;  %v4507_v62 = vld [vmem:[#allocation2 + $0x45] sm:$0x1]  ;;  %v4236_v53 = vld [vmem:[#allocation2 + $0x41] sm:$0x1] }
 0x4f3   : > { %v4480_v18 = vsel %vm527_vm7, %v4479_v59, %v4478_v24  ;;  %v4342_v30 = vsel %vm527_vm7, %v4341_v26, %v4340_v40  ;;  %v4407_v44 = vsel %vm523_vm5, %v4406_v47, %v4405_v56  ;;  %v4410_v15 = vrot.slane %v4373_v2, 1  ;;  %v4374_v2 = vld [vmem:[#allocation2 + $0x43] sm:$0x1] }
 0x4f4   : > { %4497 = vst.msk [vmem:[#allocation3 + $0x8] sm:$0xff] %vm317_vm0, %v4480_v18  ;;  %v4209_v27 = vsel %vm527_vm7, %v4208_v3, %v4207_v9  ;;  %v4409_v13 = vsel %vm525_vm6, %v4408_v52, %v4407_v44 }
 0x4f5   : > { %v3925_v57 = vpop.f32.mrb[24].mxu0  ;;  %4627 = vrot.lane.b32.xlu1 %v4612_v45, %s5675_s30  ;;  %4695 = vrot.lane.b32.xlu0 %v4680_v50, %s5673_s29  ;;  %4226 = vst.msk [vmem:[#allocation3] sm:$0xff] %vm317_vm0, %v4209_v27  ;;  %v4411_v20 = vsel %vm527_vm7, %v4410_v15, %v4409_v13  ;;  %v4508_v8 = vld [vmem:[#allocation2 + $0x4d] sm:$0x1]  ;;  %v4237_v33 = vld [vmem:[#allocation2 + $0x49] sm:$0x1] }
 0x4f6   : > { %4160 = vst.msk [vmem:[#allocation2 + $0x60] sm:$0xff] %vm317_vm0, %v3925_v57  ;;  %v5388_v37 = vpop.f32.mrb[25].mxu0  ;;  %v4509_v55 = vld [vmem:[#allocation2 + $0x55] sm:$0x1]  ;;  %v4238_v63 = vld [vmem:[#allocation2 + $0x51] sm:$0x1] }
 0x4f7   : > { %v4576_v35 = vld [vmem:[#allocation2 + $0x4e] sm:$0x1]  ;;  %v6992_v31 = vld [vmem:[#allocation2 + $0x56] sm:$0x1]  ;;  %v4545_v46 = vrot.slane %v4508_v8, 7  ;;  %v4547_v42 = vrot.slane %v4509_v55, 6 }
 0x4f8   : > { %v4274_v0 = vrot.slane %v4237_v33, 7  ;;  %v4276_v61 = vrot.slane %v4238_v63, 6  ;;  %v4613_v21 = vrot.slane %v4576_v35, 7  ;;  %v4615_v51 = vrot.slane %v6992_v31, 6  ;;  %v4306_v12 = vld [vmem:[#allocation2 + $0x4a] sm:$0x1] }
 0x4f9   : > { %4357 = vrot.lane.b32.xlu1 %v4342_v30, %s5675_s30  ;;  %v6995_v19 = vld [vmem:[#allocation2 + $0x52] sm:$0x1]  ;;  %v4644_v39 = vld [vmem:[#allocation2 + $0x4f] sm:$0x1]  ;;  %v6997_v28 = vld [vmem:[#allocation2 + $0x57] sm:$0x1]  ;;  %v4546_v18 = vsel %vm515_vm1, %v4545_v46, %v4507_v62 }
 0x4fa   : > { %v4375_v22 = vld [vmem:[#allocation2 + $0x4b] sm:$0x1]  ;;  %v7001_v47 = vld [vmem:[#allocation2 + $0x53] sm:$0x1]  ;;  %v7003_v59 = vld [vmem:[#allocation2 + $0x4c] sm:$0x1]  ;;  %v4275_v9 = vsel %vm515_vm1, %v4274_v0, %v4236_v53  ;;  %v4548_v56 = vsel %vm517_vm2, %v4547_v42, %v4546_v18 }
 0x4fb   : > { %v4343_v58 = vrot.slane %v4306_v12, 7  ;;  %v4345_v1 = vrot.slane %v6995_v19, 6  ;;  %v4681_v16 = vrot.slane %v4644_v39, 7  ;;  %v4683_v38 = vrot.slane %v6997_v28, 6  ;;  %v7016_v54 = vld [vmem:[#allocation2 + $0x54] sm:$0x1] }
 0x4fc   : > { %v4412_v6 = vrot.slane %v4375_v22, 7  ;;  %v4414_v41 = vrot.slane %v7001_v47, 6  ;;  %v4173_v48 = vld [vmem:[#allocation2 + $0x48] sm:$0x1]  ;;  %v4575_v50 = vld [vmem:[#allocation2 + $0x46] sm:$0x1]  ;;  %v4277_v30 = vsel %vm517_vm2, %v4276_v61, %v4275_v9 }
 0x4fd   : > { %4426 = vrot.lane.b32.xlu1 %v4411_v20, %s5673_s29  ;;  %v6999_v10 = vld [vmem:[#allocation2 + $0x65] sm:$0x1]  ;;  %v7005_v5 = vld [vmem:[#allocation2 + $0x61] sm:$0x1]  ;;  %v7007_v60 = vld [vmem:[#allocation2 + $0x66] sm:$0x1]  ;;  %v4614_v13 = vsel %vm515_vm1, %v4613_v21, %v4575_v50 }
 0x4fe   : > { %v4551_v25 = vrot.slane %v6999_v10, 4  ;;  %v4280_v45 = vrot.slane %v7005_v5, 4  ;;  %v4619_v29 = vrot.slane %v7007_v60, 4  ;;  %v4305_v27 = vld [vmem:[#allocation2 + $0x42] sm:$0x1]  ;;  %v4481_v23 = vrot.slane %v7003_v59, 7 }
 0x4ff   : > { %v7021_v34 = vld [vmem:[#allocation2 + $0x62] sm:$0x1]  ;;  %v4643_v57 = vld [vmem:[#allocation2 + $0x47] sm:$0x1]  ;;  %v7026_v40 = vld [vmem:[#allocation2 + $0x63] sm:$0x1]  ;;  %v4344_v20 = vsel %vm515_vm1, %v4343_v58, %v4305_v27  ;;  %v4413_v33 = vsel %vm515_vm1, %v4412_v6, %v4374_v2 }
 0x500   : > { %v7024_v32 = vld [vmem:[#allocation2 + $0x67] sm:$0x1]  ;;  %v4682_v8 = vsel %vm515_vm1, %v4681_v16, %v4643_v57  ;;  %v4174_v55 = vld [vmem:[#allocation2 + $0x50] sm:$0x1]  ;;  %v4349_v63 = vrot.slane %v7021_v34, 4  ;;  %v4483_v46 = vrot.slane %v7016_v54, 6  ;;  %v4415_v6 = vsel %vm517_vm2, %v4414_v41, %v4413_v33 }
 0x501   : > { %v4687_v35 = vrot.slane %v7024_v32, 4  ;;  %v7039_v42 = vld [vmem:[#allocation2 + $0x60] sm:$0x1]  ;;  %v4210_v0 = vrot.slane %v4173_v48, 7  ;;  %v4443_v39 = vld [vmem:[#allocation2 + $0x44] sm:$0x1]  ;;  %v4684_v16 = vsel %vm517_vm2, %v4683_v38, %v4682_v8 }
 0x502   : > { %v4418_v62 = vrot.slane %v7026_v40, 4  ;;  %v4172_v47 = vld [vmem:[#allocation2 + $0x40] sm:$0x1]  ;;  %v4212_v59 = vrot.slane %v4174_v55, 6  ;;  %v4482_v54 = vsel %vm515_vm1, %v4481_v23, %v4443_v39  ;;  %v4216_v27 = vrot.slane %v7039_v42, 4 }
 0x503   : > { %v4211_v50 = vsel %vm515_vm1, %v4210_v0, %v4172_v47  ;;  %vm4911_vm1 = vcmask 1047936  }
 0x50e   : > { %v3852_v14 = vpop.f32.mrb[34].mxu1 }
 0x50f   : > { %4159 = vst.msk [vmem:[#allocation2 + $0x58] sm:$0xff] %vm317_vm0, %v3852_v14  ;;  %v5381_v17 = vpop.f32.mrb[35].mxu1 }
 0x510   : > { %v7034_v17 = vld [vmem:[#allocation2 + $0x64] sm:$0x1] }
 0x511   : > { %v4487_v53 = vrot.slane %v7034_v17, 4 }
 0x516   : > { %v3998_v4 = vpop.f32.mrb[36].mxu1  ;;  %v4510_v37 = vld [vmem:[#allocation2 + $0x5d] sm:$0x1]  ;;  %v4239_v52 = vld [vmem:[#allocation2 + $0x59] sm:$0x1] }
 0x517   : > { %4161 = vst.msk [vmem:[#allocation2 + $0x68] sm:$0xff] %vm317_vm0, %v3998_v4  ;;  %v5395_v24 = vpop.f32.mrb[37].mxu1  ;;  %v4071_v3 = vpop.f32.mrb[26].mxu0  ;;  %v4578_v44 = vld [vmem:[#allocation2 + $0x5e] sm:$0x1]  ;;  %v4549_v61 = vrot.slane %v4510_v37, 5 }
 0x518   : > { %4162 = vst.msk [vmem:[#allocation2 + $0x70] sm:$0xff] %vm317_vm0, %v4071_v3  ;;  %v5402_v26 = vpop.f32.mrb[27].mxu0  ;;  %v4308_v15 = vld [vmem:[#allocation2 + $0x5a] sm:$0x1]  ;;  %v4646_v14 = vld [vmem:[#allocation2 + $0x5f] sm:$0x1]  ;;  %v4616_v24 = vsel %vm517_vm2, %v4615_v51, %v4614_v13  ;;  %v4346_v3 = vsel %vm517_vm2, %v4345_v1, %v4344_v20  ;;  %v4484_v20 = vsel %vm517_vm2, %v4483_v46, %v4482_v54 }
 0x519   : > { %v4278_v21 = vrot.slane %v4239_v52, 5  ;;  %v4617_v12 = vrot.slane %v4578_v44, 5  ;;  %v4347_v19 = vrot.slane %v4308_v15, 5  ;;  %v4446_v28 = vld [vmem:[#allocation2 + $0x5c] sm:$0x1]  ;;  %v4685_v22 = vrot.slane %v4646_v14, 5 }
 0x51a   : > { %v4175_v26 = vld [vmem:[#allocation2 + $0x58] sm:$0x1]  ;;  %v4377_v9 = vld [vmem:[#allocation2 + $0x5b] sm:$0x1]  ;;  %v4485_v48 = vrot.slane %v4446_v28, 5  ;;  %v4550_v31 = vsel %vm519_vm3, %v4549_v61, %v4548_v56 }
 0x51b   : > { %v4279_v1 = vsel %vm519_vm3, %v4278_v21, %v4277_v30  ;;  %v4618_v38 = vsel %vm519_vm3, %v4617_v12, %v4616_v24  ;;  %v4348_v41 = vsel %vm519_vm3, %v4347_v19, %v4346_v3  ;;  %v4686_v32 = vsel %vm519_vm3, %v4685_v22, %v4684_v16 }
 0x51c   : > { %v4214_v52 = vrot.slane %v4175_v26, 5  ;;  %v4416_v56 = vrot.slane %v4377_v9, 5  ;;  %v4213_v30 = vsel %vm517_vm2, %v4212_v59, %v4211_v50  ;;  %v4552_v14 = vsel %vm521_vm4, %v4551_v25, %v4550_v31 }
 0x51d   : > { %v4486_v55 = vsel %vm519_vm3, %v4485_v48, %v4484_v20  ;;  %v4281_v0 = vsel %vm521_vm4, %v4280_v45, %v4279_v1  ;;  %v4620_v46 = vsel %vm521_vm4, %v4619_v29, %v4618_v38  ;;  %v4350_v21 = vsel %vm521_vm4, %v4349_v63, %v4348_v41 }
 0x51e   : > { %v4512_v4 = vld [vmem:[#allocation2 + $0x6d] sm:$0x1]  ;;  %v4241_v58 = vld [vmem:[#allocation2 + $0x69] sm:$0x1]  ;;  %v4580_v57 = vld [vmem:[#allocation2 + $0x6e] sm:$0x1]  ;;  %v4688_v25 = vsel %vm521_vm4, %v4687_v35, %v4686_v32  ;;  %v4215_v5 = vsel %vm519_vm3, %v4214_v52, %v4213_v30  ;;  %v4417_v45 = vsel %vm519_vm3, %v4416_v56, %v4415_v6  ;;  %v4488_v60 = vsel %vm521_vm4, %v4487_v53, %v4486_v55 }
 0x51f   : > { %v4513_v18 = vld [vmem:[#allocation2 + $0x75] sm:$0x1]  ;;  %v4242_v51 = vld [vmem:[#allocation2 + $0x71] sm:$0x1]  ;;  %v4553_v23 = vrot.slane %v4512_v4, 3  ;;  %v4282_v37 = vrot.slane %v4241_v58, 3  ;;  %v4217_v53 = vsel %vm521_vm4, %v4216_v27, %v4215_v5  ;;  %v4419_v56 = vsel %vm521_vm4, %v4418_v62, %v4417_v45 }
 0x520   : > { %v4555_v44 = vrot.slane %v4513_v18, 2  ;;  %v4581_v15 = vld [vmem:[#allocation2 + $0x76] sm:$0x1]  ;;  %v4310_v13 = vld [vmem:[#allocation2 + $0x6a] sm:$0x1]  ;;  %v4284_v8 = vrot.slane %v4242_v51, 2 }
 0x521   : > { %v4621_v33 = vrot.slane %v4580_v57, 3  ;;  %v4448_v17 = vld [vmem:[#allocation2 + $0x6c] sm:$0x1]  ;;  %v4177_v42 = vld [vmem:[#allocation2 + $0x68] sm:$0x1]  ;;  %v4554_v19 = vsel %vm523_vm5, %v4553_v23, %v4552_v14  ;;  %v4283_v39 = vsel %vm523_vm5, %v4282_v37, %v4281_v0  ;;  %v4351_v28 = vrot.slane %v4310_v13, 3 }
 0x522   : > { %v4144_v34 = vpop.f32.mrb[38].mxu1  ;;  %v4311_v61 = vld [vmem:[#allocation2 + $0x72] sm:$0x1]  ;;  %v4648_v10 = vld [vmem:[#allocation2 + $0x6f] sm:$0x1]  ;;  %v4489_v29 = vrot.slane %v4448_v17, 3  ;;  %v4556_v16 = vsel %vm525_vm6, %v4555_v44, %v4554_v19  ;;  %v4285_v18 = vsel %vm525_vm6, %v4284_v8, %v4283_v39 }
 0x523   : > { %4163 = vst.msk [vmem:[#allocation2 + $0x78] sm:$0xff] %vm317_vm0, %v4144_v34  ;;  %v5409_v2 = vpop.f32.mrb[39].mxu1  ;;  %v7071_v12 = vld [vmem:[#allocation2 + $0x77] sm:$0x1]  ;;  %v4449_v22 = vld [vmem:[#allocation2 + $0x74] sm:$0x1]  ;;  %v4622_v6 = vsel %vm523_vm5, %v4621_v33, %v4620_v46  ;;  %v4352_v51 = vsel %vm523_vm5, %v4351_v28, %v4350_v21 }
 0x524   : > { %v4218_v47 = vrot.slane %v4177_v42, 3  ;;  %v4178_v63 = vld [vmem:[#allocation2 + $0x70] sm:$0x1]  ;;  %v4623_v59 = vrot.slane %v4581_v15, 2  ;;  %v4353_v4 = vrot.slane %v4311_v61, 2  ;;  %v4689_v58 = vrot.slane %v4648_v10, 3 }
 0x525   : > { %v4691_v35 = vrot.slane %v7071_v12, 2  ;;  %v4379_v24 = vld [vmem:[#allocation2 + $0x6b] sm:$0x1]  ;;  %v4491_v34 = vrot.slane %v4449_v22, 2  ;;  %v4220_v31 = vrot.slane %v4178_v63, 2  ;;  %v4490_v38 = vsel %vm523_vm5, %v4489_v29, %v4488_v60 }
 0x526   : > { %v4380_v1 = vld [vmem:[#allocation2 + $0x73] sm:$0x1]  ;;  %v4420_v57 = vrot.slane %v4379_v24, 3  ;;  %v4219_v41 = vsel %vm523_vm5, %v4218_v47, %v4217_v53  ;;  %v4624_v44 = vsel %vm525_vm6, %v4623_v59, %v4622_v6  ;;  %v4354_v14 = vsel %vm525_vm6, %v4353_v4, %v4352_v51 }
 0x527   : > { %v4690_v8 = vsel %vm523_vm5, %v4689_v58, %v4688_v25  ;;  %v4492_v33 = vsel %vm525_vm6, %v4491_v34, %v4490_v38  ;;  %v4221_v17 = vsel %vm525_vm6, %v4220_v31, %v4219_v41  ;;  %v4422_v42 = vrot.slane %v4380_v1, 2 }
 0x528   : > { %v4421_v55 = vsel %vm523_vm5, %v4420_v57, %v4419_v56  ;;  %v4692_v10 = vsel %vm525_vm6, %v4691_v35, %v4690_v8  ;;  %v5047_v56 = vld [vmem:[%s7162_s5] ss:$0 sm:$0xff] }
 0x529   : > { %v4423_v12 = vsel %vm525_vm6, %v4422_v42, %v4421_v55 }
 0x52a   : > { %v4514_v3 = vld [vmem:[#allocation2 + $0x7d] sm:$0x1]  ;;  %v4243_v26 = vld [vmem:[#allocation2 + $0x79] sm:$0x1]  ;;  %v4582_v9 = vld [vmem:[#allocation2 + $0x7e] sm:$0x1] }
 0x52b   : > { %v4557_v54 = vrot.slane %v4514_v3, 1  ;;  %v4286_v48 = vrot.slane %v4243_v26, 1  ;;  %v4312_v50 = vld [vmem:[#allocation2 + $0x7a] sm:$0x1]  ;;  %v4625_v37 = vrot.slane %v4582_v9, 1 }
 0x52c   : > { %v4355_v32 = vrot.slane %v4312_v50, 1  ;;  %v4450_v27 = vld [vmem:[#allocation2 + $0x7c] sm:$0x1]  ;;  %v4179_v52 = vld [vmem:[#allocation2 + $0x78] sm:$0x1] }
 0x52d   : > { %v4558_v2 = vsel %vm527_vm7, %v4557_v54, %v4556_v16  ;;  %v4287_v23 = vsel %vm527_vm7, %v4286_v48, %v4285_v18  ;;  %v4650_v15 = vld [vmem:[#allocation2 + $0x7f] sm:$0x1]  ;;  %v4381_v13 = vld [vmem:[#allocation2 + $0x7b] sm:$0x1]  ;;  %v4493_v20 = vrot.slane %v4450_v27, 1  ;;  %v4222_v30 = vrot.slane %v4179_v52, 1 }
 0x52e   : > { %4561 = vrot.lane.b32.xlu0 %v4558_v2, %s5672_s28  ;;  %4290 = vrot.lane.b32.xlu1 %v4287_v23, %s5672_s28  ;;  %v4626_v40 = vsel %vm527_vm7, %v4625_v37, %v4624_v44  ;;  %v4356_v62 = vsel %vm527_vm7, %v4355_v32, %v4354_v14  ;;  %v4693_v61 = vrot.slane %v4650_v15, 1  ;;  %v4424_v21 = vrot.slane %v4381_v13, 1  ;;  %v5046_v18 = vld [vmem:[%s7161_s4] ss:$0 sm:$0xff] }
 0x52f   : > { %v4494_v0 = vsel %vm527_vm7, %v4493_v20, %v4492_v33  ;;  %v4223_v46 = vsel %vm527_vm7, %v4222_v30, %v4221_v17  ;;  %v5048_v30 = vld [vmem:[%s7163_s6] ss:$0 sm:$0xff] }
 0x530   : > { %4498 = vst.msk [vmem:[#allocation3 + $0x18] sm:$0xff] %vm317_vm0, %v4494_v0  ;;  %4227 = vst.msk [vmem:[#allocation3 + $0x10] sm:$0xff] %vm317_vm0, %v4223_v46  ;;  %v4694_v25 = vsel %vm527_vm7, %v4693_v61, %v4692_v10  ;;  %v4425_v19 = vsel %vm527_vm7, %v4424_v21, %v4423_v12 }
 0x532   : > { %4629 = vrot.lane.b32.xlu0 %v4626_v40, %s5675_s30  ;;  %4359 = vrot.lane.b32.xlu1 %v4356_v62, %s5675_s30 }
 0x536   : > { %4697 = vrot.lane.b32.xlu0 %v4694_v25, %s5673_s29  ;;  %4428 = vrot.lane.b32.xlu1 %v4425_v19, %s5673_s29 }
 0x563   : > { %v4560_v39 = vpop.permute.xlu1 %4559  ;;  %v4289_v28 = vpop.permute.xlu0 %4288 }
 0x564   : > { %4565 = vst.msk [vmem:[#allocation3 + $0x8] sm:$0xff] %vm4294_vm12, %v4560_v39  ;;  %4295 = vst.msk [vmem:[#allocation3] sm:$0xff] %vm4294_vm12, %v4289_v28 }
 0x567   : > { %v4628_v5 = vpop.permute.xlu1 %4627  ;;  %v4696_v45 = vpop.permute.xlu0 %4695 }
 0x568   : > { %4633 = vst.msk [vmem:[#allocation3 + $0x8] sm:$0xff] %vm4363_vm13, %v4628_v5 }
 0x569   : > { %4701 = vst.msk [vmem:[#allocation3 + $0x8] sm:$0xff] %vm4432_vm14, %v4696_v45 }
 0x56b   : > { %v4358_v60 = vpop.permute.xlu1 %4357 }
 0x56c   : > { %4364 = vst.msk [vmem:[#allocation3] sm:$0xff] %vm4363_vm13, %v4358_v60 }
 0x56f   : > { %v4427_v29 = vpop.permute.xlu1 %4426 }
 0x570   : > { %4433 = vst.msk [vmem:[#allocation3] sm:$0xff] %vm4432_vm14, %v4427_v29  ;;  %v4704_v22 = vld [vmem:[#allocation3 + $0x8] sm:$0xff] }
 0x571   : > { %4810 = vmatprep.mubr.f32.mxu0 %v4704_v22 }
 0x577   : > { %v4703_v47 = vld [vmem:[#allocation3] sm:$0xff] }
 0x578   : > { %4811 = vmatmul.mubr.f32.vlgmr.msra.gmra.mrb[28].mxu0 %v4703_v47 }
 0x5a0   : > { %v4562_v63 = vpop.permute.xlu0 %4561  ;;  %v4291_v59 = vpop.permute.xlu1 %4290 }
 0x5a1   : > { %4566 = vst.msk [vmem:[#allocation3 + $0x18] sm:$0xff] %vm4294_vm12, %v4562_v63  ;;  %4296 = vst.msk [vmem:[#allocation3 + $0x10] sm:$0xff] %vm4294_vm12, %v4291_v59 }
 0x5a4   : > { %v4630_v4 = vpop.permute.xlu0 %4629  ;;  %v4360_v58 = vpop.permute.xlu1 %4359 }
 0x5a5   : > { %4634 = vst.msk [vmem:[#allocation3 + $0x18] sm:$0xff] %vm4363_vm13, %v4630_v4  ;;  %4365 = vst.msk [vmem:[#allocation3 + $0x10] sm:$0xff] %vm4363_vm13, %v4360_v58 }
 0x5a8   : > { %v4698_v35 = vpop.permute.xlu0 %4697  ;;  %v4429_v24 = vpop.permute.xlu1 %4428 }
 0x5a9   : > { %4702 = vst.msk [vmem:[#allocation3 + $0x18] sm:$0xff] %vm4432_vm14, %v4698_v35  ;;  %4434 = vst.msk [vmem:[#allocation3 + $0x10] sm:$0xff] %vm4432_vm14, %v4429_v24 }
 0x5b0   : > { %v4706_v3 = vld [vmem:[#allocation3 + $0x18] sm:$0xff]  ;;  %v4705_v16 = vld [vmem:[#allocation3 + $0x10] sm:$0xff] }
 0x5b1   : > { %4815 = vmatprep.mubr.f32.mxu0 %v4706_v3 }
 0x5b2   : > { %4816 = vmatmul.mubr.f32.gmra.mrb[30].mxu0 %v4705_v16 }
 0x64b   : > { %v5180_v26 = vpop.f32.mrb[28].mxu0 }
 0x64c   : > { %v5181_v9 = vpop.f32.mrb[29].mxu0 }
 0x64d   : > { %v5182_v6 = vadd.f32 %v5181_v9, %v5180_v26 }
 0x64f   : > { %v4813_v53 = vadd.f32 %v5182_v6, %v5046_v18 }
 0x651   : > { %v4823_v54 = vadd.f32 %v4813_v53, %v5867_v49 }
 0x653   : > { %v4825_v48 = vsel %vm317_vm0, %v4823_v54, 0.0 }
 0x654   : > { %4826 = vadd.xlane.f32.xlu0 %v4825_v48 }
 0x685   : > { %v5183_v50 = vpop.f32.mrb[30].mxu0 }
 0x686   : > { %v5184_v34 = vpop.f32.mrb[31].mxu0 }
 0x687   : > { %v5185_v31 = vadd.f32 %v5184_v34, %v5183_v50 }
 0x689   : > { %v4818_v51 = vadd.f32 %v5185_v31, %v5046_v18 }
 0x68b   : > { %v4824_v1 = vadd.f32 %v4818_v51, %v5887_v11 }
 0x68d   : > { %v4828_v57 = vsel %vm317_vm0, %v4824_v1, 0.0 }
 0x68e   : > { %4829 = vadd.xlane.f32.xlu1 %v4828_v57 }
 0x69f   : > { %4902 = vrot.lane.b32.xlu1 %v6730_v43, %s5672_s28 }
 0x6e1   : > { %v4827_v38 = vpop.xlane.xlu0 %4826 }
 0x6e2   : > { %v4832_v41 = vmul.f32 0.03125, %v4827_v38 }
 0x6e4   : > { %v4834_v2 = vsub.f32 %v4823_v54, %v4832_v41 }
 0x6e6   : > { %v4836_v49 = vmul.f32 %v4834_v2, %v4834_v2 }
 0x6e8   : > { %v4838_v23 = vsel %vm317_vm0, %v4836_v49, 0.0 }
 0x6e9   : > { %4839 = vadd.xlane.f32.xlu0 %v4838_v23 }
 0x71b   : > { %v4830_v37 = vpop.xlane.xlu1 %4829 }
 0x71c   : > { %v4833_v32 = vmul.f32 0.03125, %v4830_v37 }
 0x71e   : > { %v4835_v27 = vsub.f32 %v4824_v1, %v4833_v32 }
 0x71f   : > { %v4903_v40 = vpop.permute.xlu1 %4902 }
 0x720   : > { %v4837_v52 = vmul.f32 %v4835_v27, %v4835_v27 }
 0x722   : > { %v4841_v11 = vsel %vm317_vm0, %v4837_v52, 0.0 }
 0x723   : > { %4842 = vadd.xlane.f32.xlu0 %v4841_v11 }
 0x739   : > { %4904 = vrot.lane.b32.xlu0 %v6763_v36, %s5672_s28 }
 0x776   : > { %v4840_v44 = vpop.xlane.xlu0 %4839 }
 0x777   : > { %v4844_v43 = vmul.f32 0.03125, %v4840_v44 }
 0x779   : > { %v4846_v15 = vadd.f32 1e-05, %v4844_v43 }
 0x77b   : > { %5641 = vrsqrt.f32 %v4846_v15 }
 0x785   : > { %v5642_v13 = vpop.eup %5641 }
 0x786   : > { %v4850_v20 = vmul.f32 %v5642_v13, %v4834_v2 }
 0x788   : > { %v4859_v36 = vmul.f32 %v5047_v56, %v4850_v20 }
 0x78a   : > { %v4868_v14 = vadd.f32 %v5048_v30, %v4859_v36 }
 0x78c   : > { %4870 = vst.msk [vmem:[%s283_s27] sm:$0xff] %vm317_vm0, %v4868_v14 }
 0x78d   : > { %4909 = vst.msk [vmem:[%s283_s27] sm:$0xff] %vm4908_vm15, %v4903_v40 }
 0x78e   : > { %4912 = vst.msk [vmem:[%s283_s27] sm:$0xff] %vm4911_vm1, %v5669_v7 }
 0x7b0   : > { %v4843_v8 = vpop.xlane.xlu0 %4842 }
 0x7b1   : > { %v4845_v33 = vmul.f32 0.03125, %v4843_v8 }
 0x7b3   : > { %v4847_v17 = vadd.f32 1e-05, %v4845_v33 }
 0x7b4   : > { %v4905_v62 = vpop.permute.xlu0 %4904 }
 0x7b5   : > { %5643 = vrsqrt.f32 %v4847_v17 }
 0x7bf   : > { %v5644_v55 = vpop.eup %5643 }
 0x7c0   : > { %v4851_v42 = vmul.f32 %v5644_v55, %v4835_v27 }
 0x7c2   : > { %v4860_v0 = vmul.f32 %v5047_v56, %v4851_v42 }
 0x7c4   : > { %v4869_v46 = vadd.f32 %v5048_v30, %v4860_v0 }
 0x7c6   : > { %4871 = vst.msk [vmem:[%s283_s27 + $0x8] sm:$0xff] %vm317_vm0, %v4869_v46 }
 0x7c7   : > { %4910 = vst.msk [vmem:[%s283_s27 + $0x8] sm:$0xff] %vm4908_vm15, %v4905_v62 }
 0x7c8   : > { %4913 = vst.msk [vmem:[%s283_s27 + $0x8] sm:$0xff] %vm4911_vm1, %v5669_v7 }
 0x7c9 PF: > { %s17_s24 = sadd.s32 1, %s5667_s24  }
 0x7ca   : > { %p14_p5 = scmp.ge.s32.totalorder %s17_s24, 6  }
 0x7cc   :  { %16 = sbr.rel (!%p14_p5) target bundleno = 1 (0x1), region = 78 }

</bundles_post_ra>
